<compile_context>
chip_gen: v7x
topology: tpu7x:2x2x1
jax: 0.10.0
libtpu: 0.0.40
codegen_flags: <defaults>
</compile_context>

<pallas_src>
import functools

import jax
import jax.numpy as jnp
from jax.experimental import pallas as pl
from jax.experimental.pallas import tpu as pltpu

_EPS = 1e-5
_LANE = 128


# --------------------------------------------------------------------------- #
# Kernels
# --------------------------------------------------------------------------- #
def _partial_stats(y_f32):
    """(rows, C) f32 -> (1, 2, C) [sum, sum-of-squares] partial statistics."""
    s = jnp.sum(y_f32, axis=0, keepdims=True)
    ss = jnp.sum(y_f32 * y_f32, axis=0, keepdims=True)
    return jnp.concatenate([s, ss], axis=0)[None]


def conv1_kernel(x_ref, w_ref, y_ref, st_ref):
    # 1x1 conv == channel matmul on the MXU (bf16 in, f32 accumulate).
    y = jnp.dot(x_ref[...], w_ref[...], preferred_element_type=jnp.float32)
    y_ref[...] = y.astype(y_ref.dtype)
    st_ref[...] = _partial_stats(y)


def conv2_kernel(y1_ref, sc_ref, sh_ref, w_ref, y2_ref, st_ref, pad_ref):
    # BN1(scale/shift) + ReLU, then 3x3 conv (stride 1, pad 1) as im2col matmul.
    _, H, W, C = y1_ref.shape
    a = jnp.maximum(
        y1_ref[0].astype(jnp.float32) * sc_ref[...] + sh_ref[...], 0.0)

    # Zero-padded halo scratch; borders are the conv's zero padding.
    pad_ref[...] = jnp.zeros(pad_ref.shape, pad_ref.dtype)
    pad_ref[1:H + 1, 1:W + 1, :] = a.astype(pad_ref.dtype)

    # 9 static-slice taps -> (H*W, 9*C) im2col block -> one K=9C matmul.
    taps = [pad_ref[kh:kh + H, kw:kw + W, :].reshape(H * W, C)
            for kh in range(3) for kw in range(3)]
    patches = jnp.concatenate(taps, axis=-1)
    y2 = jnp.dot(patches, w_ref[...], preferred_element_type=jnp.float32)

    y2_ref[...] = y2.reshape(1, H, W, C).astype(y2_ref.dtype)
    st_ref[...] = _partial_stats(y2)


def conv3_kernel(y2_ref, sc_ref, sh_ref, w_ref, y3_ref, st_ref):
    # BN2(scale/shift) + ReLU, then 1x1 expansion conv.
    a = jnp.maximum(
        y2_ref[...].astype(jnp.float32) * sc_ref[...] + sh_ref[...], 0.0)
    y3 = jnp.dot(a.astype(w_ref.dtype), w_ref[...],
                 preferred_element_type=jnp.float32)
    y3_ref[...] = y3.astype(y3_ref.dtype)
    st_ref[...] = _partial_stats(y3)


def finalize_kernel(y3_ref, xid_ref, sc_ref, sh_ref, o_ref):
    # BN3(scale/shift) + residual add + ReLU.
    y = y3_ref[...].astype(jnp.float32) * sc_ref[...] + sh_ref[...]
    o_ref[...] = jnp.maximum(
        y + xid_ref[...].astype(jnp.float32), 0.0).astype(o_ref.dtype)


# --------------------------------------------------------------------------- #
# Wrapper
# --------------------------------------------------------------------------- #
def _round_up(v, m):
    return (v + m - 1) // m * m


def _pad_block(a, shape):
    """Zero-pad `a` up to `shape` (same rank, trailing padding only)."""
    if tuple(a.shape) == tuple(shape):
        return a
    out = jnp.zeros(shape, a.dtype)
    return out.at[tuple(slice(0, s) for s in a.shape)].set(a)


def _row_tile(M, cap):
    """Largest multiple of 8 that divides M and is <= cap (fallback: M)."""
    t = (max(8, min(cap, M)) // 8) * 8
    while t >= 8:
        if M % t == 0:
            return t
        t -= 8
    return M


def _scale_shift(partial_stats, gamma, beta, count):
    """Fold per-tile (sum, sumsq) into per-channel BN scale/shift (f32)."""
    s = jnp.sum(partial_stats.astype(jnp.float32), axis=0)      # (2, C)
    mean = s[0:1] / count
    var = jnp.maximum(s[1:2] / count - mean * mean, 0.0)
    scale = gamma * jax.lax.rsqrt(var + _EPS)
    shift = beta - mean * scale
    return scale, shift                                          # (1, C) each


@functools.partial(jax.jit, static_argnames=("block_rows", "compute_dtype"))
def resnet_block(x_nchw, w1, g1, b1, w2, g2, b2, w3, g3, b3,
                 *, block_rows=256, compute_dtype=jnp.bfloat16):
    N, Cin, H, W = x_nchw.shape
    C = w1.shape[1]
    Ce = w3.shape[1]
    assert Cin == Ce, "identity_downsample is None -> in_channels must equal out_channels*4"

    M = N * H * W
    Cp = _round_up(C, _LANE)
    Cinp = _round_up(Cin, _LANE)
    Cep = _round_up(Ce, _LANE)
    assert Cinp == Cep
    cd = compute_dtype
    f32 = jnp.float32

    TM = _row_tile(M, block_rows)
    G = M // TM

    # ---- boundary layout work (one fused XLA pass each way) -----------------
    x_nhwc = jnp.transpose(x_nchw, (0, 2, 3, 1))
    x_p = _pad_block(x_nhwc, (N, H, W, Cinp)).reshape(M, Cinp).astype(cd)

    w1_p = _pad_block(w1, (Cinp, Cp)).astype(cd)
    w2_p = _pad_block(w2, (3, 3, Cp, Cp)).reshape(9 * Cp, Cp).astype(cd)
    w3_p = _pad_block(w3, (Cp, Cep)).astype(cd)
    g1_p = _pad_block(g1.reshape(1, -1), (1, Cp)).astype(f32)
    b1_p = _pad_block(b1.reshape(1, -1), (1, Cp)).astype(f32)
    g2_p = _pad_block(g2.reshape(1, -1), (1, Cp)).astype(f32)
    b2_p = _pad_block(b2.reshape(1, -1), (1, Cp)).astype(f32)
    g3_p = _pad_block(g3.reshape(1, -1), (1, Cep)).astype(f32)
    b3_p = _pad_block(b3.reshape(1, -1), (1, Cep)).astype(f32)

    cparams = pltpu.CompilerParams(
        dimension_semantics=("parallel",),          # partial stats -> no grid-carried state
        vmem_limit_bytes=48 * 1024 * 1024,          # safe on v5e/v6e (128 MiB) and v7x (64 MiB)
    )

    # ---- stage 1: conv1 (1x1) + BN1 partial stats ----------------------------
    y1, st1 = pl.pallas_call(
        conv1_kernel,
        grid=(G,),
        in_specs=[pl.BlockSpec((TM, Cinp), lambda i: (i, 0)),
                  pl.BlockSpec((Cinp, Cp), lambda i: (0, 0))],
        out_specs=[pl.BlockSpec((TM, Cp), lambda i: (i, 0)),
                   pl.BlockSpec((1, 2, Cp), lambda i: (i, 0, 0))],
        out_shape=[jax.ShapeDtypeStruct((M, Cp), cd),
                   jax.ShapeDtypeStruct((G, 2, Cp), f32)],
        compiler_params=cparams,
    )(x_p, w1_p)
    sc1, sh1 = _scale_shift(st1, g1_p, b1_p, M)

    # ---- stage 2: BN1+ReLU, conv2 (3x3, halo scratch, im2col) + BN2 stats ----
    y1_4d = y1.reshape(N, H, W, Cp)
    y2, st2 = pl.pallas_call(
        conv2_kernel,
        grid=(N,),
        in_specs=[pl.BlockSpec((1, H, W, Cp), lambda n: (n, 0, 0, 0)),
                  pl.BlockSpec((1, Cp), lambda n: (0, 0)),
                  pl.BlockSpec((1, Cp), lambda n: (0, 0)),
                  pl.BlockSpec((9 * Cp, Cp), lambda n: (0, 0))],
        out_specs=[pl.BlockSpec((1, H, W, Cp), lambda n: (n, 0, 0, 0)),
                   pl.BlockSpec((1, 2, Cp), lambda n: (n, 0, 0))],
        out_shape=[jax.ShapeDtypeStruct((N, H, W, Cp), cd),
                   jax.ShapeDtypeStruct((N, 2, Cp), f32)],
        scratch_shapes=[pltpu.VMEM((H + 2, W + 2, Cp), cd)],
        compiler_params=cparams,
    )(y1_4d, sc1, sh1, w2_p)
    sc2, sh2 = _scale_shift(st2, g2_p, b2_p, M)

    # ---- stage 3: BN2+ReLU, conv3 (1x1 expansion) + BN3 stats ----------------
    y2_flat = y2.reshape(M, Cp)
    y3, st3 = pl.pallas_call(
        conv3_kernel,
        grid=(G,),
        in_specs=[pl.BlockSpec((TM, Cp), lambda i: (i, 0)),
                  pl.BlockSpec((1, Cp), lambda i: (0, 0)),
                  pl.BlockSpec((1, Cp), lambda i: (0, 0)),
                  pl.BlockSpec((Cp, Cep), lambda i: (0, 0))],
        out_specs=[pl.BlockSpec((TM, Cep), lambda i: (i, 0)),
                   pl.BlockSpec((1, 2, Cep), lambda i: (i, 0, 0))],
        out_shape=[jax.ShapeDtypeStruct((M, Cep), cd),
                   jax.ShapeDtypeStruct((G, 2, Cep), f32)],
        compiler_params=cparams,
    )(y2_flat, sc2, sh2, w3_p)
    sc3, sh3 = _scale_shift(st3, g3_p, b3_p, M)

    # ---- stage 4: BN3 + residual add + ReLU ----------------------------------
    out_flat = pl.pallas_call(
        finalize_kernel,
        grid=(G,),
        in_specs=[pl.BlockSpec((TM, Cep), lambda i: (i, 0)),
                  pl.BlockSpec((TM, Cinp), lambda i: (i, 0)),
                  pl.BlockSpec((1, Cep), lambda i: (0, 0)),
                  pl.BlockSpec((1, Cep), lambda i: (0, 0))],
        out_specs=pl.BlockSpec((TM, Cep), lambda i: (i, 0)),
        out_shape=jax.ShapeDtypeStruct((M, Cep), f32),
        compiler_params=cparams,
    )(y3, x_p, sc3, sh3)

    out = out_flat.reshape(N, H, W, Cep)[:, :, :, :Ce]
    return jnp.transpose(out, (0, 3, 1, 2)).astype(x_nchw.dtype)


# --------------------------------------------------------------------------- #
# Pure-JAX reference (training-mode BN, batch stats, eps=1e-5)
# --------------------------------------------------------------------------- #
def _ref_bn(x, g, b, relu):
    mean = jnp.mean(x, axis=(0, 2, 3), keepdims=True)
    var = jnp.mean(jnp.square(x - mean), axis=(0, 2, 3), keepdims=True)
    out = (x - mean) * jax.lax.rsqrt(var + _EPS) * g.reshape(1, -1, 1, 1) \
        + b.reshape(1, -1, 1, 1)
    return jnp.maximum(out, 0.0) if relu else out


def ref_resnet_block(x, w1, g1, b1, w2, g2, b2, w3, g3, b3):
    dn = ('NCHW', 'OIHW', 'NCHW')
    Cin, C = w1.shape
    Ce = w3.shape[1]
    w1_oihw = w1.T.reshape(C, Cin, 1, 1)
    w2_oihw = jnp.transpose(w2, (3, 2, 0, 1))      # (3,3,Ci,Co) -> (Co,Ci,3,3)
    w3_oihw = w3.T.reshape(Ce, C, 1, 1)

    identity = x
    y = jax.lax.conv_general_dilated(x, w1_oihw, (1, 1), 'VALID', dimension_numbers=dn)
    y = _ref_bn(y, g1.ravel(), b1.ravel(), relu=True)
    y = jax.lax.conv_general_dilated(y, w2_oihw, (1, 1), ((1, 1), (1, 1)),
                                     dimension_numbers=dn)
    y = _ref_bn(y, g2.ravel(), b2.ravel(), relu=True)
    y = jax.lax.conv_general_dilated(y, w3_oihw, (1, 1), 'VALID', dimension_numbers=dn)
    y = _ref_bn(y, g3.ravel(), b3.ravel(), relu=False)
    return jnp.maximum(y + identity, 0.0)


# --------------------------------------------------------------------------- #
if __name__ == "__main__":
    # Small shapes consistent with the module: in_channels = out_channels * 4
    # so the identity skip connection is shape-valid without a downsample.
    N, H, W = 2, 16, 16
    out_channels = 8
    expansion = 4
    in_channels = out_channels * expansion          # 32
    Ce = out_channels * expansion                   # 32

    key = jax.random.PRNGKey(0)
    ks = jax.random.split(key, 10)

    x = jax.random.normal(ks[0], (N, in_channels, H, W), jnp.float32)
    w1 = 0.1 * jax.random.normal(ks[1], (in_channels, out_channels), jnp.float32)
    w2 = 0.1 * jax.random.normal(ks[2], (3, 3, out_channels, out_channels), jnp.float32)
    w3 = 0.1 * jax.random.normal(ks[3], (out_channels, Ce), jnp.float32)
    g1 = 1.0 + 0.1 * jax.random.normal(ks[4], (1, out_channels), jnp.float32)
    b1 = 0.1 * jax.random.normal(ks[5], (1, out_channels), jnp.float32)
    g2 = 1.0 + 0.1 * jax.random.normal(ks[6], (1, out_channels), jnp.float32)
    b2 = 0.1 * jax.random.normal(ks[7], (1, out_channels), jnp.float32)
    g3 = 1.0 + 0.1 * jax.random.normal(ks[8], (1, Ce), jnp.float32)
    b3 = 0.1 * jax.random.normal(ks[9], (1, Ce), jnp.float32)

    args = (x, w1, g1, b1, w2, g2, b2, w3, g3, b3)

    ref = jax.block_until_ready(ref_resnet_block(*args))

    # f32 compute path: tight check of the tiled structure + two-pass BN math.
    out_f32 = jax.block_until_ready(
        resnet_block(*args, block_rows=128, compute_dtype=jnp.float32))
    assert out_f32.shape == (N, Ce, H, W), out_f32.shape
    assert bool(jnp.all(jnp.isfinite(out_f32)))
    assert bool(jnp.allclose(out_f32, ref, atol=1e-3, rtol=1e-3)), \
        float(jnp.max(jnp.abs(out_f32 - ref)))

    # bf16 compute path (production configuration): relaxed tolerance.
    out_bf16 = jax.block_until_ready(
        resnet_block(*args, block_rows=128, compute_dtype=jnp.bfloat16))
    assert out_bf16.shape == (N, Ce, H, W), out_bf16.shape
    assert bool(jnp.all(jnp.isfinite(out_bf16)))
    assert bool(jnp.allclose(out_bf16, ref, atol=5e-2, rtol=5e-2)), \
        float(jnp.max(jnp.abs(out_bf16 - ref)))

    print("KERNEL_OK")
</pallas_src>

<mosaic_0001>
module attributes {stable_mosaic.version = 11 : i64} {
  func.func @conv1_kernel(%arg0: i32, %arg1: memref<128x128xf32, #tpu.memory_space<vmem>>, %arg2: memref<128x128xf32, #tpu.memory_space<vmem>>, %arg3: memref<128x128xf32, #tpu.memory_space<vmem>>, %arg4: memref<1x2x128xf32, #tpu.memory_space<vmem>>) attributes {dimension_semantics = [#tpu.dimension_semantics<parallel>], iteration_bounds = array<i64: 4>, scalar_prefetch = 0 : i64, scratch_operands = 0 : i64, tpu.core_type = #tpu.core_type<tc>, window_params = [{transform_indices = @transform_0, window_bounds = array<i64: 128, 128>}, {pipeline_mode = #tpu.pipeline_mode<synchronous>, transform_indices = @transform_1, window_bounds = array<i64: 128, 128>}, {transform_indices = @transform_2, window_bounds = array<i64: 128, 128>}, {transform_indices = @transform_3, window_bounds = array<i64: 1, 2, 128>}]} {
    %c0 = arith.constant 0 : index
    %c0_0 = arith.constant 0 : index
    %0 = vector.load %arg1[%c0, %c0_0] : memref<128x128xf32, #tpu.memory_space<vmem>>, vector<128x128xf32>
    %c0_1 = arith.constant 0 : index
    %c0_2 = arith.constant 0 : index
    %1 = vector.load %arg2[%c0_1, %c0_2] : memref<128x128xf32, #tpu.memory_space<vmem>>, vector<128x128xf32>
    %cst = arith.constant dense<0.000000e+00> : vector<128x128xf32>
    %2 = tpu.matmul %0, %1, %cst {dimension_numbers = #tpu.dot_dimension_numbers<[1], [0], [0], [1], [0, 0, 1, 1], [], []>} : vector<128x128xf32>, vector<128x128xf32>, vector<128x128xf32> -> vector<128x128xf32>
    %c0_3 = arith.constant 0 : index
    %c0_4 = arith.constant 0 : index
    %3 = vector.load %arg3[%c0_3, %c0_4] : memref<128x128xf32, #tpu.memory_space<vmem>>, vector<128x128xf32>
    tpu.vector_store %arg3[%c0_3, %c0_4], %2 {strides = array<i32>} : memref<128x128xf32, #tpu.memory_space<vmem>>, vector<128x128xf32>,
    %cst_5 = arith.constant dense<0.000000e+00> : vector<128xf32>
    %4 = vector.multi_reduction <add>, %2, %cst_5 [0] : vector<128x128xf32> to vector<128xf32>
    %5 = vector.shape_cast %4 : vector<128xf32> to vector<1x128xf32>
    %6 = arith.mulf %2, %2 : vector<128x128xf32>
    %cst_6 = arith.constant dense<0.000000e+00> : vector<128xf32>
    %7 = vector.multi_reduction <add>, %6, %cst_6 [0] : vector<128x128xf32> to vector<128xf32>
    %8 = vector.shape_cast %7 : vector<128xf32> to vector<1x128xf32>
    %9 = tpu.concatenate %5, %8 in 0 : vector<1x128xf32>, vector<1x128xf32> -> vector<2x128xf32>
    %10 = vector.shape_cast %9 : vector<2x128xf32> to vector<1x2x128xf32>
    %c0_7 = arith.constant 0 : index
    %c0_8 = arith.constant 0 : index
    %c0_9 = arith.constant 0 : index
    %11 = vector.load %arg4[%c0_7, %c0_8, %c0_9] : memref<1x2x128xf32, #tpu.memory_space<vmem>>, vector<1x2x128xf32>
    tpu.vector_store %arg4[%c0_7, %c0_8, %c0_9], %10 {strides = array<i32>} : memref<1x2x128xf32, #tpu.memory_space<vmem>>, vector<1x2x128xf32>,
    return
  }
  func.func @transform_0(%arg0: i32) -> (i32, i32) {
    %c0_i32 = arith.constant 0 : i32
    %c0_i32_0 = arith.constant 0 : i32
    return %arg0, %c0_i32 : i32, i32
  }
  func.func @transform_1(%arg0: i32) -> (i32, i32) {
    %c0_i32 = arith.constant 0 : i32
    %c0_i32_0 = arith.constant 0 : i32
    %c0_i32_1 = arith.constant 0 : i32
    return %c0_i32, %c0_i32_0 : i32, i32
  }
  func.func @transform_2(%arg0: i32) -> (i32, i32) {
    %c0_i32 = arith.constant 0 : i32
    %c0_i32_0 = arith.constant 0 : i32
    return %arg0, %c0_i32 : i32, i32
  }
  func.func @transform_3(%arg0: i32) -> (i32, i32, i32) {
    %c0_i32 = arith.constant 0 : i32
    %c0_i32_0 = arith.constant 0 : i32
    %c0_i32_1 = arith.constant 0 : i32
    return %arg0, %c0_i32, %c0_i32_0 : i32, i32, i32
  }
}

module attributes {stable_mosaic.version = 11 : i64} {
  func.func @conv2_kernel(%arg0: i32, %arg1: memref<1x16x16x128xf32, #tpu.memory_space<vmem>>, %arg2: memref<1x128xf32, #tpu.memory_space<vmem>>, %arg3: memref<1x128xf32, #tpu.memory_space<vmem>>, %arg4: memref<1152x128xf32, #tpu.memory_space<vmem>>, %arg5: memref<1x16x16x128xf32, #tpu.memory_space<vmem>>, %arg6: memref<1x2x128xf32, #tpu.memory_space<vmem>>, %arg7: memref<18x18x128xf32, #tpu.memory_space<vmem>>) attributes {dimension_semantics = [#tpu.dimension_semantics<parallel>], iteration_bounds = array<i64: 2>, scalar_prefetch = 0 : i64, scratch_operands = 1 : i64, tpu.core_type = #tpu.core_type<tc>, window_params = [{transform_indices = @transform_0, window_bounds = array<i64: 1, 16, 16, 128>}, {pipeline_mode = #tpu.pipeline_mode<synchronous>, transform_indices = @transform_1, window_bounds = array<i64: 1, 128>}, {pipeline_mode = #tpu.pipeline_mode<synchronous>, transform_indices = @transform_2, window_bounds = array<i64: 1, 128>}, {pipeline_mode = #tpu.pipeline_mode<synchronous>, transform_indices = @transform_3, window_bounds = array<i64: 1152, 128>}, {transform_indices = @transform_4, window_bounds = array<i64: 1, 16, 16, 128>}, {transform_indices = @transform_5, window_bounds = array<i64: 1, 2, 128>}]} {
    %c0 = arith.constant 0 : index
    %c0_0 = arith.constant 0 : index
    %c0_1 = arith.constant 0 : index
    %c0_2 = arith.constant 0 : index
    %0 = vector.load %arg1[%c0, %c0_0, %c0_1, %c0_2] : memref<1x16x16x128xf32, #tpu.memory_space<vmem>>, vector<1x16x16x128xf32>
    %1 = vector.shape_cast %0 : vector<1x16x16x128xf32> to vector<16x16x128xf32>
    %c0_3 = arith.constant 0 : index
    %c0_4 = arith.constant 0 : index
    %2 = vector.load %arg2[%c0_3, %c0_4] : memref<1x128xf32, #tpu.memory_space<vmem>>, vector<1x128xf32>
    %3 = vector.shape_cast %2 : vector<1x128xf32> to vector<1x1x128xf32>
    %4 = vector.broadcast %3 : vector<1x1x128xf32> to vector<16x16x128xf32>
    %5 = arith.mulf %1, %4 : vector<16x16x128xf32>
    %c0_5 = arith.constant 0 : index
    %c0_6 = arith.constant 0 : index
    %6 = vector.load %arg3[%c0_5, %c0_6] : memref<1x128xf32, #tpu.memory_space<vmem>>, vector<1x128xf32>
    %7 = vector.shape_cast %6 : vector<1x128xf32> to vector<1x1x128xf32>
    %8 = vector.broadcast %7 : vector<1x1x128xf32> to vector<16x16x128xf32>
    %9 = arith.addf %5, %8 : vector<16x16x128xf32>
    %cst = arith.constant 0.000000e+00 : f32
    %10 = vector.broadcast %cst : f32 to vector<16x16x128xf32>
    %11 = arith.maximumf %9, %10 : vector<16x16x128xf32>
    %cst_7 = arith.constant 0.000000e+00 : f32
    %12 = vector.broadcast %cst_7 : f32 to vector<18x18x128xf32>
    %c0_8 = arith.constant 0 : index
    %c0_9 = arith.constant 0 : index
    %c0_10 = arith.constant 0 : index
    %13 = vector.load %arg7[%c0_8, %c0_9, %c0_10] : memref<18x18x128xf32, #tpu.memory_space<vmem>>, vector<18x18x128xf32>
    tpu.vector_store %arg7[%c0_8, %c0_9, %c0_10], %12 {strides = array<i32>} : memref<18x18x128xf32, #tpu.memory_space<vmem>>, vector<18x18x128xf32>,
    %c1 = arith.constant 1 : index
    %c1_11 = arith.constant 1 : index
    %c0_12 = arith.constant 0 : index
    %14 = vector.load %arg7[%c1, %c1_11, %c0_12] : memref<18x18x128xf32, #tpu.memory_space<vmem>>, vector<16x16x128xf32>
    tpu.vector_store %arg7[%c1, %c1_11, %c0_12], %11 {strides = array<i32>} : memref<18x18x128xf32, #tpu.memory_space<vmem>>, vector<16x16x128xf32>,
    %c0_13 = arith.constant 0 : index
    %c0_14 = arith.constant 0 : index
    %c0_15 = arith.constant 0 : index
    %15 = vector.load %arg7[%c0_13, %c0_14, %c0_15] : memref<18x18x128xf32, #tpu.memory_space<vmem>>, vector<16x16x128xf32>
    %16 = vector.shape_cast %15 : vector<16x16x128xf32> to vector<256x128xf32>
    %c0_16 = arith.constant 0 : index
    %c1_17 = arith.constant 1 : index
    %c0_18 = arith.constant 0 : index
    %17 = vector.load %arg7[%c0_16, %c1_17, %c0_18] : memref<18x18x128xf32, #tpu.memory_space<vmem>>, vector<16x16x128xf32>
    %18 = vector.shape_cast %17 : vector<16x16x128xf32> to vector<256x128xf32>
    %c0_19 = arith.constant 0 : index
    %c2 = arith.constant 2 : index
    %c0_20 = arith.constant 0 : index
    %19 = vector.load %arg7[%c0_19, %c2, %c0_20] : memref<18x18x128xf32, #tpu.memory_space<vmem>>, vector<16x16x128xf32>
    %20 = vector.shape_cast %19 : vector<16x16x128xf32> to vector<256x128xf32>
    %c1_21 = arith.constant 1 : index
    %c0_22 = arith.constant 0 : index
    %c0_23 = arith.constant 0 : index
    %21 = vector.load %arg7[%c1_21, %c0_22, %c0_23] : memref<18x18x128xf32, #tpu.memory_space<vmem>>, vector<16x16x128xf32>
    %22 = vector.shape_cast %21 : vector<16x16x128xf32> to vector<256x128xf32>
    %c1_24 = arith.constant 1 : index
    %c1_25 = arith.constant 1 : index
    %c0_26 = arith.constant 0 : index
    %23 = vector.load %arg7[%c1_24, %c1_25, %c0_26] : memref<18x18x128xf32, #tpu.memory_space<vmem>>, vector<16x16x128xf32>
    %24 = vector.shape_cast %23 : vector<16x16x128xf32> to vector<256x128xf32>
    %c1_27 = arith.constant 1 : index
    %c2_28 = arith.constant 2 : index
    %c0_29 = arith.constant 0 : index
    %25 = vector.load %arg7[%c1_27, %c2_28, %c0_29] : memref<18x18x128xf32, #tpu.memory_space<vmem>>, vector<16x16x128xf32>
    %26 = vector.shape_cast %25 : vector<16x16x128xf32> to vector<256x128xf32>
    %c2_30 = arith.constant 2 : index
    %c0_31 = arith.constant 0 : index
    %c0_32 = arith.constant 0 : index
    %27 = vector.load %arg7[%c2_30, %c0_31, %c0_32] : memref<18x18x128xf32, #tpu.memory_space<vmem>>, vector<16x16x128xf32>
    %28 = vector.shape_cast %27 : vector<16x16x128xf32> to vector<256x128xf32>
    %c2_33 = arith.constant 2 : index
    %c1_34 = arith.constant 1 : index
    %c0_35 = arith.constant 0 : index
    %29 = vector.load %arg7[%c2_33, %c1_34, %c0_35] : memref<18x18x128xf32, #tpu.memory_space<vmem>>, vector<16x16x128xf32>
    %30 = vector.shape_cast %29 : vector<16x16x128xf32> to vector<256x128xf32>
    %c2_36 = arith.constant 2 : index
    %c2_37 = arith.constant 2 : index
    %c0_38 = arith.constant 0 : index
    %31 = vector.load %arg7[%c2_36, %c2_37, %c0_38] : memref<18x18x128xf32, #tpu.memory_space<vmem>>, vector<16x16x128xf32>
    %32 = vector.shape_cast %31 : vector<16x16x128xf32> to vector<256x128xf32>
    %33 = tpu.concatenate %16, %18, %20, %22, %24, %26, %28, %30, %32 in 1 : vector<256x128xf32>, vector<256x128xf32>, vector<256x128xf32>, vector<256x128xf32>, vector<256x128xf32>, vector<256x128xf32>, vector<256x128xf32>, vector<256x128xf32>, vector<256x128xf32> -> vector<256x1152xf32>
    %c0_39 = arith.constant 0 : index
    %c0_40 = arith.constant 0 : index
    %34 = vector.load %arg4[%c0_39, %c0_40] : memref<1152x128xf32, #tpu.memory_space<vmem>>, vector<1152x128xf32>
    %cst_41 = arith.constant dense<0.000000e+00> : vector<256x128xf32>
    %35 = tpu.matmul %33, %34, %cst_41 {dimension_numbers = #tpu.dot_dimension_numbers<[1], [0], [0], [1], [0, 0, 1, 1], [], []>} : vector<256x1152xf32>, vector<1152x128xf32>, vector<256x128xf32> -> vector<256x128xf32>
    %36 = vector.shape_cast %35 : vector<256x128xf32> to vector<1x16x16x128xf32>
    %c0_42 = arith.constant 0 : index
    %c0_43 = arith.constant 0 : index
    %c0_44 = arith.constant 0 : index
    %c0_45 = arith.constant 0 : index
    %37 = vector.load %arg5[%c0_42, %c0_43, %c0_44, %c0_45] : memref<1x16x16x128xf32, #tpu.memory_space<vmem>>, vector<1x16x16x128xf32>
    tpu.vector_store %arg5[%c0_42, %c0_43, %c0_44, %c0_45], %36 {strides = array<i32>} : memref<1x16x16x128xf32, #tpu.memory_space<vmem>>, vector<1x16x16x128xf32>,
    %cst_46 = arith.constant dense<0.000000e+00> : vector<128xf32>
    %38 = vector.multi_reduction <add>, %35, %cst_46 [0] : vector<256x128xf32> to vector<128xf32>
    %39 = vector.shape_cast %38 : vector<128xf32> to vector<1x128xf32>
    %40 = arith.mulf %35, %35 : vector<256x128xf32>
    %cst_47 = arith.constant dense<0.000000e+00> : vector<128xf32>
    %41 = vector.multi_reduction <add>, %40, %cst_47 [0] : vector<256x128xf32> to vector<128xf32>
    %42 = vector.shape_cast %41 : vector<128xf32> to vector<1x128xf32>
    %43 = tpu.concatenate %39, %42 in 0 : vector<1x128xf32>, vector<1x128xf32> -> vector<2x128xf32>
    %44 = vector.shape_cast %43 : vector<2x128xf32> to vector<1x2x128xf32>
    %c0_48 = arith.constant 0 : index
    %c0_49 = arith.constant 0 : index
    %c0_50 = arith.constant 0 : index
    %45 = vector.load %arg6[%c0_48, %c0_49, %c0_50] : memref<1x2x128xf32, #tpu.memory_space<vmem>>, vector<1x2x128xf32>
    tpu.vector_store %arg6[%c0_48, %c0_49, %c0_50], %44 {strides = array<i32>} : memref<1x2x128xf32, #tpu.memory_space<vmem>>, vector<1x2x128xf32>,
    return
  }
  func.func @transform_0(%arg0: i32) -> (i32, i32, i32, i32) {
    %c0_i32 = arith.constant 0 : i32
    %c0_i32_0 = arith.constant 0 : i32
    %c0_i32_1 = arith.constant 0 : i32
    %c0_i32_2 = arith.constant 0 : i32
    return %arg0, %c0_i32, %c0_i32_0, %c0_i32_1 : i32, i32, i32, i32
  }
  func.func @transform_1(%arg0: i32) -> (i32, i32) {
    %c0_i32 = arith.constant 0 : i32
    %c0_i32_0 = arith.constant 0 : i32
    %c0_i32_1 = arith.constant 0 : i32
    return %c0_i32, %c0_i32_0 : i32, i32
  }
  func.func @transform_2(%arg0: i32) -> (i32, i32) {
    %c0_i32 = arith.constant 0 : i32
    %c0_i32_0 = arith.constant 0 : i32
    %c0_i32_1 = arith.constant 0 : i32
    return %c0_i32, %c0_i32_0 : i32, i32
  }
  func.func @transform_3(%arg0: i32) -> (i32, i32) {
    %c0_i32 = arith.constant 0 : i32
    %c0_i32_0 = arith.constant 0 : i32
    %c0_i32_1 = arith.constant 0 : i32
    return %c0_i32, %c0_i32_0 : i32, i32
  }
  func.func @transform_4(%arg0: i32) -> (i32, i32, i32, i32) {
    %c0_i32 = arith.constant 0 : i32
    %c0_i32_0 = arith.constant 0 : i32
    %c0_i32_1 = arith.constant 0 : i32
    %c0_i32_2 = arith.constant 0 : i32
    return %arg0, %c0_i32, %c0_i32_0, %c0_i32_1 : i32, i32, i32, i32
  }
  func.func @transform_5(%arg0: i32) -> (i32, i32, i32) {
    %c0_i32 = arith.constant 0 : i32
    %c0_i32_0 = arith.constant 0 : i32
    %c0_i32_1 = arith.constant 0 : i32
    return %arg0, %c0_i32, %c0_i32_0 : i32, i32, i32
  }
}

module attributes {stable_mosaic.version = 11 : i64} {
  func.func @conv3_kernel(%arg0: i32, %arg1: memref<128x128xf32, #tpu.memory_space<vmem>>, %arg2: memref<1x128xf32, #tpu.memory_space<vmem>>, %arg3: memref<1x128xf32, #tpu.memory_space<vmem>>, %arg4: memref<128x128xf32, #tpu.memory_space<vmem>>, %arg5: memref<128x128xf32, #tpu.memory_space<vmem>>, %arg6: memref<1x2x128xf32, #tpu.memory_space<vmem>>) attributes {dimension_semantics = [#tpu.dimension_semantics<parallel>], iteration_bounds = array<i64: 4>, scalar_prefetch = 0 : i64, scratch_operands = 0 : i64, tpu.core_type = #tpu.core_type<tc>, window_params = [{transform_indices = @transform_0, window_bounds = array<i64: 128, 128>}, {pipeline_mode = #tpu.pipeline_mode<synchronous>, transform_indices = @transform_1, window_bounds = array<i64: 1, 128>}, {pipeline_mode = #tpu.pipeline_mode<synchronous>, transform_indices = @transform_2, window_bounds = array<i64: 1, 128>}, {pipeline_mode = #tpu.pipeline_mode<synchronous>, transform_indices = @transform_3, window_bounds = array<i64: 128, 128>}, {transform_indices = @transform_4, window_bounds = array<i64: 128, 128>}, {transform_indices = @transform_5, window_bounds = array<i64: 1, 2, 128>}]} {
    %c0 = arith.constant 0 : index
    %c0_0 = arith.constant 0 : index
    %0 = vector.load %arg1[%c0, %c0_0] : memref<128x128xf32, #tpu.memory_space<vmem>>, vector<128x128xf32>
    %c0_1 = arith.constant 0 : index
    %c0_2 = arith.constant 0 : index
    %1 = vector.load %arg2[%c0_1, %c0_2] : memref<1x128xf32, #tpu.memory_space<vmem>>, vector<1x128xf32>
    %2 = vector.broadcast %1 : vector<1x128xf32> to vector<128x128xf32>
    %3 = arith.mulf %0, %2 : vector<128x128xf32>
    %c0_3 = arith.constant 0 : index
    %c0_4 = arith.constant 0 : index
    %4 = vector.load %arg3[%c0_3, %c0_4] : memref<1x128xf32, #tpu.memory_space<vmem>>, vector<1x128xf32>
    %5 = vector.broadcast %4 : vector<1x128xf32> to vector<128x128xf32>
    %6 = arith.addf %3, %5 : vector<128x128xf32>
    %cst = arith.constant 0.000000e+00 : f32
    %7 = vector.broadcast %cst : f32 to vector<128x128xf32>
    %8 = arith.maximumf %6, %7 : vector<128x128xf32>
    %c0_5 = arith.constant 0 : index
    %c0_6 = arith.constant 0 : index
    %9 = vector.load %arg4[%c0_5, %c0_6] : memref<128x128xf32, #tpu.memory_space<vmem>>, vector<128x128xf32>
    %cst_7 = arith.constant dense<0.000000e+00> : vector<128x128xf32>
    %10 = tpu.matmul %8, %9, %cst_7 {dimension_numbers = #tpu.dot_dimension_numbers<[1], [0], [0], [1], [0, 0, 1, 1], [], []>} : vector<128x128xf32>, vector<128x128xf32>, vector<128x128xf32> -> vector<128x128xf32>
    %c0_8 = arith.constant 0 : index
    %c0_9 = arith.constant 0 : index
    %11 = vector.load %arg5[%c0_8, %c0_9] : memref<128x128xf32, #tpu.memory_space<vmem>>, vector<128x128xf32>
    tpu.vector_store %arg5[%c0_8, %c0_9], %10 {strides = array<i32>} : memref<128x128xf32, #tpu.memory_space<vmem>>, vector<128x128xf32>,
    %cst_10 = arith.constant dense<0.000000e+00> : vector<128xf32>
    %12 = vector.multi_reduction <add>, %10, %cst_10 [0] : vector<128x128xf32> to vector<128xf32>
    %13 = vector.shape_cast %12 : vector<128xf32> to vector<1x128xf32>
    %14 = arith.mulf %10, %10 : vector<128x128xf32>
    %cst_11 = arith.constant dense<0.000000e+00> : vector<128xf32>
    %15 = vector.multi_reduction <add>, %14, %cst_11 [0] : vector<128x128xf32> to vector<128xf32>
    %16 = vector.shape_cast %15 : vector<128xf32> to vector<1x128xf32>
    %17 = tpu.concatenate %13, %16 in 0 : vector<1x128xf32>, vector<1x128xf32> -> vector<2x128xf32>
    %18 = vector.shape_cast %17 : vector<2x128xf32> to vector<1x2x128xf32>
    %c0_12 = arith.constant 0 : index
    %c0_13 = arith.constant 0 : index
    %c0_14 = arith.constant 0 : index
    %19 = vector.load %arg6[%c0_12, %c0_13, %c0_14] : memref<1x2x128xf32, #tpu.memory_space<vmem>>, vector<1x2x128xf32>
    tpu.vector_store %arg6[%c0_12, %c0_13, %c0_14], %18 {strides = array<i32>} : memref<1x2x128xf32, #tpu.memory_space<vmem>>, vector<1x2x128xf32>,
    return
  }
  func.func @transform_0(%arg0: i32) -> (i32, i32) {
    %c0_i32 = arith.constant 0 : i32
    %c0_i32_0 = arith.constant 0 : i32
    return %arg0, %c0_i32 : i32, i32
  }
  func.func @transform_1(%arg0: i32) -> (i32, i32) {
    %c0_i32 = arith.constant 0 : i32
    %c0_i32_0 = arith.constant 0 : i32
    %c0_i32_1 = arith.constant 0 : i32
    return %c0_i32, %c0_i32_0 : i32, i32
  }
  func.func @transform_2(%arg0: i32) -> (i32, i32) {
    %c0_i32 = arith.constant 0 : i32
    %c0_i32_0 = arith.constant 0 : i32
    %c0_i32_1 = arith.constant 0 : i32
    return %c0_i32, %c0_i32_0 : i32, i32
  }
  func.func @transform_3(%arg0: i32) -> (i32, i32) {
    %c0_i32 = arith.constant 0 : i32
    %c0_i32_0 = arith.constant 0 : i32
    %c0_i32_1 = arith.constant 0 : i32
    return %c0_i32, %c0_i32_0 : i32, i32
  }
  func.func @transform_4(%arg0: i32) -> (i32, i32) {
    %c0_i32 = arith.constant 0 : i32
    %c0_i32_0 = arith.constant 0 : i32
    return %arg0, %c0_i32 : i32, i32
  }
  func.func @transform_5(%arg0: i32) -> (i32, i32, i32) {
    %c0_i32 = arith.constant 0 : i32
    %c0_i32_0 = arith.constant 0 : i32
    %c0_i32_1 = arith.constant 0 : i32
    return %arg0, %c0_i32, %c0_i32_0 : i32, i32, i32
  }
}

module attributes {stable_mosaic.version = 11 : i64} {
  func.func @finalize_kernel(%arg0: i32, %arg1: memref<128x128xf32, #tpu.memory_space<vmem>>, %arg2: memref<128x128xf32, #tpu.memory_space<vmem>>, %arg3: memref<1x128xf32, #tpu.memory_space<vmem>>, %arg4: memref<1x128xf32, #tpu.memory_space<vmem>>, %arg5: memref<128x128xf32, #tpu.memory_space<vmem>>) attributes {dimension_semantics = [#tpu.dimension_semantics<parallel>], iteration_bounds = array<i64: 4>, scalar_prefetch = 0 : i64, scratch_operands = 0 : i64, tpu.core_type = #tpu.core_type<tc>, window_params = [{transform_indices = @transform_0, window_bounds = array<i64: 128, 128>}, {transform_indices = @transform_1, window_bounds = array<i64: 128, 128>}, {pipeline_mode = #tpu.pipeline_mode<synchronous>, transform_indices = @transform_2, window_bounds = array<i64: 1, 128>}, {pipeline_mode = #tpu.pipeline_mode<synchronous>, transform_indices = @transform_3, window_bounds = array<i64: 1, 128>}, {transform_indices = @transform_4, window_bounds = array<i64: 128, 128>}]} {
    %c0 = arith.constant 0 : index
    %c0_0 = arith.constant 0 : index
    %0 = vector.load %arg1[%c0, %c0_0] : memref<128x128xf32, #tpu.memory_space<vmem>>, vector<128x128xf32>
    %c0_1 = arith.constant 0 : index
    %c0_2 = arith.constant 0 : index
    %1 = vector.load %arg3[%c0_1, %c0_2] : memref<1x128xf32, #tpu.memory_space<vmem>>, vector<1x128xf32>
    %2 = vector.broadcast %1 : vector<1x128xf32> to vector<128x128xf32>
    %3 = arith.mulf %0, %2 : vector<128x128xf32>
    %c0_3 = arith.constant 0 : index
    %c0_4 = arith.constant 0 : index
    %4 = vector.load %arg4[%c0_3, %c0_4] : memref<1x128xf32, #tpu.memory_space<vmem>>, vector<1x128xf32>
    %5 = vector.broadcast %4 : vector<1x128xf32> to vector<128x128xf32>
    %6 = arith.addf %3, %5 : vector<128x128xf32>
    %c0_5 = arith.constant 0 : index
    %c0_6 = arith.constant 0 : index
    %7 = vector.load %arg2[%c0_5, %c0_6] : memref<128x128xf32, #tpu.memory_space<vmem>>, vector<128x128xf32>
    %8 = arith.addf %6, %7 : vector<128x128xf32>
    %cst = arith.constant 0.000000e+00 : f32
    %9 = vector.broadcast %cst : f32 to vector<128x128xf32>
    %10 = arith.maximumf %8, %9 : vector<128x128xf32>
    %c0_7 = arith.constant 0 : index
    %c0_8 = arith.constant 0 : index
    %11 = vector.load %arg5[%c0_7, %c0_8] : memref<128x128xf32, #tpu.memory_space<vmem>>, vector<128x128xf32>
    tpu.vector_store %arg5[%c0_7, %c0_8], %10 {strides = array<i32>} : memref<128x128xf32, #tpu.memory_space<vmem>>, vector<128x128xf32>,
    return
  }
  func.func @transform_0(%arg0: i32) -> (i32, i32) {
    %c0_i32 = arith.constant 0 : i32
    %c0_i32_0 = arith.constant 0 : i32
    return %arg0, %c0_i32 : i32, i32
  }
  func.func @transform_1(%arg0: i32) -> (i32, i32) {
    %c0_i32 = arith.constant 0 : i32
    %c0_i32_0 = arith.constant 0 : i32
    return %arg0, %c0_i32 : i32, i32
  }
  func.func @transform_2(%arg0: i32) -> (i32, i32) {
    %c0_i32 = arith.constant 0 : i32
    %c0_i32_0 = arith.constant 0 : i32
    %c0_i32_1 = arith.constant 0 : i32
    return %c0_i32, %c0_i32_0 : i32, i32
  }
  func.func @transform_3(%arg0: i32) -> (i32, i32) {
    %c0_i32 = arith.constant 0 : i32
    %c0_i32_0 = arith.constant 0 : i32
    %c0_i32_1 = arith.constant 0 : i32
    return %c0_i32, %c0_i32_0 : i32, i32
  }
  func.func @transform_4(%arg0: i32) -> (i32, i32) {
    %c0_i32 = arith.constant 0 : i32
    %c0_i32_0 = arith.constant 0 : i32
    return %arg0, %c0_i32 : i32, i32
  }
}

</mosaic_0001>

<bundles_post_ra>
// kernel: resnet_block.4
= control target key start
LH: loop header
LB: loop body
LE: loop exit
PB: predicated region body
PF: predicated region fallthrough
CT: control target
= control target key end

     0   :  { %s710_s12 = smov 0   ;;  %s826_s0 = inlined_call_operand.vmem [shape: f32[512,128], index: 0, kind: input, shape index: {}]   ;;  %s827_s1 = inlined_call_operand.vmem [shape: f32[128,128], index: 1, kind: input, shape index: {}]   ;;  %s828_s2 = inlined_call_operand.vmem [shape: f32[512,128], index: 2, kind: output, shape index: {0}]   ;;  %s829_s3 = inlined_call_operand.vmem [shape: f32[4,2,128], index: 3, kind: output, shape index: {1}]  }
   0x1 LB: > { %s716_s13 = sadd.s32 4294967295, %s688_s12   ;;  %p530_p0 = scmp.ge.s32.totalorder %s688_s12, 1  ;;  %s688_s12 = sphi %s710_s12, %s14_s12  }
   0x2   : > { %p141_p1 = scmp.lt.s32.totalorder %s688_s12, 5 }
   0x4   : > { %p142_p2 = pnand %p530_p0, %p141_p1 }
   0x5   : > { %v201_v0 = vld [vmem:[%s827_s1] sm:$0xff] (!%p142_p2)  ;;  %v202_v1 = vld [vmem:[%s827_s1 + $0x8] sm:$0xff] (!%p142_p2)  ;;  %v203_v2 = vld [vmem:[%s827_s1 + $0x10] sm:$0xff] (!%p142_p2)  ;;  %s531_s20 = sshll.u32 (!%p142_p2), %s716_s13, 4  ;;  %p181_p4 = scmp.lt.s32.totalorder (!%p142_p2), %s716_s13, 3  ;;  %vm436_vm0 = vcmask (!%p142_p2), 1040384  }
   0x6   : > { %145 = sbr.rel (%p142_p2) target bundleno = 301 (0x12d), region = 28  ;;  %v626_v3 = vpack.c.bf16 (!%p142_p2), %v202_v1, %v201_v0  ;;  %v204_v4 = vld [vmem:[%s827_s1 + $0x18] sm:$0xff] (!%p142_p2)  ;;  %p170_p3 = scmp.lt.s32.totalorder (!%p142_p2), %s531_s20, 63  ;;  %v205_v6 = vld [vmem:[%s827_s1 + $0x20] sm:$0xff] (!%p142_p2)  ;;  %v206_v7 = vld [vmem:[%s827_s1 + $0x28] sm:$0xff] (!%p142_p2) }
   0x7   : > { %v630_v5 = vpack.c.bf16 (!%p142_p2), %v204_v4, %v203_v2  ;;  %v634_v8 = vpack.c.bf16 (!%p142_p2), %v206_v7, %v205_v6  ;;  %v207_v9 = vld [vmem:[%s827_s1 + $0x30] sm:$0xff] (!%p142_p2)  ;;  %v208_v10 = vld [vmem:[%s827_s1 + $0x38] sm:$0xff] (!%p142_p2)  ;;  %v209_v14 = vld [vmem:[%s827_s1 + $0x40] sm:$0xff] (!%p142_p2) }
   0x8   : > { %627 = vmatprep.subr.bf16.mxu0 (!%p142_p2), %v626_v3  ;;  %658 = vmatprep.subr.bf16.mxu1 (!%p142_p2), %v626_v3  ;;  %v638_v12 = vpack.c.bf16 (!%p142_p2), %v208_v10, %v207_v9  ;;  %v210_v15 = vld [vmem:[%s827_s1 + $0x48] sm:$0xff] (!%p142_p2)  ;;  %v211_v17 = vld [vmem:[%s827_s1 + $0x50] sm:$0xff] (!%p142_p2)  ;;  %v212_v18 = vld [vmem:[%s827_s1 + $0x58] sm:$0xff] (!%p142_p2) }
   0x9   : > { %629 = vmatpush3.bf16.msra.mxu0 (!%p142_p2), %v626_v3  ;;  %666 = vmatpush3.bf16.msra.mxu1 (!%p142_p2), %v626_v3  ;;  %v642_v16 = vpack.c.bf16 (!%p142_p2), %v210_v15, %v209_v14  ;;  %v646_v19 = vpack.c.bf16 (!%p142_p2), %v212_v18, %v211_v17  ;;  %v213_v20 = vld [vmem:[%s827_s1 + $0x60] sm:$0xff] (!%p142_p2)  ;;  %v214_v21 = vld [vmem:[%s827_s1 + $0x68] sm:$0xff] (!%p142_p2)  ;;  %v215_v23 = vld [vmem:[%s827_s1 + $0x70] sm:$0xff] (!%p142_p2) }
   0xa   : > { %631 = vmatprep.subr.bf16.mxu0 (!%p142_p2), %v630_v5  ;;  %659 = vmatprep.subr.bf16.mxu1 (!%p142_p2), %v630_v5  ;;  %v650_v22 = vpack.c.bf16 (!%p142_p2), %v214_v21, %v213_v20  ;;  %v216_v24 = vld [vmem:[%s827_s1 + $0x78] sm:$0xff] (!%p142_p2) }
   0xb   : > { %v654_v25 = vpack.c.bf16 (!%p142_p2), %v216_v24, %v215_v23 }
   0xd   : > { %s831_s20 = smov (!%p170_p3, %s531_s20), 63  ;;  %633 = vmatpush3.bf16.msra.mxu0 %v630_v5  ;;  %667 = vmatpush3.bf16.msra.mxu1 %v630_v5  ;;  %s833_s13 = smov (!%p181_p4, %s716_s13), 3 }
   0xe   : > { %s532_s27 = sshll.u32 %s831_s20, 3  ;;  %635 = vmatprep.subr.bf16.mxu0 %v634_v8  ;;  %660 = vmatprep.subr.bf16.mxu1 %v634_v8  ;;  %s535_s20 = sshll.u32 %s833_s13, 1 }
   0xf   : > { %s753_s7 = scalar_lea.vmem %s826_s0, %s532_s27  ;;  %s800_s30 = scalar_lea.vmem %s828_s2, %s532_s27 }
  0x10   : > { %v185_v11 = vld [vmem:[%s753_s7] sm:$0xff]  ;;  %v186_v26 = vld [vmem:[%s753_s7 + $0x8] sm:$0xff]  ;;  %v187_v28 = vld [vmem:[%s753_s7 + $0x10] sm:$0xff]  ;;  %s184_s5 = scalar_lea.vmem %s829_s3, %s535_s20 }
  0x11   : > { %v193_v13 = vld [vmem:[%s753_s7 + $0x40] sm:$0xff]  ;;  %602 = vmatprep.mubr.f32.mxu0 %v185_v11  ;;  %637 = vmatpush3.bf16.msra.mxu0 %v634_v8  ;;  %v194_v27 = vld [vmem:[%s753_s7 + $0x48] sm:$0xff]  ;;  %v195_v29 = vld [vmem:[%s753_s7 + $0x50] sm:$0xff] }
  0x12   : > { %614 = vmatprep.mubr.f32.mxu1 %v193_v13  ;;  %668 = vmatpush3.bf16.msra.mxu1 %v634_v8  ;;  %v188_v30 = vld [vmem:[%s753_s7 + $0x18] sm:$0xff]  ;;  %v189_v32 = vld [vmem:[%s753_s7 + $0x20] sm:$0xff]  ;;  %v190_v34 = vld [vmem:[%s753_s7 + $0x28] sm:$0xff] }
  0x13   : > { %639 = vmatprep.subr.bf16.mxu0 %v638_v12  ;;  %661 = vmatprep.subr.bf16.mxu1 %v638_v12  ;;  %v196_v31 = vld [vmem:[%s753_s7 + $0x58] sm:$0xff]  ;;  %v197_v33 = vld [vmem:[%s753_s7 + $0x60] sm:$0xff]  ;;  %v198_v35 = vld [vmem:[%s753_s7 + $0x68] sm:$0xff] }
  0x14   : > { %v191_v36 = vld [vmem:[%s753_s7 + $0x30] sm:$0xff]  ;;  %v192_v38 = vld [vmem:[%s753_s7 + $0x38] sm:$0xff] }
  0x15   : > { %641 = vmatpush3.bf16.msra.mxu0 %v638_v12  ;;  %v199_v37 = vld [vmem:[%s753_s7 + $0x70] sm:$0xff]  ;;  %v200_v39 = vld [vmem:[%s753_s7 + $0x78] sm:$0xff] }
  0x16   : > { %669 = vmatpush3.bf16.msra.mxu1 %v638_v12  ;;  %643 = vmatprep.subr.bf16.mxu0 %v642_v16 }
  0x17   : > { %662 = vmatprep.subr.bf16.mxu1 %v642_v16 }
  0x19   : > { %645 = vmatpush3.bf16.msra.mxu0 %v642_v16 }
  0x1a   : > { %670 = vmatpush3.bf16.msra.mxu1 %v642_v16  ;;  %647 = vmatprep.subr.bf16.mxu0 %v646_v19 }
  0x1b   : > { %663 = vmatprep.subr.bf16.mxu1 %v646_v19 }
  0x1d   : > { %649 = vmatpush3.bf16.msra.mxu0 %v646_v19 }
  0x1e   : > { %671 = vmatpush3.bf16.msra.mxu1 %v646_v19  ;;  %651 = vmatprep.subr.bf16.mxu0 %v650_v22 }
  0x1f   : > { %664 = vmatprep.subr.bf16.mxu1 %v650_v22 }
  0x21   : > { %653 = vmatpush3.bf16.msra.mxu0 %v650_v22 }
  0x22   : > { %672 = vmatpush3.bf16.msra.mxu1 %v650_v22  ;;  %655 = vmatprep.subr.bf16.mxu0 %v654_v25 }
  0x23   : > { %665 = vmatprep.subr.bf16.mxu1 %v654_v25 }
  0x25   : > { %657 = vmatpush3.bf16.msra.mxu0 %v654_v25 }
  0x26   : > { %673 = vmatpush3.bf16.msra.mxu1 %v654_v25 }
  0x28   : > { %603 = vmatmul.mubr.f32.vlgmr.msra.gmra.mrb[0].mxu0 %v186_v26 }
  0x29   : > { %615 = vmatmul.mubr.f32.vlgmr.msra.gmra.mrb[0].mxu1 %v194_v27  ;;  %605 = vmatprep.mubr.f32.mxu0 %v187_v28 }
  0x2a   : > { %617 = vmatprep.mubr.f32.mxu1 %v195_v29 }
  0x2c   : > { %606 = vmatmul.mubr.f32.gmra.mrb[2].mxu0 %v188_v30 }
  0x2d   : > { %618 = vmatmul.mubr.f32.gmra.mrb[2].mxu1 %v196_v31  ;;  %608 = vmatprep.mubr.f32.mxu0 %v189_v32 }
  0x2e   : > { %620 = vmatprep.mubr.f32.mxu1 %v197_v33 }
  0x30   : > { %609 = vmatmul.mubr.f32.gmra.mrb[4].mxu0 %v190_v34 }
  0x31   : > { %621 = vmatmul.mubr.f32.gmra.mrb[4].mxu1 %v198_v35  ;;  %611 = vmatprep.mubr.f32.mxu0 %v191_v36 }
  0x32   : > { %623 = vmatprep.mubr.f32.mxu1 %v199_v37 }
  0x34   : > { %612 = vmatmul.mubr.f32.gmra.mrb[6].mxu0 %v192_v38 }
  0x35   : > { %624 = vmatmul.mubr.f32.gmra.mrb[6].mxu1 %v200_v39 }
  0xfb   : > { %v604_v40 = vpop.f32.mrb[0].mxu0 }
  0xfc   : > { %v616_v41 = vpop.f32.mrb[0].mxu1  ;;  %363 = vst [vmem:[%s800_s30 + $0x8] sm:$0xff] %v604_v40  ;;  %v400_v42 = vmul.f32 %v604_v40, %v604_v40  ;;  %v283_v43 = vpop.f32.mrb[1].mxu0 }
  0xfd   : > { %371 = vst [vmem:[%s800_s30 + $0x48] sm:$0xff] %v616_v41  ;;  %v323_v44 = vpop.f32.mrb[1].mxu1  ;;  %362 = vst [vmem:[%s800_s30] sm:$0xff] %v283_v43  ;;  %v378_v45 = vadd.f32 %v604_v40, %v283_v43  ;;  %v399_v46 = vmul.f32 %v283_v43, %v283_v43  ;;  %v408_v16 = vmul.f32 %v616_v41, %v616_v41 }
  0xfe   : > { %370 = vst [vmem:[%s800_s30 + $0x40] sm:$0xff] %v323_v44  ;;  %v407_v13 = vmul.f32 %v323_v44, %v323_v44 }
  0xff   : > { %v415_v47 = vadd.f32 %v400_v42, %v399_v46  ;;  %v607_v48 = vpop.f32.mrb[2].mxu0 }
 0x100   : > { %v619_v49 = vpop.f32.mrb[2].mxu1  ;;  %365 = vst [vmem:[%s800_s30 + $0x18] sm:$0xff] %v607_v48  ;;  %v293_v50 = vpop.f32.mrb[3].mxu0  ;;  %v402_v54 = vmul.f32 %v607_v48, %v607_v48 }
 0x101   : > { %373 = vst [vmem:[%s800_s30 + $0x58] sm:$0xff] %v619_v49  ;;  %v333_v51 = vpop.f32.mrb[3].mxu1  ;;  %364 = vst [vmem:[%s800_s30 + $0x10] sm:$0xff] %v293_v50  ;;  %v379_v52 = vadd.f32 %v378_v45, %v293_v50  ;;  %v401_v53 = vmul.f32 %v293_v50, %v293_v50  ;;  %v410_v22 = vmul.f32 %v619_v49, %v619_v49 }
 0x102   : > { %372 = vst [vmem:[%s800_s30 + $0x50] sm:$0xff] %v333_v51  ;;  %v409_v19 = vmul.f32 %v333_v51, %v333_v51 }
 0x103   : > { %v416_v55 = vadd.f32 %v415_v47, %v401_v53  ;;  %v610_v56 = vpop.f32.mrb[4].mxu0  ;;  %v380_v57 = vadd.f32 %v607_v48, %v379_v52 }
 0x104   : > { %v622_v58 = vpop.f32.mrb[4].mxu1  ;;  %367 = vst [vmem:[%s800_s30 + $0x28] sm:$0xff] %v610_v56  ;;  %v303_v59 = vpop.f32.mrb[5].mxu0  ;;  %v404_v0 = vmul.f32 %v610_v56, %v610_v56 }
 0x105   : > { %375 = vst [vmem:[%s800_s30 + $0x68] sm:$0xff] %v622_v58  ;;  %v343_v60 = vpop.f32.mrb[5].mxu1  ;;  %366 = vst [vmem:[%s800_s30 + $0x20] sm:$0xff] %v303_v59  ;;  %v381_v61 = vadd.f32 %v380_v57, %v303_v59  ;;  %v403_v62 = vmul.f32 %v303_v59, %v303_v59  ;;  %v417_v63 = vadd.f32 %v416_v55, %v402_v54 }
 0x106   : > { %374 = vst [vmem:[%s800_s30 + $0x60] sm:$0xff] %v343_v60  ;;  %v411_v25 = vmul.f32 %v343_v60, %v343_v60  ;;  %v412_v28 = vmul.f32 %v622_v58, %v622_v58 }
 0x107   : > { %v418_v1 = vadd.f32 %v417_v63, %v403_v62  ;;  %v613_v2 = vpop.f32.mrb[6].mxu0  ;;  %v382_v3 = vadd.f32 %v610_v56, %v381_v61 }
 0x108   : > { %v625_v4 = vpop.f32.mrb[6].mxu1  ;;  %369 = vst [vmem:[%s800_s30 + $0x38] sm:$0xff] %v613_v2  ;;  %v313_v5 = vpop.f32.mrb[7].mxu0  ;;  %v406_v10 = vmul.f32 %v613_v2, %v613_v2 }
 0x109   : > { %377 = vst [vmem:[%s800_s30 + $0x78] sm:$0xff] %v625_v4  ;;  %v353_v6 = vpop.f32.mrb[7].mxu1  ;;  %368 = vst [vmem:[%s800_s30 + $0x30] sm:$0xff] %v313_v5  ;;  %v383_v7 = vadd.f32 %v382_v3, %v313_v5  ;;  %v405_v8 = vmul.f32 %v313_v5, %v313_v5  ;;  %v419_v9 = vadd.f32 %v418_v1, %v404_v0 }
 0x10a   : > { %376 = vst [vmem:[%s800_s30 + $0x70] sm:$0xff] %v353_v6  ;;  %v413_v31 = vmul.f32 %v353_v6, %v353_v6  ;;  %v414_v34 = vmul.f32 %v625_v4, %v625_v4 }
 0x10b   : > { %v384_v11 = vadd.f32 %v613_v2, %v383_v7  ;;  %v420_v12 = vadd.f32 %v419_v9, %v405_v8 }
 0x10d   : > { %v421_v14 = vadd.f32 %v420_v12, %v406_v10  ;;  %v385_v15 = vadd.f32 %v384_v11, %v323_v44 }
 0x10f   : > { %v422_v17 = vadd.f32 %v421_v14, %v407_v13  ;;  %v386_v18 = vadd.f32 %v616_v41, %v385_v15 }
 0x111   : > { %v387_v20 = vadd.f32 %v386_v18, %v333_v51  ;;  %v423_v21 = vadd.f32 %v422_v17, %v408_v16 }
 0x113   : > { %v424_v23 = vadd.f32 %v423_v21, %v409_v19  ;;  %v388_v24 = vadd.f32 %v619_v49, %v387_v20 }
 0x115   : > { %v389_v26 = vadd.f32 %v388_v24, %v343_v60  ;;  %v425_v27 = vadd.f32 %v424_v23, %v410_v22 }
 0x117   : > { %v426_v29 = vadd.f32 %v425_v27, %v411_v25  ;;  %v390_v30 = vadd.f32 %v622_v58, %v389_v26 }
 0x119   : > { %v391_v32 = vadd.f32 %v390_v30, %v353_v6  ;;  %v427_v33 = vadd.f32 %v426_v29, %v412_v28 }
 0x11b   : > { %v392_v35 = vadd.f32 %v625_v4, %v391_v32  ;;  %v428_v36 = vadd.f32 %v427_v33, %v413_v31 }
 0x11d   : > { %v393_v37 = vrot.slane %v392_v35, 4  ;;  %v429_v38 = vadd.f32 %v428_v36, %v414_v34 }
 0x11f   : > { %v394_v39 = vadd.f32 %v393_v37, %v392_v35  ;;  %v430_v40 = vrot.slane %v429_v38, 4 }
 0x121   : > { %v395_v41 = vrot.slane %v394_v39, 2  ;;  %v431_v42 = vadd.f32 %v430_v40, %v429_v38 }
 0x123   : > { %v396_v43 = vadd.f32 %v395_v41, %v394_v39  ;;  %v432_v44 = vrot.slane %v431_v42, 2 }
 0x125   : > { %v397_v45 = vrot.slane %v396_v43, 1  ;;  %v433_v46 = vadd.f32 %v432_v44, %v431_v42 }
 0x127   : > { %v434_v47 = vrot.slane %v433_v46, 1  ;;  %v398_v48 = vadd.f32 %v397_v45, %v396_v43 }
 0x129   : > { %v435_v49 = vadd.f32 %v434_v47, %v433_v46 }
 0x12b   : > { %v437_v50 = vsel %vm436_vm0, %v398_v48, %v435_v49 }
 0x12c   : > { %438 = vst [vmem:[%s184_s5] sm:$0x3] %v437_v50 }
 0x12d PF: > { %s14_s12 = sadd.s32 1, %s688_s12  }
 0x12e   : > { %p11_p5 = scmp.ge.s32.totalorder %s14_s12, 6  }
 0x130   :  { %13 = sbr.rel (!%p11_p5) target bundleno = 1 (0x1), region = 70 }

// kernel: resnet_block.6
= control target key start
LH: loop header
LB: loop body
LE: loop exit
PB: predicated region body
PF: predicated region fallthrough
CT: control target
= control target key end

     0   :  { %s838_s18 = smov 0   ;;  %s996_s0 = inlined_call_operand.vmem [shape: f32[512,128], index: 0, kind: input, shape index: {}]   ;;  %s997_s1 = inlined_call_operand.vmem [shape: f32[1,128], index: 1, kind: input, shape index: {}]   ;;  %s998_s2 = inlined_call_operand.vmem [shape: f32[1,128], index: 2, kind: input, shape index: {}]   ;;  %s999_s3 = inlined_call_operand.vmem [shape: f32[128,128], index: 3, kind: input, shape index: {}]   ;;  %s1000_s4 = inlined_call_operand.vmem [shape: f32[512,128], index: 4, kind: output, shape index: {0}]   ;;  %s1001_s5 = inlined_call_operand.vmem [shape: f32[4,2,128], index: 5, kind: output, shape index: {1}]  }
   0x1 LB: > { %s844_s19 = sadd.s32 4294967295, %s806_s18   ;;  %p646_p0 = scmp.ge.s32.totalorder %s806_s18, 1  ;;  %s806_s18 = sphi %s838_s18, %s16_s18  }
   0x2   : > { %p191_p1 = scmp.lt.s32.totalorder %s806_s18, 5 }
   0x4   : > { %p192_p2 = pnand %p646_p0, %p191_p1 }
   0x5   : > { %v317_v0 = vld [vmem:[%s999_s3] sm:$0xff] (!%p192_p2)  ;;  %v318_v1 = vld [vmem:[%s999_s3 + $0x8] sm:$0xff] (!%p192_p2)  ;;  %v319_v2 = vld [vmem:[%s999_s3 + $0x10] sm:$0xff] (!%p192_p2)  ;;  %s647_s26 = sshll.u32 (!%p192_p2), %s844_s19, 4  ;;  %p235_p4 = scmp.lt.s32.totalorder (!%p192_p2), %s844_s19, 3  ;;  %vm552_vm0 = vcmask (!%p192_p2), 1040384  }
   0x6   : > { %195 = sbr.rel (%p192_p2) target bundleno = 301 (0x12d), region = 36  ;;  %v744_v3 = vpack.c.bf16 (!%p192_p2), %v318_v1, %v317_v0  ;;  %v320_v4 = vld [vmem:[%s999_s3 + $0x18] sm:$0xff] (!%p192_p2)  ;;  %p224_p3 = scmp.lt.s32.totalorder (!%p192_p2), %s647_s26, 63  ;;  %v321_v6 = vld [vmem:[%s999_s3 + $0x20] sm:$0xff] (!%p192_p2)  ;;  %v322_v7 = vld [vmem:[%s999_s3 + $0x28] sm:$0xff] (!%p192_p2) }
   0x7   : > { %v748_v5 = vpack.c.bf16 (!%p192_p2), %v320_v4, %v319_v2  ;;  %v752_v8 = vpack.c.bf16 (!%p192_p2), %v322_v7, %v321_v6  ;;  %v873_v9 = vld [vmem:[%s997_s1] ss:$0 sm:$0xff] (!%p192_p2)  ;;  %v323_v10 = vld [vmem:[%s999_s3 + $0x30] sm:$0xff] (!%p192_p2)  ;;  %v324_v11 = vld [vmem:[%s999_s3 + $0x38] sm:$0xff] (!%p192_p2) }
   0x8   : > { %745 = vmatprep.subr.bf16.mxu0 (!%p192_p2), %v744_v3  ;;  %776 = vmatprep.subr.bf16.mxu1 (!%p192_p2), %v744_v3  ;;  %v892_v13 = vld [vmem:[%s998_s2] ss:$0 sm:$0xff] (!%p192_p2)  ;;  %v756_v15 = vpack.c.bf16 (!%p192_p2), %v324_v11, %v323_v10  ;;  %v326_v17 = vld [vmem:[%s999_s3 + $0x48] sm:$0xff] (!%p192_p2)  ;;  %v327_v22 = vld [vmem:[%s999_s3 + $0x50] sm:$0xff] (!%p192_p2) }
   0x9   : > { %747 = vmatpush3.bf16.msra.mxu0 (!%p192_p2), %v744_v3  ;;  %784 = vmatpush3.bf16.msra.mxu1 (!%p192_p2), %v744_v3  ;;  %v325_v16 = vld [vmem:[%s999_s3 + $0x40] sm:$0xff] (!%p192_p2)  ;;  %v328_v23 = vld [vmem:[%s999_s3 + $0x58] sm:$0xff] (!%p192_p2)  ;;  %v330_v28 = vld [vmem:[%s999_s3 + $0x68] sm:$0xff] (!%p192_p2) }
   0xa   : > { %749 = vmatprep.subr.bf16.mxu0 (!%p192_p2), %v748_v5  ;;  %777 = vmatprep.subr.bf16.mxu1 (!%p192_p2), %v748_v5  ;;  %v760_v21 = vpack.c.bf16 (!%p192_p2), %v326_v17, %v325_v16  ;;  %v764_v26 = vpack.c.bf16 (!%p192_p2), %v328_v23, %v327_v22  ;;  %v329_v27 = vld [vmem:[%s999_s3 + $0x60] sm:$0xff] (!%p192_p2)  ;;  %v331_v35 = vld [vmem:[%s999_s3 + $0x70] sm:$0xff] (!%p192_p2)  ;;  %v332_v36 = vld [vmem:[%s999_s3 + $0x78] sm:$0xff] (!%p192_p2) }
   0xb   : > { %v768_v32 = vpack.c.bf16 (!%p192_p2), %v330_v28, %v329_v27  ;;  %v772_v44 = vpack.c.bf16 (!%p192_p2), %v332_v36, %v331_v35 }
   0xd   : > { %s1003_s26 = smov (!%p224_p3, %s647_s26), 63  ;;  %751 = vmatpush3.bf16.msra.mxu0 %v748_v5  ;;  %785 = vmatpush3.bf16.msra.mxu1 %v748_v5  ;;  %s1005_s19 = smov (!%p235_p4, %s844_s19), 3 }
   0xe   : > { %s648_s8 = sshll.u32 %s1003_s26, 3  ;;  %753 = vmatprep.subr.bf16.mxu0 %v752_v8  ;;  %778 = vmatprep.subr.bf16.mxu1 %v752_v8  ;;  %s651_s26 = sshll.u32 %s1005_s19, 1 }
   0xf   : > { %s886_s17 = scalar_lea.vmem %s996_s0, %s648_s8  ;;  %s238_s21 = scalar_lea.vmem %s1001_s5, %s651_s26 }
  0x10   : > { %v239_v12 = vld [vmem:[%s886_s17] sm:$0xff]  ;;  %v240_v30 = vld [vmem:[%s886_s17 + $0x8] sm:$0xff]  ;;  %v241_v33 = vld [vmem:[%s886_s17 + $0x10] sm:$0xff] }
  0x11   : > { %v262_v14 = vmul.f32 %v873_v9, %v239_v12  ;;  %v247_v19 = vld [vmem:[%s886_s17 + $0x40] sm:$0xff]  ;;  %755 = vmatpush3.bf16.msra.mxu0 %v752_v8  ;;  %786 = vmatpush3.bf16.msra.mxu1 %v752_v8  ;;  %v248_v31 = vld [vmem:[%s886_s17 + $0x48] sm:$0xff]  ;;  %v249_v34 = vld [vmem:[%s886_s17 + $0x50] sm:$0xff]  ;;  %v263_v37 = vmul.f32 %v873_v9, %v240_v30  ;;  %v264_v41 = vmul.f32 %v873_v9, %v241_v33 }
  0x12   : > { %757 = vmatprep.subr.bf16.mxu0 %v756_v15  ;;  %779 = vmatprep.subr.bf16.mxu1 %v756_v15  ;;  %v270_v24 = vmul.f32 %v873_v9, %v247_v19  ;;  %v242_v38 = vld [vmem:[%s886_s17 + $0x18] sm:$0xff]  ;;  %v243_v39 = vld [vmem:[%s886_s17 + $0x20] sm:$0xff]  ;;  %v271_v40 = vmul.f32 %v873_v9, %v248_v31  ;;  %v272_v42 = vmul.f32 %v873_v9, %v249_v34  ;;  %v244_v49 = vld [vmem:[%s886_s17 + $0x28] sm:$0xff] }
  0x13   : > { %v285_v18 = vadd.f32 %v892_v13, %v262_v14  ;;  %v250_v43 = vld [vmem:[%s886_s17 + $0x58] sm:$0xff]  ;;  %v251_v45 = vld [vmem:[%s886_s17 + $0x60] sm:$0xff]  ;;  %v265_v46 = vmul.f32 %v873_v9, %v242_v38  ;;  %v266_v47 = vmul.f32 %v873_v9, %v243_v39  ;;  %v286_v48 = vadd.f32 %v892_v13, %v263_v37  ;;  %v245_v50 = vld [vmem:[%s886_s17 + $0x30] sm:$0xff] }
  0x14   : > { %v293_v25 = vadd.f32 %v892_v13, %v270_v24  ;;  %v294_v51 = vadd.f32 %v892_v13, %v271_v40  ;;  %v273_v52 = vmul.f32 %v873_v9, %v250_v43  ;;  %v287_v53 = vadd.f32 %v892_v13, %v264_v41  ;;  %v252_v56 = vld [vmem:[%s886_s17 + $0x68] sm:$0xff]  ;;  %v253_v57 = vld [vmem:[%s886_s17 + $0x70] sm:$0xff]  ;;  %v246_v63 = vld [vmem:[%s886_s17 + $0x38] sm:$0xff] }
  0x15   : > { %v301_v20 = vmax.f32 %v285_v18, 0.0  ;;  %759 = vmatpush3.bf16.msra.mxu0 %v756_v15  ;;  %787 = vmatpush3.bf16.msra.mxu1 %v756_v15  ;;  %v295_v54 = vadd.f32 %v892_v13, %v272_v42  ;;  %v274_v55 = vmul.f32 %v873_v9, %v251_v45  ;;  %v288_v58 = vadd.f32 %v892_v13, %v265_v46  ;;  %v254_v7 = vld [vmem:[%s886_s17 + $0x78] sm:$0xff]  ;;  %s970_s17 = scalar_lea.vmem %s1000_s4, %s648_s8 }
  0x16   : > { %761 = vmatprep.subr.bf16.mxu0 %v760_v21  ;;  %780 = vmatprep.subr.bf16.mxu1 %v760_v21  ;;  %v309_v29 = vmax.f32 %v293_v25, 0.0  ;;  %v289_v59 = vadd.f32 %v892_v13, %v266_v47  ;;  %v267_v60 = vmul.f32 %v873_v9, %v244_v49  ;;  %v268_v61 = vmul.f32 %v873_v9, %v245_v50 }
  0x17   : > { %720 = vmatprep.mubr.f32.mxu0 %v301_v20  ;;  %v302_v62 = vmax.f32 %v286_v48, 0.0  ;;  %v310_v0 = vmax.f32 %v294_v51, 0.0  ;;  %v296_v1 = vadd.f32 %v892_v13, %v273_v52  ;;  %v275_v2 = vmul.f32 %v873_v9, %v252_v56 }
  0x18   : > { %732 = vmatprep.mubr.f32.mxu1 %v309_v29  ;;  %v303_v3 = vmax.f32 %v287_v53, 0.0  ;;  %v311_v4 = vmax.f32 %v295_v54, 0.0  ;;  %v297_v5 = vadd.f32 %v892_v13, %v274_v55  ;;  %v276_v6 = vmul.f32 %v873_v9, %v253_v57 }
  0x19   : > { %763 = vmatpush3.bf16.msra.mxu0 %v760_v21  ;;  %788 = vmatpush3.bf16.msra.mxu1 %v760_v21  ;;  %v290_v8 = vadd.f32 %v892_v13, %v267_v60  ;;  %v269_v10 = vmul.f32 %v873_v9, %v246_v63  ;;  %v304_v11 = vmax.f32 %v288_v58, 0.0  ;;  %v312_v12 = vmax.f32 %v296_v1, 0.0 }
  0x1a   : > { %765 = vmatprep.subr.bf16.mxu0 %v764_v26  ;;  %781 = vmatprep.subr.bf16.mxu1 %v764_v26  ;;  %v298_v14 = vadd.f32 %v892_v13, %v275_v2  ;;  %v277_v15 = vmul.f32 %v873_v9, %v254_v7  ;;  %v305_v16 = vmax.f32 %v289_v59, 0.0  ;;  %v291_v17 = vadd.f32 %v892_v13, %v268_v61 }
  0x1b   : > { %v313_v18 = vmax.f32 %v297_v5, 0.0  ;;  %v299_v19 = vadd.f32 %v892_v13, %v276_v6  ;;  %v306_v20 = vmax.f32 %v290_v8, 0.0  ;;  %v292_v21 = vadd.f32 %v892_v13, %v269_v10 }
  0x1c   : > { %v314_v22 = vmax.f32 %v298_v14, 0.0  ;;  %v300_v23 = vadd.f32 %v892_v13, %v277_v15  ;;  %v307_v24 = vmax.f32 %v291_v17, 0.0 }
  0x1d   : > { %767 = vmatpush3.bf16.msra.mxu0 %v764_v26  ;;  %789 = vmatpush3.bf16.msra.mxu1 %v764_v26  ;;  %v315_v9 = vmax.f32 %v299_v19, 0.0  ;;  %v308_v25 = vmax.f32 %v292_v21, 0.0 }
  0x1e   : > { %769 = vmatprep.subr.bf16.mxu0 %v768_v32  ;;  %782 = vmatprep.subr.bf16.mxu1 %v768_v32  ;;  %v316_v26 = vmax.f32 %v300_v23, 0.0 }
  0x21   : > { %771 = vmatpush3.bf16.msra.mxu0 %v768_v32  ;;  %790 = vmatpush3.bf16.msra.mxu1 %v768_v32 }
  0x22   : > { %773 = vmatprep.subr.bf16.mxu0 %v772_v44  ;;  %783 = vmatprep.subr.bf16.mxu1 %v772_v44 }
  0x25   : > { %775 = vmatpush3.bf16.msra.mxu0 %v772_v44  ;;  %791 = vmatpush3.bf16.msra.mxu1 %v772_v44 }
  0x28   : > { %721 = vmatmul.mubr.f32.vlgmr.msra.gmra.mrb[0].mxu0 %v302_v62  ;;  %733 = vmatmul.mubr.f32.vlgmr.msra.gmra.mrb[0].mxu1 %v310_v0 }
  0x29   : > { %723 = vmatprep.mubr.f32.mxu0 %v303_v3  ;;  %735 = vmatprep.mubr.f32.mxu1 %v311_v4 }
  0x2c   : > { %724 = vmatmul.mubr.f32.gmra.mrb[2].mxu0 %v304_v11  ;;  %736 = vmatmul.mubr.f32.gmra.mrb[2].mxu1 %v312_v12 }
  0x2d   : > { %726 = vmatprep.mubr.f32.mxu0 %v305_v16  ;;  %738 = vmatprep.mubr.f32.mxu1 %v313_v18 }
  0x30   : > { %727 = vmatmul.mubr.f32.gmra.mrb[4].mxu0 %v306_v20  ;;  %739 = vmatmul.mubr.f32.gmra.mrb[4].mxu1 %v314_v22 }
  0x31   : > { %729 = vmatprep.mubr.f32.mxu0 %v307_v24  ;;  %741 = vmatprep.mubr.f32.mxu1 %v315_v9 }
  0x34   : > { %730 = vmatmul.mubr.f32.gmra.mrb[6].mxu0 %v308_v25  ;;  %742 = vmatmul.mubr.f32.gmra.mrb[6].mxu1 %v316_v26 }
  0xfb   : > { %v722_v13 = vpop.f32.mrb[0].mxu0  ;;  %v734_v27 = vpop.f32.mrb[0].mxu1 }
  0xfc   : > { %479 = vst [vmem:[%s970_s17 + $0x8] sm:$0xff] %v722_v13  ;;  %v516_v28 = vmul.f32 %v722_v13, %v722_v13  ;;  %v399_v29 = vpop.f32.mrb[1].mxu0  ;;  %487 = vst [vmem:[%s970_s17 + $0x48] sm:$0xff] %v734_v27  ;;  %v439_v30 = vpop.f32.mrb[1].mxu1  ;;  %v524_v2 = vmul.f32 %v734_v27, %v734_v27 }
  0xfd   : > { %478 = vst [vmem:[%s970_s17] sm:$0xff] %v399_v29  ;;  %v494_v31 = vadd.f32 %v722_v13, %v399_v29  ;;  %v515_v32 = vmul.f32 %v399_v29, %v399_v29  ;;  %486 = vst [vmem:[%s970_s17 + $0x40] sm:$0xff] %v439_v30  ;;  %v523_v63 = vmul.f32 %v439_v30, %v439_v30 }
  0xff   : > { %v531_v33 = vadd.f32 %v516_v28, %v515_v32  ;;  %v725_v34 = vpop.f32.mrb[2].mxu0  ;;  %v737_v35 = vpop.f32.mrb[2].mxu1 }
 0x100   : > { %481 = vst [vmem:[%s970_s17 + $0x18] sm:$0xff] %v725_v34  ;;  %v409_v36 = vpop.f32.mrb[3].mxu0  ;;  %489 = vst [vmem:[%s970_s17 + $0x58] sm:$0xff] %v737_v35  ;;  %v449_v37 = vpop.f32.mrb[3].mxu1  ;;  %v518_v40 = vmul.f32 %v725_v34, %v725_v34  ;;  %v526_v8 = vmul.f32 %v737_v35, %v737_v35 }
 0x101   : > { %480 = vst [vmem:[%s970_s17 + $0x10] sm:$0xff] %v409_v36  ;;  %v495_v38 = vadd.f32 %v494_v31, %v409_v36  ;;  %v517_v39 = vmul.f32 %v409_v36, %v409_v36  ;;  %488 = vst [vmem:[%s970_s17 + $0x50] sm:$0xff] %v449_v37  ;;  %v525_v5 = vmul.f32 %v449_v37, %v449_v37 }
 0x103   : > { %v532_v41 = vadd.f32 %v531_v33, %v517_v39  ;;  %v728_v42 = vpop.f32.mrb[4].mxu0  ;;  %v496_v43 = vadd.f32 %v725_v34, %v495_v38  ;;  %v740_v44 = vpop.f32.mrb[4].mxu1 }
 0x104   : > { %483 = vst [vmem:[%s970_s17 + $0x28] sm:$0xff] %v728_v42  ;;  %v419_v45 = vpop.f32.mrb[5].mxu0  ;;  %491 = vst [vmem:[%s970_s17 + $0x68] sm:$0xff] %v740_v44  ;;  %v459_v46 = vpop.f32.mrb[5].mxu1  ;;  %v520_v50 = vmul.f32 %v728_v42, %v728_v42  ;;  %v528_v16 = vmul.f32 %v740_v44, %v740_v44 }
 0x105   : > { %482 = vst [vmem:[%s970_s17 + $0x20] sm:$0xff] %v419_v45  ;;  %v497_v47 = vadd.f32 %v496_v43, %v419_v45  ;;  %v519_v48 = vmul.f32 %v419_v45, %v419_v45  ;;  %v533_v49 = vadd.f32 %v532_v41, %v518_v40  ;;  %490 = vst [vmem:[%s970_s17 + $0x60] sm:$0xff] %v459_v46 }
 0x106   : > { %v527_v12 = vmul.f32 %v459_v46, %v459_v46 }
 0x107   : > { %v534_v51 = vadd.f32 %v533_v49, %v519_v48  ;;  %v731_v52 = vpop.f32.mrb[6].mxu0  ;;  %v498_v53 = vadd.f32 %v728_v42, %v497_v47  ;;  %v743_v54 = vpop.f32.mrb[6].mxu1 }
 0x108   : > { %485 = vst [vmem:[%s970_s17 + $0x38] sm:$0xff] %v731_v52  ;;  %v429_v55 = vpop.f32.mrb[7].mxu0  ;;  %493 = vst [vmem:[%s970_s17 + $0x78] sm:$0xff] %v743_v54  ;;  %v469_v56 = vpop.f32.mrb[7].mxu1  ;;  %v522_v60 = vmul.f32 %v731_v52, %v731_v52  ;;  %v530_v22 = vmul.f32 %v743_v54, %v743_v54 }
 0x109   : > { %484 = vst [vmem:[%s970_s17 + $0x30] sm:$0xff] %v429_v55  ;;  %v499_v57 = vadd.f32 %v498_v53, %v429_v55  ;;  %v521_v58 = vmul.f32 %v429_v55, %v429_v55  ;;  %v535_v59 = vadd.f32 %v534_v51, %v520_v50  ;;  %492 = vst [vmem:[%s970_s17 + $0x70] sm:$0xff] %v469_v56 }
 0x10a   : > { %v529_v19 = vmul.f32 %v469_v56, %v469_v56 }
 0x10b   : > { %v500_v61 = vadd.f32 %v731_v52, %v499_v57  ;;  %v536_v62 = vadd.f32 %v535_v59, %v521_v58 }
 0x10d   : > { %v537_v0 = vadd.f32 %v536_v62, %v522_v60  ;;  %v501_v1 = vadd.f32 %v500_v61, %v439_v30 }
 0x10f   : > { %v538_v3 = vadd.f32 %v537_v0, %v523_v63  ;;  %v502_v4 = vadd.f32 %v734_v27, %v501_v1 }
 0x111   : > { %v503_v6 = vadd.f32 %v502_v4, %v449_v37  ;;  %v539_v7 = vadd.f32 %v538_v3, %v524_v2 }
 0x113   : > { %v540_v10 = vadd.f32 %v539_v7, %v525_v5  ;;  %v504_v11 = vadd.f32 %v737_v35, %v503_v6 }
 0x115   : > { %v505_v14 = vadd.f32 %v504_v11, %v459_v46  ;;  %v541_v15 = vadd.f32 %v540_v10, %v526_v8 }
 0x117   : > { %v542_v17 = vadd.f32 %v541_v15, %v527_v12  ;;  %v506_v18 = vadd.f32 %v740_v44, %v505_v14 }
 0x119   : > { %v507_v20 = vadd.f32 %v506_v18, %v469_v56  ;;  %v543_v21 = vadd.f32 %v542_v17, %v528_v16 }
 0x11b   : > { %v508_v23 = vadd.f32 %v743_v54, %v507_v20  ;;  %v544_v24 = vadd.f32 %v543_v21, %v529_v19 }
 0x11d   : > { %v509_v9 = vrot.slane %v508_v23, 4  ;;  %v545_v25 = vadd.f32 %v544_v24, %v530_v22 }
 0x11f   : > { %v510_v26 = vadd.f32 %v509_v9, %v508_v23  ;;  %v546_v13 = vrot.slane %v545_v25, 4 }
 0x121   : > { %v511_v27 = vrot.slane %v510_v26, 2  ;;  %v547_v28 = vadd.f32 %v546_v13, %v545_v25 }
 0x123   : > { %v512_v29 = vadd.f32 %v511_v27, %v510_v26  ;;  %v548_v30 = vrot.slane %v547_v28, 2 }
 0x125   : > { %v513_v31 = vrot.slane %v512_v29, 1  ;;  %v549_v32 = vadd.f32 %v548_v30, %v547_v28 }
 0x127   : > { %v550_v33 = vrot.slane %v549_v32, 1  ;;  %v514_v34 = vadd.f32 %v513_v31, %v512_v29 }
 0x129   : > { %v551_v35 = vadd.f32 %v550_v33, %v549_v32 }
 0x12b   : > { %v553_v36 = vsel %vm552_vm0, %v514_v34, %v551_v35 }
 0x12c   : > { %554 = vst [vmem:[%s238_s21] sm:$0x3] %v553_v36 }
 0x12d PF: > { %s16_s18 = sadd.s32 1, %s806_s18  }
 0x12e   : > { %p13_p5 = scmp.ge.s32.totalorder %s16_s18, 6  }
 0x130   :  { %15 = sbr.rel (!%p13_p5) target bundleno = 1 (0x1), region = 78 }

// kernel: resnet_block.7
= control target key start
LH: loop header
LB: loop body
LE: loop exit
PB: predicated region body
PF: predicated region fallthrough
CT: control target
= control target key end

     0   :  { %s473_s15 = smov 0   ;;  %s594_s0 = inlined_call_operand.vmem [shape: f32[512,128], index: 0, kind: input, shape index: {}]   ;;  %s595_s1 = inlined_call_operand.vmem [shape: f32[512,128], index: 1, kind: input, shape index: {}]   ;;  %s596_s2 = inlined_call_operand.vmem [shape: f32[1,128], index: 2, kind: input, shape index: {}]   ;;  %s597_s3 = inlined_call_operand.vmem [shape: f32[1,128], index: 3, kind: input, shape index: {}]   ;;  %s598_s4 = inlined_call_operand.vmem [shape: f32[512,128], index: 4, kind: output, shape index: {}]  }
   0x1 LB: > { %s417_s16 = sadd.s32 4294967295, %s446_s15   ;;  %p421_p0 = scmp.ge.s32.totalorder %s446_s15, 1  ;;  %s446_s15 = sphi %s473_s15, %s14_s15  }
   0x2   : > { %p174_p1 = scmp.lt.s32.totalorder %s446_s15, 5 }
   0x4   : > { %p175_p2 = pnand %p421_p0, %p174_p1 }
   0x5   : > { %s422_s17 = sshll.u32 (!%p175_p2), %s417_s16, 4  ;;  %v486_v0 = vld [vmem:[%s596_s2] ss:$0 sm:$0xff] (!%p175_p2) }
   0x6   : > { %178 = sbr.rel (%p175_p2) target bundleno = 39 (0x27), region = 36  ;;  %p206_p3 = scmp.lt.s32.totalorder (!%p175_p2), %s422_s17, 63  ;;  %v504_v2 = vld [vmem:[%s597_s3] ss:$0 sm:$0xff] (!%p175_p2) }
   0xd   : > { %s600_s17 = smov (!%p206_p3, %s422_s17), 63 }
   0xe   : > { %s481_s18 = sshll.u32 %s600_s17, 3 }
   0xf   : > { %s492_s23 = scalar_lea.vmem %s594_s0, %s481_s18  ;;  %s498_s26 = scalar_lea.vmem %s595_s1, %s481_s18 }
  0x10   : > { %v223_v1 = vld [vmem:[%s492_s23] sm:$0xff]  ;;  %v224_v3 = vld [vmem:[%s492_s23 + $0x8] sm:$0xff]  ;;  %v225_v7 = vld [vmem:[%s492_s23 + $0x10] sm:$0xff]  ;;  %s534_s5 = scalar_lea.vmem %s598_s4, %s481_s18 }
  0x11   : > { %v246_v4 = vmul.f32 %v486_v0, %v223_v1  ;;  %v285_v5 = vld [vmem:[%s498_s26] sm:$0xff]  ;;  %v247_v6 = vmul.f32 %v486_v0, %v224_v3  ;;  %v286_v8 = vld [vmem:[%s498_s26 + $0x8] sm:$0xff]  ;;  %v248_v9 = vmul.f32 %v486_v0, %v225_v7  ;;  %v226_v10 = vld [vmem:[%s492_s23 + $0x18] sm:$0xff] }
  0x12   : > { %v227_v11 = vld [vmem:[%s492_s23 + $0x20] sm:$0xff]  ;;  %v287_v14 = vld [vmem:[%s498_s26 + $0x10] sm:$0xff]  ;;  %v249_v15 = vmul.f32 %v486_v0, %v226_v10  ;;  %v288_v16 = vld [vmem:[%s498_s26 + $0x18] sm:$0xff] }
  0x13   : > { %v269_v12 = vadd.f32 %v504_v2, %v246_v4  ;;  %v270_v13 = vadd.f32 %v504_v2, %v247_v6  ;;  %v250_v17 = vmul.f32 %v486_v0, %v227_v11  ;;  %v228_v18 = vld [vmem:[%s492_s23 + $0x28] sm:$0xff]  ;;  %v271_v19 = vadd.f32 %v504_v2, %v248_v9  ;;  %v289_v20 = vld [vmem:[%s498_s26 + $0x20] sm:$0xff]  ;;  %v229_v22 = vld [vmem:[%s492_s23 + $0x30] sm:$0xff] }
  0x14   : > { %v251_v21 = vmul.f32 %v486_v0, %v228_v18  ;;  %v230_v23 = vld [vmem:[%s492_s23 + $0x38] sm:$0xff]  ;;  %v272_v26 = vadd.f32 %v504_v2, %v249_v15  ;;  %v290_v28 = vld [vmem:[%s498_s26 + $0x28] sm:$0xff]  ;;  %v252_v31 = vmul.f32 %v486_v0, %v229_v22  ;;  %v231_v33 = vld [vmem:[%s492_s23 + $0x40] sm:$0xff] }
  0x15   : > { %v301_v24 = vadd.f32 %v285_v5, %v269_v12  ;;  %v302_v25 = vadd.f32 %v286_v8, %v270_v13  ;;  %v273_v27 = vadd.f32 %v504_v2, %v250_v17  ;;  %v303_v29 = vadd.f32 %v287_v14, %v271_v19  ;;  %v232_v34 = vld [vmem:[%s492_s23 + $0x48] sm:$0xff]  ;;  %v291_v39 = vld [vmem:[%s498_s26 + $0x30] sm:$0xff]  ;;  %v292_v40 = vld [vmem:[%s498_s26 + $0x38] sm:$0xff] }
  0x16   : > { %v274_v30 = vadd.f32 %v504_v2, %v251_v21  ;;  %v253_v32 = vmul.f32 %v486_v0, %v230_v23  ;;  %v304_v37 = vadd.f32 %v288_v16, %v272_v26  ;;  %v233_v41 = vld [vmem:[%s492_s23 + $0x50] sm:$0xff]  ;;  %v275_v44 = vadd.f32 %v504_v2, %v252_v31  ;;  %v234_v46 = vld [vmem:[%s492_s23 + $0x58] sm:$0xff]  ;;  %v235_v47 = vld [vmem:[%s492_s23 + $0x60] sm:$0xff] }
  0x17   : > { %v317_v35 = vmax.f32 %v301_v24, 0.0  ;;  %v318_v36 = vmax.f32 %v302_v25, 0.0  ;;  %v305_v38 = vadd.f32 %v289_v20, %v273_v27  ;;  %v319_v42 = vmax.f32 %v303_v29, 0.0  ;;  %v236_v52 = vld [vmem:[%s492_s23 + $0x68] sm:$0xff]  ;;  %v293_v56 = vld [vmem:[%s498_s26 + $0x40] sm:$0xff]  ;;  %v295_v61 = vld [vmem:[%s498_s26 + $0x50] sm:$0xff] }
  0x18   : > { %v306_v43 = vadd.f32 %v290_v28, %v274_v30  ;;  %v276_v45 = vadd.f32 %v504_v2, %v253_v32  ;;  %v320_v48 = vmax.f32 %v304_v37, 0.0  ;;  %v254_v50 = vmul.f32 %v486_v0, %v231_v33  ;;  %v294_v57 = vld [vmem:[%s498_s26 + $0x48] sm:$0xff]  ;;  %v237_v1 = vld [vmem:[%s492_s23 + $0x70] sm:$0xff]  ;;  %v238_v3 = vld [vmem:[%s492_s23 + $0x78] sm:$0xff] }
  0x19   : > { %333 = vst [vmem:[%s534_s5] sm:$0xff] %v317_v35  ;;  %334 = vst [vmem:[%s534_s5 + $0x8] sm:$0xff] %v318_v36  ;;  %v321_v49 = vmax.f32 %v305_v38, 0.0  ;;  %v255_v51 = vmul.f32 %v486_v0, %v232_v34  ;;  %v307_v54 = vadd.f32 %v291_v39, %v275_v44  ;;  %v256_v58 = vmul.f32 %v486_v0, %v233_v41  ;;  %v296_v7 = vld [vmem:[%s498_s26 + $0x58] sm:$0xff]  ;;  %v297_v8 = vld [vmem:[%s498_s26 + $0x60] sm:$0xff] }
  0x1a   : > { %335 = vst [vmem:[%s534_s5 + $0x10] sm:$0xff] %v319_v42  ;;  %v322_v53 = vmax.f32 %v306_v43, 0.0  ;;  %v308_v55 = vadd.f32 %v292_v40, %v276_v45  ;;  %336 = vst [vmem:[%s534_s5 + $0x18] sm:$0xff] %v320_v48  ;;  %v277_v59 = vadd.f32 %v504_v2, %v254_v50  ;;  %v257_v62 = vmul.f32 %v486_v0, %v234_v46  ;;  %v298_v14 = vld [vmem:[%s498_s26 + $0x68] sm:$0xff]  ;;  %v299_v23 = vld [vmem:[%s498_s26 + $0x70] sm:$0xff] }
  0x1b   : > { %337 = vst [vmem:[%s534_s5 + $0x20] sm:$0xff] %v321_v49  ;;  %v278_v60 = vadd.f32 %v504_v2, %v255_v51  ;;  %v258_v63 = vmul.f32 %v486_v0, %v235_v47  ;;  %v323_v4 = vmax.f32 %v307_v54, 0.0  ;;  %v279_v6 = vadd.f32 %v504_v2, %v256_v58  ;;  %v300_v24 = vld [vmem:[%s498_s26 + $0x78] sm:$0xff] }
  0x1c   : > { %338 = vst [vmem:[%s534_s5 + $0x28] sm:$0xff] %v322_v53  ;;  %v324_v5 = vmax.f32 %v308_v55, 0.0  ;;  %v259_v9 = vmul.f32 %v486_v0, %v236_v52  ;;  %v309_v10 = vadd.f32 %v293_v56, %v277_v59  ;;  %v280_v12 = vadd.f32 %v504_v2, %v257_v62 }
  0x1d   : > { %v310_v11 = vadd.f32 %v294_v57, %v278_v60  ;;  %v281_v13 = vadd.f32 %v504_v2, %v258_v63  ;;  %339 = vst [vmem:[%s534_s5 + $0x30] sm:$0xff] %v323_v4  ;;  %v311_v15 = vadd.f32 %v295_v61, %v279_v6  ;;  %v260_v17 = vmul.f32 %v486_v0, %v237_v1 }
  0x1e   : > { %340 = vst [vmem:[%s534_s5 + $0x38] sm:$0xff] %v324_v5  ;;  %v282_v16 = vadd.f32 %v504_v2, %v259_v9  ;;  %v261_v18 = vmul.f32 %v486_v0, %v238_v3  ;;  %v325_v19 = vmax.f32 %v309_v10, 0.0  ;;  %v312_v21 = vadd.f32 %v296_v7, %v280_v12 }
  0x1f   : > { %v326_v20 = vmax.f32 %v310_v11, 0.0  ;;  %v313_v22 = vadd.f32 %v297_v8, %v281_v13  ;;  %v327_v25 = vmax.f32 %v311_v15, 0.0  ;;  %v283_v27 = vadd.f32 %v504_v2, %v260_v17 }
  0x20   : > { %v314_v26 = vadd.f32 %v298_v14, %v282_v16  ;;  %v284_v28 = vadd.f32 %v504_v2, %v261_v18  ;;  %341 = vst [vmem:[%s534_s5 + $0x40] sm:$0xff] %v325_v19  ;;  %v328_v0 = vmax.f32 %v312_v21, 0.0 }
  0x21   : > { %342 = vst [vmem:[%s534_s5 + $0x48] sm:$0xff] %v326_v20  ;;  %v329_v29 = vmax.f32 %v313_v22, 0.0  ;;  %343 = vst [vmem:[%s534_s5 + $0x50] sm:$0xff] %v327_v25  ;;  %v315_v31 = vadd.f32 %v299_v23, %v283_v27 }
  0x22   : > { %v330_v30 = vmax.f32 %v314_v26, 0.0  ;;  %v316_v32 = vadd.f32 %v300_v24, %v284_v28  ;;  %344 = vst [vmem:[%s534_s5 + $0x58] sm:$0xff] %v328_v0 }
  0x23   : > { %345 = vst [vmem:[%s534_s5 + $0x60] sm:$0xff] %v329_v29  ;;  %v331_v33 = vmax.f32 %v315_v31, 0.0 }
  0x24   : > { %346 = vst [vmem:[%s534_s5 + $0x68] sm:$0xff] %v330_v30  ;;  %v332_v34 = vmax.f32 %v316_v32, 0.0 }
  0x25   : > { %347 = vst [vmem:[%s534_s5 + $0x70] sm:$0xff] %v331_v33 }
  0x26   : > { %348 = vst [vmem:[%s534_s5 + $0x78] sm:$0xff] %v332_v34 }
  0x27 PF: > { %s14_s15 = sadd.s32 1, %s446_s15  }
  0x28   : > { %p11_p4 = scmp.ge.s32.totalorder %s14_s15, 6  }
  0x2a   :  { %13 = sbr.rel (!%p11_p4) target bundleno = 1 (0x1), region = 69 }

// kernel: resnet_block.5
= control target key start
LH: loop header
LB: loop body
LE: loop exit
PB: predicated region body
PF: predicated region fallthrough
CT: control target
= control target key end

     0   :  { %s2859_s18 = smov 0   ;;  %s4565_s0 = inlined_call_operand.vmem [shape: f32[2,16,16,128], index: 0, kind: input, shape index: {}]   ;;  %s4566_s1 = inlined_call_operand.vmem [shape: f32[1,128], index: 1, kind: input, shape index: {}]   ;;  %s4567_s2 = inlined_call_operand.vmem [shape: f32[1,128], index: 2, kind: input, shape index: {}]   ;;  %s4568_s3 = inlined_call_operand.vmem [shape: f32[1152,128], index: 3, kind: input, shape index: {}]   ;;  %s4569_s4 = inlined_call_operand.vmem [shape: f32[2,16,16,128], index: 4, kind: output, shape index: {0}]   ;;  %s4570_s5 = inlined_call_operand.vmem [shape: f32[2,2,128], index: 5, kind: output, shape index: {1}]  }
   0x1 LB: > { %s2250_s19 = sadd.s32 4294967295, %s2825_s18   ;;  %p2254_p0 = scmp.ge.s32.totalorder %s2825_s18, 1  ;;  %s2825_s18 = sphi %s2859_s18, %s16_s18  }
   0x2   : > { %p190_p1 = scmp.lt.s32.totalorder %s2825_s18, 3 }
   0x4   : > { %p191_p2 = pnand %p2254_p0, %p190_p1 }
   0x6   : > { %194 = sbr.rel (%p191_p2) target bundleno = 646 (0x286), region = 36 }
   0xd   : > { %v2870_v0 = vld [vmem:[%s4568_s3] sm:$0xff]  ;;  %v2875_v1 = vld [vmem:[%s4568_s3 + $0x8] sm:$0xff]  ;;  %v4583_v3 = vmov 0.0|0.0   ;;  %v2894_v6 = vld [vmem:[%s4568_s3 + $0x10] sm:$0xff]  ;;  %v2828_v8 = vmov 0.0   ;;  %p222_p3 = scmp.lt.s32.totalorder %s2250_s19, 1 }
   0xe   : > { %v2880_v2 = vld [vmem:[%s4568_s3 + $0x100] sm:$0xff]  ;;  %2394 = vmatprep.subr.bf16.mxu1 %v4583_v3  ;;  %2442 = vmatprep.subr.bf16.mxu0 %v4583_v3  ;;  %v2395_v4 = vpack.c.bf16 %v2875_v1, %v2870_v0  ;;  %v2889_v5 = vld [vmem:[%s4568_s3 + $0x108] sm:$0xff]  ;;  %v2899_v7 = vld [vmem:[%s4568_s3 + $0x18] sm:$0xff]  ;;  %378 = vst [vmem:[#allocation2] sm:$0xff] %v2828_v8  ;;  %vm2161_vm0 = vcmask 1040384  }
   0xf   : > { %379 = vst [vmem:[#allocation2 + $0x8] sm:$0xff] %v2828_v8  ;;  %380 = vst [vmem:[#allocation2 + $0x10] sm:$0x3] %v2828_v8  ;;  %v2443_v9 = vpack.c.bf16 %v2889_v5, %v2880_v2  ;;  %v788_v10 = vld [vmem:[%s4568_s3 + $0x110] sm:$0xff]  ;;  %v789_v11 = vld [vmem:[%s4568_s3 + $0x118] sm:$0xff]  ;;  %v2398_v12 = vpack.c.bf16 %v2899_v7, %v2894_v6  ;;  %s4670_s19 = smov (!%p222_p3, %s2250_s19), 1 }
  0x10   : > { %381 = vst [vmem:[#allocation2 + $0x18] sm:$0xff] %v2828_v8  ;;  %382 = vst [vmem:[#allocation2 + $0x20] sm:$0xff] %v2828_v8  ;;  %2396 = vmatpush1.bf16.msra.mxu1 %v2395_v4  ;;  %v2446_v13 = vpack.c.bf16 %v789_v11, %v788_v10  ;;  %v758_v14 = vld [vmem:[%s4568_s3 + $0x20] sm:$0xff]  ;;  %v759_v15 = vld [vmem:[%s4568_s3 + $0x28] sm:$0xff]  ;;  %s2264_s12 = sshll.u32 %s4670_s19, 8 }
  0x11   : > { %383 = vst [vmem:[#allocation2 + $0x28] sm:$0x3] %v2828_v8  ;;  %384 = vst [vmem:[#allocation2 + $0x30] sm:$0xff] %v2828_v8  ;;  %2444 = vmatpush1.bf16.msra.mxu0 %v2443_v9  ;;  %2397 = vmatprep.subr.bf16.mxu1 %v4583_v3  ;;  %v790_v16 = vld [vmem:[%s4568_s3 + $0x120] sm:$0xff]  ;;  %v791_v17 = vld [vmem:[%s4568_s3 + $0x128] sm:$0xff]  ;;  %v2401_v18 = vpack.c.bf16 %v759_v15, %v758_v14  ;;  %s3033_s25 = scalar_lea.vmem %s4565_s0, %s2264_s12  ;;  %s4323_s9 = scalar_lea.vmem %s4569_s4, %s2264_s12 }
  0x12   : > { %385 = vst [vmem:[#allocation2 + $0x38] sm:$0xff] %v2828_v8  ;;  %386 = vst [vmem:[#allocation2 + $0x40] sm:$0x3] %v2828_v8  ;;  %2445 = vmatprep.subr.bf16.mxu0 %v4583_v3  ;;  %v2449_v19 = vpack.c.bf16 %v791_v17, %v790_v16  ;;  %v760_v20 = vld [vmem:[%s4568_s3 + $0x30] sm:$0xff]  ;;  %v761_v21 = vld [vmem:[%s4568_s3 + $0x38] sm:$0xff]  ;;  %s2259_s12 = sshll.u32 %s4670_s19, 1 }
  0x13   : > { %387 = vst [vmem:[#allocation2 + $0x48] sm:$0xff] %v2828_v8  ;;  %388 = vst [vmem:[#allocation2 + $0x50] sm:$0xff] %v2828_v8  ;;  %v792_v22 = vld [vmem:[%s4568_s3 + $0x130] sm:$0xff]  ;;  %v793_v23 = vld [vmem:[%s4568_s3 + $0x138] sm:$0xff]  ;;  %v2404_v24 = vpack.c.bf16 %v761_v21, %v760_v20  ;;  %s235_s13 = scalar_lea.vmem %s4570_s5, %s2259_s12 }
  0x14   : > { %389 = vst [vmem:[#allocation2 + $0x58] sm:$0x3] %v2828_v8  ;;  %390 = vst [vmem:[#allocation2 + $0x60] sm:$0xff] %v2828_v8  ;;  %2399 = vmatpush1.bf16.msra.mxu1 %v2398_v12  ;;  %v2452_v25 = vpack.c.bf16 %v793_v23, %v792_v22  ;;  %v762_v26 = vld [vmem:[%s4568_s3 + $0x40] sm:$0xff]  ;;  %v763_v27 = vld [vmem:[%s4568_s3 + $0x48] sm:$0xff] }
  0x15   : > { %391 = vst [vmem:[#allocation2 + $0x68] sm:$0xff] %v2828_v8  ;;  %392 = vst [vmem:[#allocation2 + $0x70] sm:$0x3] %v2828_v8  ;;  %2447 = vmatpush1.bf16.msra.mxu0 %v2446_v13  ;;  %2400 = vmatprep.subr.bf16.mxu1 %v4583_v3  ;;  %v794_v28 = vld [vmem:[%s4568_s3 + $0x140] sm:$0xff]  ;;  %v795_v29 = vld [vmem:[%s4568_s3 + $0x148] sm:$0xff]  ;;  %v2407_v30 = vpack.c.bf16 %v763_v27, %v762_v26 }
  0x16   : > { %393 = vst [vmem:[#allocation2 + $0x78] sm:$0xff] %v2828_v8  ;;  %394 = vst [vmem:[#allocation2 + $0x80] sm:$0xff] %v2828_v8  ;;  %2448 = vmatprep.subr.bf16.mxu0 %v4583_v3  ;;  %v2455_v31 = vpack.c.bf16 %v795_v29, %v794_v28  ;;  %v764_v32 = vld [vmem:[%s4568_s3 + $0x50] sm:$0xff]  ;;  %v765_v33 = vld [vmem:[%s4568_s3 + $0x58] sm:$0xff] }
  0x17   : > { %395 = vst [vmem:[#allocation2 + $0x88] sm:$0x3] %v2828_v8  ;;  %396 = vst [vmem:[#allocation2 + $0x90] sm:$0xff] %v2828_v8  ;;  %v796_v34 = vld [vmem:[%s4568_s3 + $0x150] sm:$0xff]  ;;  %v797_v35 = vld [vmem:[%s4568_s3 + $0x158] sm:$0xff]  ;;  %v2410_v36 = vpack.c.bf16 %v765_v33, %v764_v32 }
  0x18   : > { %397 = vst [vmem:[#allocation2 + $0x98] sm:$0xff] %v2828_v8  ;;  %398 = vst [vmem:[#allocation2 + $0xa0] sm:$0x3] %v2828_v8  ;;  %2402 = vmatpush1.bf16.msra.mxu1 %v2401_v18  ;;  %v2458_v37 = vpack.c.bf16 %v797_v35, %v796_v34  ;;  %v766_v38 = vld [vmem:[%s4568_s3 + $0x60] sm:$0xff]  ;;  %v767_v39 = vld [vmem:[%s4568_s3 + $0x68] sm:$0xff] }
  0x19   : > { %399 = vst [vmem:[#allocation2 + $0xa8] sm:$0xff] %v2828_v8  ;;  %400 = vst [vmem:[#allocation2 + $0xb0] sm:$0xff] %v2828_v8  ;;  %2450 = vmatpush1.bf16.msra.mxu0 %v2449_v19  ;;  %2403 = vmatprep.subr.bf16.mxu1 %v4583_v3  ;;  %v798_v40 = vld [vmem:[%s4568_s3 + $0x160] sm:$0xff]  ;;  %v799_v41 = vld [vmem:[%s4568_s3 + $0x168] sm:$0xff]  ;;  %v2413_v46 = vpack.c.bf16 %v767_v39, %v766_v38 }
  0x1a   : > { %401 = vst [vmem:[#allocation2 + $0xb8] sm:$0x3] %v2828_v8  ;;  %402 = vst [vmem:[#allocation2 + $0xc0] sm:$0xff] %v2828_v8  ;;  %2451 = vmatprep.subr.bf16.mxu0 %v4583_v3  ;;  %v497_v42 = vld [vmem:[#allocation2 + $0x1] sm:$0xff]  ;;  %v3053_v44 = vld [vmem:[%s4566_s1] ss:$0 sm:$0xff]  ;;  %v2461_v50 = vpack.c.bf16 %v799_v41, %v798_v40 }
  0x1b   : > { %403 = vst [vmem:[#allocation2 + $0xc8] sm:$0xff] %v2828_v8  ;;  %404 = vst [vmem:[#allocation2 + $0xd0] sm:$0x3] %v2828_v8  ;;  %v236_v43 = vld [vmem:[%s3033_s25] sm:$0xff]  ;;  %962 = vmatprep.mubr.f32.mxu1 %v497_v42  ;;  %v768_v47 = vld [vmem:[%s4568_s3 + $0x70] sm:$0xff] }
  0x1c   : > { %405 = vst [vmem:[#allocation2 + $0xd8] sm:$0xff] %v2828_v8  ;;  %406 = vst [vmem:[#allocation2 + $0xe0] sm:$0xff] %v2828_v8  ;;  %2405 = vmatpush1.bf16.msra.mxu1 %v2404_v24  ;;  %v3058_v45 = vld [vmem:[%s4567_s2] ss:$0 sm:$0xff]  ;;  %v769_v48 = vld [vmem:[%s4568_s3 + $0x78] sm:$0xff]  ;;  %v275_v49 = vmul.f32 %v3053_v44, %v236_v43 }
  0x1d   : > { %407 = vst [vmem:[#allocation2 + $0xe8] sm:$0x3] %v2828_v8  ;;  %408 = vst [vmem:[#allocation2 + $0xf0] sm:$0xff] %v2828_v8  ;;  %2453 = vmatpush1.bf16.msra.mxu0 %v2452_v25  ;;  %2406 = vmatprep.subr.bf16.mxu1 %v4583_v3  ;;  %v237_v51 = vld [vmem:[%s3033_s25 + $0x8] sm:$0xff]  ;;  %v238_v52 = vld [vmem:[%s3033_s25 + $0x10] sm:$0xff]  ;;  %v2416_v59 = vpack.c.bf16 %v769_v48, %v768_v47 }
  0x1e   : > { %409 = vst [vmem:[#allocation2 + $0xf8] sm:$0xff] %v2828_v8  ;;  %410 = vst [vmem:[#allocation2 + $0x100] sm:$0x3] %v2828_v8  ;;  %2454 = vmatprep.subr.bf16.mxu0 %v4583_v3  ;;  %v800_v53 = vld [vmem:[%s4568_s3 + $0x170] sm:$0xff]  ;;  %v801_v54 = vld [vmem:[%s4568_s3 + $0x178] sm:$0xff]  ;;  %v3078_v55 = vadd.f32 %v3058_v45, %v275_v49  ;;  %v276_v56 = vmul.f32 %v3053_v44, %v237_v51  ;;  %v277_v57 = vmul.f32 %v3053_v44, %v238_v52 }
  0x1f   : > { %411 = vst [vmem:[#allocation2 + $0x108] sm:$0xff] %v2828_v8  ;;  %412 = vst [vmem:[#allocation2 + $0x110] sm:$0xff] %v2828_v8  ;;  %v239_v58 = vld [vmem:[%s3033_s25 + $0x18] sm:$0xff]  ;;  %v3086_v60 = vld [vmem:[%s4568_s3 + $0x80] sm:$0xff]  ;;  %v2464_v9 = vpack.c.bf16 %v801_v54, %v800_v53 }
  0x20   : > { %413 = vst [vmem:[#allocation2 + $0x118] sm:$0x3] %v2828_v8  ;;  %414 = vst [vmem:[#allocation2 + $0x120] sm:$0xff] %v2828_v8  ;;  %2408 = vmatpush1.bf16.msra.mxu1 %v2407_v30  ;;  %v3091_v61 = vld [vmem:[%s4568_s3 + $0x88] sm:$0xff]  ;;  %v278_v62 = vmul.f32 %v3053_v44, %v239_v58  ;;  %v240_v63 = vld [vmem:[%s3033_s25 + $0x20] sm:$0xff]  ;;  %v346_v1 = vmax.f32 %v3078_v55, 0.0  ;;  %v3102_v2 = vadd.f32 %v3058_v45, %v276_v56 }
  0x21   : > { %415 = vst [vmem:[#allocation2 + $0x128] sm:$0xff] %v2828_v8  ;;  %416 = vst [vmem:[#allocation2 + $0x130] sm:$0x3] %v2828_v8  ;;  %2456 = vmatpush1.bf16.msra.mxu0 %v2455_v31  ;;  %2409 = vmatprep.subr.bf16.mxu1 %v4583_v3  ;;  %v3098_v0 = vld [vmem:[%s4568_s3 + $0x180] sm:$0xff]  ;;  %v3105_v4 = vadd.f32 %v3058_v45, %v277_v57  ;;  %v279_v5 = vmul.f32 %v3053_v44, %v240_v63  ;;  %v241_v6 = vld [vmem:[%s3033_s25 + $0x28] sm:$0xff] }
  0x22   : > { %417 = vst [vmem:[#allocation2 + $0x138] sm:$0xff] %v2828_v8  ;;  %418 = vst [vmem:[#allocation2 + $0x140] sm:$0xff] %v2828_v8  ;;  %2457 = vmatprep.subr.bf16.mxu0 %v4583_v3  ;;  %v242_v7 = vld [vmem:[%s3033_s25 + $0x30] sm:$0xff]  ;;  %v803_v10 = vld [vmem:[%s4568_s3 + $0x188] sm:$0xff]  ;;  %v3115_v11 = vadd.f32 %v3058_v45, %v278_v62  ;;  %v280_v12 = vmul.f32 %v3053_v44, %v241_v6  ;;  %v347_v15 = vmax.f32 %v3102_v2, 0.0 }
  0x23   : > { %419 = vst [vmem:[#allocation2 + $0x148] sm:$0x3] %v2828_v8  ;;  %420 = vst [vmem:[#allocation2 + $0x150] sm:$0xff] %v2828_v8  ;;  %v243_v13 = vld [vmem:[%s3033_s25 + $0x38] sm:$0xff]  ;;  %v244_v14 = vld [vmem:[%s3033_s25 + $0x40] sm:$0xff]  ;;  %v348_v16 = vmax.f32 %v3105_v4, 0.0  ;;  %v3126_v17 = vadd.f32 %v3058_v45, %v279_v5  ;;  %v281_v18 = vmul.f32 %v3053_v44, %v242_v7  ;;  %v2419_v20 = vpack.c.bf16 %v3091_v61, %v3086_v60 }
  0x24   : > { %421 = vst [vmem:[#allocation2 + $0x158] sm:$0xff] %v2828_v8  ;;  %422 = vst [vmem:[#allocation2 + $0x160] sm:$0x3] %v2828_v8  ;;  %2411 = vmatpush1.bf16.msra.mxu1 %v2410_v36  ;;  %v245_v19 = vld [vmem:[%s3033_s25 + $0x48] sm:$0xff]  ;;  %v349_v21 = vmax.f32 %v3115_v11, 0.0  ;;  %v3134_v22 = vadd.f32 %v3058_v45, %v280_v12  ;;  %v282_v23 = vmul.f32 %v3053_v44, %v243_v13  ;;  %v246_v24 = vld [vmem:[%s3033_s25 + $0x50] sm:$0xff] }
  0x25   : > { %423 = vst [vmem:[#allocation2 + $0x168] sm:$0xff] %v2828_v8  ;;  %424 = vst [vmem:[#allocation2 + $0x170] sm:$0xff] %v2828_v8  ;;  %2459 = vmatpush1.bf16.msra.mxu0 %v2458_v37  ;;  %2412 = vmatprep.subr.bf16.mxu1 %v4583_v3  ;;  %v2467_v25 = vpack.c.bf16 %v803_v10, %v3098_v0  ;;  %v3142_v26 = vld [vmem:[%s4568_s3 + $0x90] sm:$0xff]  ;;  %v350_v27 = vmax.f32 %v3126_v17, 0.0  ;;  %v3150_v28 = vadd.f32 %v3058_v45, %v281_v18  ;;  %v247_v30 = vld [vmem:[%s3033_s25 + $0x58] sm:$0xff] }
  0x26   : > { %425 = vst [vmem:[#allocation2 + $0x178] sm:$0x3] %v2828_v8  ;;  %426 = vst [vmem:[#allocation2 + $0x180] sm:$0xff] %v2828_v8  ;;  %2460 = vmatprep.subr.bf16.mxu0 %v4583_v3  ;;  %v283_v29 = vmul.f32 %v3053_v44, %v244_v14  ;;  %v248_v31 = vld [vmem:[%s3033_s25 + $0x60] sm:$0xff]  ;;  %v773_v32 = vld [vmem:[%s4568_s3 + $0x98] sm:$0xff]  ;;  %v351_v35 = vmax.f32 %v3134_v22, 0.0  ;;  %v3169_v36 = vadd.f32 %v3058_v45, %v282_v23 }
  0x27   : > { %427 = vst [vmem:[#allocation2 + $0x188] sm:$0xff] %v2828_v8  ;;  %428 = vst [vmem:[#allocation2 + $0x190] sm:$0x3] %v2828_v8  ;;  %v804_v33 = vld [vmem:[%s4568_s3 + $0x190] sm:$0xff]  ;;  %v805_v34 = vld [vmem:[%s4568_s3 + $0x198] sm:$0xff]  ;;  %v284_v37 = vmul.f32 %v3053_v44, %v245_v19  ;;  %v285_v38 = vmul.f32 %v3053_v44, %v246_v24  ;;  %v352_v39 = vmax.f32 %v3150_v28, 0.0  ;;  %v286_v41 = vmul.f32 %v3053_v44, %v247_v30 }
  0x28   : > { %429 = vst [vmem:[#allocation2 + $0x198] sm:$0xff] %v2828_v8  ;;  %430 = vst [vmem:[#allocation2 + $0x1a0] sm:$0xff] %v2828_v8  ;;  %2414 = vmatpush1.bf16.msra.mxu1 %v2413_v46  ;;  %v3178_v40 = vadd.f32 %v3058_v45, %v283_v29  ;;  %v249_v42 = vld [vmem:[%s3033_s25 + $0x68] sm:$0xff]  ;;  %v3185_v43 = vld [vmem:[%s4568_s3 + $0xa0] sm:$0xff]  ;;  %v353_v46 = vmax.f32 %v3169_v36, 0.0  ;;  %v287_v49 = vmul.f32 %v3053_v44, %v248_v31 }
  0x29   : > { %431 = vst [vmem:[#allocation2 + $0x1a8] sm:$0x3] %v2828_v8  ;;  %2462 = vmatpush1.bf16.msra.mxu0 %v2461_v50  ;;  %2415 = vmatprep.subr.bf16.mxu1 %v4583_v3  ;;  %433 = vst [vmem:[#allocation2 + $0x19] sm:$0xff] %v346_v1  ;;  %v3191_v47 = vadd.f32 %v3058_v45, %v284_v37  ;;  %v324_v48 = vadd.f32 %v3058_v45, %v285_v38  ;;  %v250_v50 = vld [vmem:[%s3033_s25 + $0x70] sm:$0xff]  ;;  %v775_v53 = vld [vmem:[%s4568_s3 + $0xa8] sm:$0xff] }
  0x2a   : > { %2463 = vmatprep.subr.bf16.mxu0 %v4583_v3  ;;  %434 = vst [vmem:[#allocation2 + $0x21] sm:$0xff] %v347_v15  ;;  %435 = vst [vmem:[#allocation2 + $0x31] sm:$0xff] %v348_v16  ;;  %v2422_v51 = vpack.c.bf16 %v773_v32, %v3142_v26  ;;  %v2470_v52 = vpack.c.bf16 %v805_v34, %v804_v33  ;;  %v354_v54 = vmax.f32 %v3178_v40, 0.0  ;;  %v251_v57 = vld [vmem:[%s3033_s25 + $0x78] sm:$0xff]  ;;  %v252_v58 = vld [vmem:[%s3033_s25 + $0x80] sm:$0xff] }
  0x2b   : > { %436 = vst [vmem:[#allocation2 + $0x39] sm:$0xff] %v349_v21  ;;  %437 = vst [vmem:[#allocation2 + $0x49] sm:$0xff] %v350_v27  ;;  %v325_v56 = vadd.f32 %v3058_v45, %v286_v41  ;;  %v807_v60 = vld [vmem:[%s4568_s3 + $0x1a8] sm:$0xff]  ;;  %v355_v62 = vmax.f32 %v3191_v47, 0.0  ;;  %v3218_v63 = vmax.f32 %v324_v48, 0.0  ;;  %v3221_v0 = vadd.f32 %v3058_v45, %v287_v49  ;;  %v254_v10 = vld [vmem:[%s3033_s25 + $0x90] sm:$0xff] }
  0x2c   : > { %2417 = vmatpush1.bf16.msra.mxu1 %v2416_v59  ;;  %438 = vst [vmem:[#allocation2 + $0x51] sm:$0xff] %v351_v35  ;;  %439 = vst [vmem:[#allocation2 + $0x61] sm:$0xff] %v352_v39  ;;  %v806_v59 = vld [vmem:[%s4568_s3 + $0x1a0] sm:$0xff]  ;;  %v288_v5 = vmul.f32 %v3053_v44, %v249_v42  ;;  %v289_v7 = vmul.f32 %v3053_v44, %v250_v50  ;;  %v290_v14 = vmul.f32 %v3053_v44, %v251_v57  ;;  %v777_v26 = vld [vmem:[%s4568_s3 + $0xb8] sm:$0xff] }
  0x2d   : > { %2465 = vmatpush1.bf16.msra.mxu0 %v2464_v9  ;;  %2418 = vmatprep.subr.bf16.mxu1 %v4583_v3  ;;  %440 = vst [vmem:[#allocation2 + $0x69] sm:$0xff] %v353_v46  ;;  %441 = vst [vmem:[#allocation2 + $0x79] sm:$0xff] %v354_v54  ;;  %v3228_v6 = vmax.f32 %v325_v56, 0.0  ;;  %v253_v9 = vld [vmem:[%s3033_s25 + $0x88] sm:$0xff]  ;;  %v358_v12 = vmax.f32 %v3221_v0, 0.0  ;;  %v291_v18 = vmul.f32 %v3053_v44, %v252_v58  ;;  %v808_v33 = vld [vmem:[%s4568_s3 + $0x1b0] sm:$0xff] }
  0x2e   : > { %2466 = vmatprep.subr.bf16.mxu0 %v4583_v3  ;;  %442 = vst [vmem:[#allocation2 + $0x81] sm:$0xff] %v355_v62  ;;  %443 = vst [vmem:[#allocation2 + $0x91] sm:$0xff] %v3218_v63  ;;  %v3238_v13 = vadd.f32 %v3058_v45, %v288_v5  ;;  %v2425_v19 = vpack.c.bf16 %v775_v53, %v3185_v43  ;;  %v3245_v23 = vadd.f32 %v3058_v45, %v289_v7  ;;  %v809_v34 = vld [vmem:[%s4568_s3 + $0x1b8] sm:$0xff]  ;;  %v810_v57 = vld [vmem:[%s4568_s3 + $0x1c0] sm:$0xff] }
  0x2f   : > { %444 = vst [vmem:[#allocation2 + $0x99] sm:$0xff] %v3228_v6  ;;  %v292_v24 = vmul.f32 %v3053_v44, %v253_v9  ;;  %445 = vst [vmem:[#allocation2 + $0xa9] sm:$0xff] %v358_v12  ;;  %v3259_v30 = vadd.f32 %v3058_v45, %v290_v14  ;;  %v3262_v31 = vadd.f32 %v3058_v45, %v291_v18  ;;  %v255_v56 = vld [vmem:[%s3033_s25 + $0x98] sm:$0xff]  ;;  %v811_v58 = vld [vmem:[%s4568_s3 + $0x1c8] sm:$0xff] }
  0x30   : > { %2420 = vmatpush1.bf16.msra.mxu1 %v2419_v20  ;;  %v3213_v61 = vld [vmem:[#allocation2 + $0x18] sm:$0xff]  ;;  %v2473_v20 = vpack.c.bf16 %v807_v60, %v806_v59  ;;  %v4580_v29 = vmax.f32 %v3238_v13, 0.0  ;;  %v293_v32 = vmul.f32 %v3053_v44, %v254_v10  ;;  %v4579_v37 = vmax.f32 %v3245_v23, 0.0  ;;  %v256_v7 = vld [vmem:[%s3033_s25 + $0xa0] sm:$0xff]  ;;  %v780_v10 = vld [vmem:[%s4568_s3 + $0xd0] sm:$0xff] }
  0x31   : > { %2468 = vmatpush1.bf16.msra.mxu0 %v2467_v25  ;;  %2421 = vmatprep.subr.bf16.mxu1 %v4583_v3  ;;  %v776_v25 = vld [vmem:[%s4568_s3 + $0xb0] sm:$0xff]  ;;  %v3274_v38 = vadd.f32 %v3058_v45, %v292_v24  ;;  %v4578_v41 = vmax.f32 %v3259_v30, 0.0  ;;  %v4577_v42 = vmax.f32 %v3262_v31, 0.0  ;;  %v2476_v50 = vpack.c.bf16 %v809_v34, %v808_v33  ;;  %v781_v14 = vld [vmem:[%s4568_s3 + $0xd8] sm:$0xff]  ;;  %v862_v11 = vld [vmem:[%s4568_s3 + $0x360] sm:$0xff] }
  0x32   : > { %2469 = vmatprep.subr.bf16.mxu0 %v4583_v3  ;;  %1187 = vmatprep.mubr.f32.mxu0 %v3213_v61  ;;  %446 = vst [vmem:[#allocation2 + $0xb1] sm:$0xff] %v4580_v29  ;;  %v3281_v43 = vadd.f32 %v3058_v45, %v293_v32  ;;  %v2428_v48 = vpack.c.bf16 %v777_v26, %v776_v25  ;;  %447 = vst [vmem:[#allocation2 + $0xc1] sm:$0xff] %v4579_v37  ;;  %v257_v26 = vld [vmem:[%s3033_s25 + $0xa8] sm:$0xff]  ;;  %v825_v55 = vld [vmem:[%s4568_s3 + $0x238] sm:$0xff] }
  0x33   : > { %v4576_v49 = vmax.f32 %v3274_v38, 0.0  ;;  %448 = vst [vmem:[#allocation2 + $0xc9] sm:$0xff] %v4578_v41  ;;  %449 = vst [vmem:[#allocation2 + $0xd9] sm:$0xff] %v4577_v42  ;;  %v294_v59 = vmul.f32 %v3053_v44, %v255_v56  ;;  %v2479_v9 = vpack.c.bf16 %v811_v58, %v810_v57  ;;  %v295_v18 = vmul.f32 %v3053_v44, %v256_v7  ;;  %v815_v56 = vld [vmem:[%s4568_s3 + $0x1e8] sm:$0xff]  ;;  %v258_v58 = vld [vmem:[%s3033_s25 + $0xb0] sm:$0xff] }
  0x34   : > { %2423 = vmatpush1.bf16.msra.mxu1 %v2422_v51  ;;  %v778_v51 = vld [vmem:[%s4568_s3 + $0xc0] sm:$0xff]  ;;  %v4575_v53 = vmax.f32 %v3281_v43, 0.0  ;;  %v2434_v32 = vpack.c.bf16 %v781_v14, %v780_v10  ;;  %v296_v33 = vmul.f32 %v3053_v44, %v257_v26  ;;  %v297_v7 = vmul.f32 %v3053_v44, %v258_v58  ;;  %v784_v10 = vld [vmem:[%s4568_s3 + $0xf0] sm:$0xff]  ;;  %v785_v14 = vld [vmem:[%s4568_s3 + $0xf8] sm:$0xff] }
  0x35   : > { %2471 = vmatpush1.bf16.msra.mxu0 %v2470_v52  ;;  %2424 = vmatprep.subr.bf16.mxu1 %v4583_v3  ;;  %v779_v52 = vld [vmem:[%s4568_s3 + $0xc8] sm:$0xff]  ;;  %450 = vst [vmem:[#allocation2 + $0xe1] sm:$0xff] %v4576_v49  ;;  %v3312_v5 = vadd.f32 %v3058_v45, %v294_v59  ;;  %v3332_v25 = vadd.f32 %v3058_v45, %v295_v18  ;;  %v259_v18 = vld [vmem:[%s3033_s25 + $0xb8] sm:$0xff]  ;;  %v860_v4 = vld [vmem:[%s4568_s3 + $0x350] sm:$0xff] }
  0x36   : > { %2472 = vmatprep.subr.bf16.mxu0 %v4583_v3  ;;  %451 = vst [vmem:[#allocation2 + $0xf1] sm:$0xff] %v4575_v53  ;;  %v2431_v60 = vpack.c.bf16 %v779_v52, %v778_v51  ;;  %v814_v52 = vld [vmem:[%s4568_s3 + $0x1e0] sm:$0xff]  ;;  %v3354_v57 = vadd.f32 %v3058_v45, %v296_v33  ;;  %v3379_v26 = vadd.f32 %v3058_v45, %v297_v7  ;;  %v530_v49 = vld [vmem:[#allocation2 + $0xa] sm:$0xff]  ;;  %v849_v0 = vld [vmem:[%s4568_s3 + $0x2f8] sm:$0xff] }
  0x37   : > { %v4574_v24 = vmax.f32 %v3312_v5, 0.0  ;;  %v4573_v51 = vmax.f32 %v3332_v25, 0.0  ;;  %v260_v33 = vld [vmem:[%s3033_s25 + $0xc0] sm:$0xff] }
  0x38   : > { %2426 = vmatpush1.bf16.msra.mxu1 %v2425_v19  ;;  %v812_v19 = vld [vmem:[%s4568_s3 + $0x1d0] sm:$0xff] }
  0x39   : > { %2474 = vmatpush1.bf16.msra.mxu0 %v2473_v20  ;;  %2427 = vmatprep.subr.bf16.mxu1 %v4583_v3  ;;  %v813_v20 = vld [vmem:[%s4568_s3 + $0x1d8] sm:$0xff]  ;;  %452 = vst [vmem:[#allocation2 + $0xf9] sm:$0xff] %v4574_v24  ;;  %453 = vst [vmem:[#allocation2 + $0x109] sm:$0xff] %v4573_v51  ;;  %v498_v24 = vld [vmem:[#allocation2 + $0x9] sm:$0xff] }
  0x3a   : > { %2475 = vmatprep.subr.bf16.mxu0 %v4583_v3  ;;  %v2482_v34 = vpack.c.bf16 %v813_v20, %v812_v19  ;;  %v816_v19 = vld [vmem:[%s4568_s3 + $0x1f0] sm:$0xff]  ;;  %v817_v20 = vld [vmem:[%s4568_s3 + $0x1f8] sm:$0xff] }
  0x3b   : > { %v2488_v58 = vpack.c.bf16 %v817_v20, %v816_v19  ;;  %v850_v19 = vld [vmem:[%s4568_s3 + $0x300] sm:$0xff]  ;;  %v851_v20 = vld [vmem:[%s4568_s3 + $0x308] sm:$0xff] }
  0x3c   : > { %2429 = vmatpush1.bf16.msra.mxu1 %v2428_v48  ;;  %v782_v48 = vld [vmem:[%s4568_s3 + $0xe0] sm:$0xff] }
  0x3d   : > { %2477 = vmatpush1.bf16.msra.mxu0 %v2476_v50  ;;  %2430 = vmatprep.subr.bf16.mxu1 %v4583_v3  ;;  %v783_v50 = vld [vmem:[%s4568_s3 + $0xe8] sm:$0xff] }
  0x3e   : > { %2478 = vmatprep.subr.bf16.mxu0 %v4583_v3  ;;  %v2437_v59 = vpack.c.bf16 %v783_v50, %v782_v48  ;;  %v2440_v48 = vpack.c.bf16 %v785_v14, %v784_v10  ;;  %v4572_v50 = vmax.f32 %v3379_v26, 0.0 }
  0x40   : > { %2432 = vmatpush1.bf16.msra.mxu1 %v2431_v60  ;;  %v4571_v60 = vmax.f32 %v3354_v57, 0.0  ;;  %455 = vst [vmem:[#allocation2 + $0x121] sm:$0xff] %v4572_v50  ;;  %v529_v50 = vld [vmem:[#allocation2 + $0x2] sm:$0xff] }
  0x41   : > { %2480 = vmatpush1.bf16.msra.mxu0 %v2479_v9  ;;  %2433 = vmatprep.subr.bf16.mxu1 %v4583_v3  ;;  %v2485_v9 = vpack.c.bf16 %v815_v56, %v814_v52  ;;  %v261_v56 = vld [vmem:[%s3033_s25 + $0xc8] sm:$0xff] }
  0x42   : > { %2481 = vmatprep.subr.bf16.mxu0 %v4583_v3  ;;  %454 = vst [vmem:[#allocation2 + $0x111] sm:$0xff] %v4571_v60  ;;  %v300_v60 = vmul.f32 %v3053_v44, %v261_v56 }
  0x44   : > { %2435 = vmatpush1.bf16.msra.mxu1 %v2434_v32  ;;  %v298_v32 = vmul.f32 %v3053_v44, %v259_v18  ;;  %v262_v18 = vld [vmem:[%s3033_s25 + $0xd0] sm:$0xff] }
  0x45   : > { %2483 = vmatpush1.bf16.msra.mxu0 %v2482_v34  ;;  %2436 = vmatprep.subr.bf16.mxu1 %v4583_v3  ;;  %v299_v34 = vmul.f32 %v3053_v44, %v260_v33  ;;  %v301_v14 = vmul.f32 %v3053_v44, %v262_v18  ;;  %v339_v33 = vadd.f32 %v3058_v45, %v300_v60  ;;  %v264_v18 = vld [vmem:[%s3033_s25 + $0xe0] sm:$0xff] }
  0x46   : > { %2484 = vmatprep.subr.bf16.mxu0 %v4583_v3  ;;  %v337_v52 = vadd.f32 %v3058_v45, %v298_v32  ;;  %v303_v60 = vmul.f32 %v3053_v44, %v264_v18  ;;  %v853_v18 = vld [vmem:[%s4568_s3 + $0x318] sm:$0xff] }
  0x47   : > { %v338_v7 = vadd.f32 %v3058_v45, %v299_v34  ;;  %v263_v34 = vld [vmem:[%s3033_s25 + $0xd8] sm:$0xff] }
  0x48   : > { %2438 = vmatpush1.bf16.msra.mxu1 %v2437_v59  ;;  %v818_v59 = vld [vmem:[%s4568_s3 + $0x200] sm:$0xff]  ;;  %v3400_v10 = vmax.f32 %v337_v52, 0.0  ;;  %v340_v52 = vadd.f32 %v3058_v45, %v301_v14  ;;  %v302_v56 = vmul.f32 %v3053_v44, %v263_v34  ;;  %v852_v34 = vld [vmem:[%s4568_s3 + $0x310] sm:$0xff]  ;;  %v342_v53 = vadd.f32 %v3058_v45, %v303_v60 }
  0x49   : > { %2486 = vmatpush1.bf16.msra.mxu0 %v2485_v9  ;;  %2439 = vmatprep.subr.bf16.mxu1 %v4583_v3  ;;  %v819_v9 = vld [vmem:[%s4568_s3 + $0x208] sm:$0xff]  ;;  %v3409_v32 = vmax.f32 %v338_v7, 0.0  ;;  %v3419_v7 = vmax.f32 %v339_v33, 0.0  ;;  %v822_v60 = vld [vmem:[%s4568_s3 + $0x220] sm:$0xff] }
  0x4a   : > { %2487 = vmatprep.subr.bf16.mxu0 %v4583_v3  ;;  %456 = vst [vmem:[#allocation2 + $0x129] sm:$0xff] %v3400_v10  ;;  %v2491_v51 = vpack.c.bf16 %v819_v9, %v818_v59  ;;  %v821_v59 = vld [vmem:[%s4568_s3 + $0x218] sm:$0xff]  ;;  %v3431_v9 = vpack.c.bf16 %v851_v20, %v850_v19  ;;  %v3433_v14 = vmax.f32 %v340_v52, 0.0  ;;  %v341_v33 = vadd.f32 %v3058_v45, %v302_v56  ;;  %v265_v19 = vld [vmem:[%s3033_s25 + $0xe8] sm:$0xff]  ;;  %v266_v56 = vld [vmem:[%s3033_s25 + $0xf0] sm:$0xff] }
  0x4b   : > { %457 = vst [vmem:[#allocation2 + $0x139] sm:$0xff] %v3409_v32  ;;  %458 = vst [vmem:[#allocation2 + $0x141] sm:$0xff] %v3419_v7  ;;  %v304_v52 = vmul.f32 %v3053_v44, %v265_v19  ;;  %v3455_v41 = vmax.f32 %v342_v53, 0.0  ;;  %v267_v53 = vld [vmem:[%s3033_s25 + $0xf8] sm:$0xff]  ;;  %v855_v19 = vld [vmem:[%s4568_s3 + $0x328] sm:$0xff] }
  0x4c   : > { %2441 = vmatpush1.bf16.msra.mxu1 %v2440_v48  ;;  %v3423_v48 = vld [vmem:[#allocation2 + $0x20] sm:$0xff]  ;;  %459 = vst [vmem:[#allocation2 + $0x151] sm:$0xff] %v3433_v14  ;;  %v3447_v20 = vmax.f32 %v341_v33, 0.0  ;;  %v3465_v33 = vpack.c.bf16 %v853_v18, %v852_v34  ;;  %v306_v18 = vmul.f32 %v3053_v44, %v267_v53  ;;  %v827_v53 = vld [vmem:[%s4568_s3 + $0x248] sm:$0xff] }
  0x4d   : > { %2489 = vmatpush1.bf16.msra.mxu0 %v2488_v58  ;;  %2618 = vmatprep.subr.bf16.mxu1 %v4583_v3  ;;  %v820_v58 = vld [vmem:[%s4568_s3 + $0x210] sm:$0xff]  ;;  %461 = vst [vmem:[#allocation2 + $0x169] sm:$0xff] %v3455_v41 }
  0x4e   : > { %2490 = vmatprep.subr.bf16.mxu0 %v4583_v3  ;;  %v2494_v42 = vpack.c.bf16 %v821_v59, %v820_v58  ;;  %460 = vst [vmem:[#allocation2 + $0x159] sm:$0xff] %v3447_v20  ;;  %v343_v58 = vadd.f32 %v3058_v45, %v304_v52  ;;  %v854_v59 = vld [vmem:[%s4568_s3 + $0x320] sm:$0xff]  ;;  %v3490_v29 = vadd.f32 %v3058_v45, %v306_v18 }
  0x4f   : > { %963 = vmatmul.mubr.f32.vlgmr.msra.gmra.mrb[0].mxu1 %v2828_v8  ;;  %v531_v52 = vld [vmem:[#allocation2 + $0x1a] sm:$0xff] }
  0x50   : > { %1188 = vmatmul.mubr.f32.vlgmr.msra.gmra.mrb[0].mxu0 %v529_v50  ;;  %967 = vmatprep.mubr.f32.mxu1 %v498_v24  ;;  %v305_v24 = vmul.f32 %v3053_v44, %v266_v56  ;;  %v3458_v50 = vld [vmem:[#allocation2 + $0x30] sm:$0xff]  ;;  %4616 = vst [vmem:[#allocation5_spill] sm:$0xff] %v3490_v29 }
  0x51   : > { %2492 = vmatpush1.bf16.msra.mxu0 %v2491_v51  ;;  %1192 = vmatprep.mubr.f32.mxu0 %v3423_v48  ;;  %v823_v51 = vld [vmem:[%s4568_s3 + $0x228] sm:$0xff]  ;;  %v824_v44 = vld [vmem:[%s4568_s3 + $0x230] sm:$0xff] }
  0x52   : > { %2493 = vmatprep.subr.bf16.mxu0 %v4583_v3  ;;  %2634 = vmatpush1.bf16.msra.mxu1 %v3431_v9  ;;  %v3480_v34 = vadd.f32 %v3058_v45, %v305_v24  ;;  %v2497_v56 = vpack.c.bf16 %v823_v51, %v822_v60  ;;  %v564_v24 = vld [vmem:[#allocation2 + $0x38] sm:$0xff]  ;;  %v856_v45 = vld [vmem:[%s4568_s3 + $0x330] sm:$0xff]  ;;  %v2500_v60 = vpack.c.bf16 %v825_v55, %v824_v44  ;;  %v565_v51 = vld [vmem:[#allocation2 + $0x48] sm:$0xff] }
  0x53   : > { %968 = vmatmul.mubr.f32.gmra.mrb[2].mxu1 %v2828_v8  ;;  %2619 = vmatprep.subr.bf16.mxu1 %v4583_v3  ;;  %v3485_v8 = vmax.f32 %v343_v58, 0.0  ;;  %v826_v58 = vld [vmem:[%s4568_s3 + $0x240] sm:$0xff] }
  0x54   : > { %4614 = vst [vmem:[#allocation3_spill] sm:$0xff] %v3480_v34  ;;  %1193 = vmatmul.mubr.f32.gmra.mrb[2].mxu0 %v530_v49  ;;  %972 = vmatprep.mubr.f32.mxu1 %v346_v1  ;;  %v4582_v37 = vmax.f32 %v3480_v34, 0.0  ;;  %v3500_v1 = vpack.c.bf16 %v855_v19, %v854_v59  ;;  %v4581_v49 = vmax.f32 %v3490_v29, 0.0  ;;  %v859_v59 = vld [vmem:[%s4568_s3 + $0x348] sm:$0xff]  ;;  %v533_v19 = vld [vmem:[#allocation2 + $0x32] sm:$0xff]  ;;  %v2503_v18 = vpack.c.bf16 %v827_v53, %v826_v58  ;;  %v534_v55 = vld [vmem:[#allocation2 + $0x3a] sm:$0xff] }
  0x55   : > { %4615 = vst [vmem:[#allocation4_spill] sm:$0xff] %v3485_v8  ;;  %1197 = vmatprep.mubr.f32.mxu0 %v3458_v50  ;;  %2495 = vmatpush1.bf16.msra.mxu0 %v2494_v42  ;;  %462 = vst [vmem:[#allocation2 + $0x171] sm:$0xff] %v3485_v8  ;;  %v857_v42 = vld [vmem:[%s4568_s3 + $0x338] sm:$0xff]  ;;  %v3577_v58 = vld [vmem:[#allocation2 + $0x4a] sm:$0xff] }
  0x56   : > { %2496 = vmatprep.subr.bf16.mxu0 %v4583_v3  ;;  %2635 = vmatpush1.bf16.msra.mxu1 %v3465_v33  ;;  %463 = vst [vmem:[#allocation2 + $0x181] sm:$0xff] %v4582_v37  ;;  %464 = vst [vmem:[#allocation2 + $0x189] sm:$0xff] %v4581_v49  ;;  %v3526_v2 = vpack.c.bf16 %v857_v42, %v856_v45  ;;  %v567_v42 = vld [vmem:[#allocation2 + $0x60] sm:$0xff]  ;;  %v3802_v49 = vld [vmem:[#allocation2 + $0xd8] sm:$0xff]  ;;  %v4618_v37 = vmax.f32 %v3245_v23, 0.0  ;;  %v4619_v23 = vmax.f32 %v3259_v30, 0.0 }
  0x57   : > { %973 = vmatmul.mubr.f32.gmra.mrb[4].mxu1 %v3213_v61  ;;  %2620 = vmatprep.subr.bf16.mxu1 %v4583_v3  ;;  %v532_v61 = vld [vmem:[#allocation2 + $0x22] sm:$0xff]  ;;  %v4621_v30 = vmax.f32 %v3274_v38, 0.0  ;;  %v4625_v38 = vmax.f32 %v3312_v5, 0.0  ;;  %v4629_v5 = vmax.f32 %v3354_v57, 0.0  ;;  %v3884_v34 = vld [vmem:[#allocation2 + $0x138] sm:$0xff]  ;;  %v3899_v57 = vld [vmem:[#allocation2 + $0x12a] sm:$0xff] }
  0x58   : > { %1198 = vmatmul.mubr.f32.gmra.mrb[4].mxu0 %v531_v52  ;;  %977 = vmatprep.mubr.f32.mxu1 %v347_v15  ;;  %v858_v15 = vld [vmem:[%s4568_s3 + $0x340] sm:$0xff]  ;;  %v566_v52 = vld [vmem:[#allocation2 + $0x50] sm:$0xff]  ;;  %v3875_v29 = vld [vmem:[#allocation2 + $0x128] sm:$0xff]  ;;  %4633 = vst [vmem:[#allocation12_spill] sm:$0xff] %v3899_v57 }
  0x59   : > { %1202 = vmatprep.mubr.f32.mxu0 %v564_v24  ;;  %2498 = vmatpush1.bf16.msra.mxu0 %v2497_v56  ;;  %v829_v56 = vld [vmem:[%s4568_s3 + $0x258] sm:$0xff]  ;;  %v3546_v44 = vpack.c.bf16 %v859_v59, %v858_v15  ;;  %v832_v15 = vld [vmem:[%s4568_s3 + $0x270] sm:$0xff] }
  0x5a   : > { %2499 = vmatprep.subr.bf16.mxu0 %v4583_v3  ;;  %2636 = vmatpush1.bf16.msra.mxu1 %v3500_v1  ;;  %v833_v59 = vld [vmem:[%s4568_s3 + $0x278] sm:$0xff] }
  0x5b   : > { %978 = vmatmul.mubr.f32.gmra.mrb[6].mxu1 %v3423_v48  ;;  %2621 = vmatprep.subr.bf16.mxu1 %v4583_v3  ;;  %v828_v48 = vld [vmem:[%s4568_s3 + $0x250] sm:$0xff] }
  0x5c   : > { %1203 = vmatmul.mubr.f32.gmra.mrb[6].mxu0 %v532_v61  ;;  %982 = vmatprep.mubr.f32.mxu1 %v348_v16  ;;  %v861_v16 = vld [vmem:[%s4568_s3 + $0x358] sm:$0xff]  ;;  %v2506_v45 = vpack.c.bf16 %v829_v56, %v828_v48  ;;  %v831_v61 = vld [vmem:[%s4568_s3 + $0x268] sm:$0xff]  ;;  %v834_v56 = vld [vmem:[%s4568_s3 + $0x280] sm:$0xff] }
  0x5d   : > { %1207 = vmatprep.mubr.f32.mxu0 %v565_v51  ;;  %2501 = vmatpush1.bf16.msra.mxu0 %v2500_v60  ;;  %v3566_v60 = vpack.c.bf16 %v861_v16, %v860_v4  ;;  %v569_v48 = vld [vmem:[#allocation2 + $0x78] sm:$0xff]  ;;  %v835_v4 = vld [vmem:[%s4568_s3 + $0x288] sm:$0xff] }
  0x5e   : > { %2502 = vmatprep.subr.bf16.mxu0 %v4583_v3  ;;  %2637 = vmatpush1.bf16.msra.mxu1 %v3526_v2  ;;  %v867_v16 = vld [vmem:[%s4568_s3 + $0x388] sm:$0xff] }
  0x5f   : > { %983 = vmatmul.mubr.f32.gmra.mrb[8].mxu1 %v3458_v50  ;;  %2622 = vmatprep.subr.bf16.mxu1 %v4583_v3  ;;  %v830_v50 = vld [vmem:[%s4568_s3 + $0x260] sm:$0xff] }
  0x60   : > { %1208 = vmatmul.mubr.f32.gmra.mrb[8].mxu0 %v533_v19  ;;  %987 = vmatprep.mubr.f32.mxu1 %v349_v21  ;;  %v863_v21 = vld [vmem:[%s4568_s3 + $0x368] sm:$0xff]  ;;  %v2509_v53 = vpack.c.bf16 %v831_v61, %v830_v50  ;;  %v865_v19 = vld [vmem:[%s4568_s3 + $0x378] sm:$0xff]  ;;  %v836_v50 = vld [vmem:[%s4568_s3 + $0x290] sm:$0xff] }
  0x61   : > { %1212 = vmatprep.mubr.f32.mxu0 %v566_v52  ;;  %2504 = vmatpush1.bf16.msra.mxu0 %v2503_v18  ;;  %v3587_v17 = vpack.c.bf16 %v863_v21, %v862_v11  ;;  %v3599_v18 = vld [vmem:[#allocation2 + $0x52] sm:$0xff]  ;;  %v3643_v21 = vld [vmem:[#allocation2 + $0x6a] sm:$0xff] }
  0x62   : > { %2505 = vmatprep.subr.bf16.mxu0 %v4583_v3  ;;  %2638 = vmatpush1.bf16.msra.mxu1 %v3546_v44  ;;  %v837_v61 = vld [vmem:[%s4568_s3 + $0x298] sm:$0xff] }
  0x63   : > { %988 = vmatmul.mubr.f32.gmra.mrb[10].mxu1 %v564_v24  ;;  %2623 = vmatprep.subr.bf16.mxu1 %v4583_v3  ;;  %v568_v24 = vld [vmem:[#allocation2 + $0x68] sm:$0xff]  ;;  %v869_v11 = vld [vmem:[%s4568_s3 + $0x398] sm:$0xff] }
  0x64   : > { %1213 = vmatmul.mubr.f32.gmra.mrb[10].mxu0 %v534_v55  ;;  %992 = vmatprep.mubr.f32.mxu1 %v350_v27  ;;  %v864_v27 = vld [vmem:[%s4568_s3 + $0x370] sm:$0xff]  ;;  %v3621_v55 = vld [vmem:[#allocation2 + $0x62] sm:$0xff] }
  0x65   : > { %1217 = vmatprep.mubr.f32.mxu0 %v567_v42  ;;  %2507 = vmatpush1.bf16.msra.mxu0 %v2506_v45  ;;  %v3609_v22 = vpack.c.bf16 %v865_v19, %v864_v27  ;;  %v570_v45 = vld [vmem:[#allocation2 + $0x80] sm:$0xff]  ;;  %v871_v27 = vld [vmem:[%s4568_s3 + $0x3a8] sm:$0xff] }
  0x66   : > { %2508 = vmatprep.subr.bf16.mxu0 %v4583_v3  ;;  %2639 = vmatpush1.bf16.msra.mxu1 %v3566_v60  ;;  %v3668_v19 = vld [vmem:[#allocation2 + $0x7a] sm:$0xff] }
  0x67   : > { %993 = vmatmul.mubr.f32.gmra.mrb[12].mxu1 %v565_v51  ;;  %2624 = vmatprep.subr.bf16.mxu1 %v4583_v3  ;;  %v2512_v51 = vpack.c.bf16 %v833_v59, %v832_v15  ;;  %v838_v15 = vld [vmem:[%s4568_s3 + $0x2a0] sm:$0xff]  ;;  %v839_v59 = vld [vmem:[%s4568_s3 + $0x2a8] sm:$0xff] }
  0x68   : > { %1218 = vmatmul.mubr.f32.gmra.mrb[12].mxu0 %v3577_v58  ;;  %997 = vmatprep.mubr.f32.mxu1 %v351_v35  ;;  %v866_v35 = vld [vmem:[%s4568_s3 + $0x380] sm:$0xff] }
  0x69   : > { %1222 = vmatprep.mubr.f32.mxu0 %v568_v24  ;;  %2510 = vmatpush1.bf16.msra.mxu0 %v2509_v53  ;;  %v3631_v28 = vpack.c.bf16 %v867_v16, %v866_v35  ;;  %v3645_v53 = vld [vmem:[#allocation2 + $0x90] sm:$0xff]  ;;  %v873_v35 = vld [vmem:[%s4568_s3 + $0x3b8] sm:$0xff]  ;;  %v3693_v16 = vld [vmem:[#allocation2 + $0x82] sm:$0xff] }
  0x6a   : > { %2511 = vmatprep.subr.bf16.mxu0 %v4583_v3  ;;  %2640 = vmatpush1.bf16.msra.mxu1 %v3587_v17 }
  0x6b   : > { %998 = vmatmul.mubr.f32.gmra.mrb[14].mxu1 %v566_v52  ;;  %2625 = vmatprep.subr.bf16.mxu1 %v4583_v3  ;;  %v2515_v52 = vpack.c.bf16 %v835_v4, %v834_v56  ;;  %v840_v56 = vld [vmem:[%s4568_s3 + $0x2b0] sm:$0xff]  ;;  %v841_v4 = vld [vmem:[%s4568_s3 + $0x2b8] sm:$0xff] }
  0x6c   : > { %1223 = vmatmul.mubr.f32.gmra.mrb[14].mxu0 %v3599_v18  ;;  %1002 = vmatprep.mubr.f32.mxu1 %v352_v39  ;;  %v868_v39 = vld [vmem:[%s4568_s3 + $0x390] sm:$0xff] }
  0x6d   : > { %1227 = vmatprep.mubr.f32.mxu0 %v569_v48  ;;  %2513 = vmatpush1.bf16.msra.mxu0 %v2512_v51  ;;  %v3655_v36 = vpack.c.bf16 %v869_v11, %v868_v39  ;;  %v3670_v51 = vld [vmem:[#allocation2 + $0x98] sm:$0xff]  ;;  %v875_v39 = vld [vmem:[%s4568_s3 + $0x3c8] sm:$0xff] }
  0x6e   : > { %2514 = vmatprep.subr.bf16.mxu0 %v4583_v3  ;;  %2641 = vmatpush1.bf16.msra.mxu1 %v3609_v22  ;;  %v3717_v11 = vld [vmem:[#allocation2 + $0x92] sm:$0xff] }
  0x6f   : > { %1003 = vmatmul.mubr.f32.gmra.mrb[16].mxu1 %v567_v42  ;;  %2626 = vmatprep.subr.bf16.mxu1 %v4583_v3  ;;  %v2518_v42 = vpack.c.bf16 %v837_v61, %v836_v50  ;;  %v842_v50 = vld [vmem:[%s4568_s3 + $0x2c0] sm:$0xff]  ;;  %v843_v61 = vld [vmem:[%s4568_s3 + $0x2c8] sm:$0xff] }
  0x70   : > { %1228 = vmatmul.mubr.f32.gmra.mrb[16].mxu0 %v3621_v55  ;;  %1007 = vmatprep.mubr.f32.mxu1 %v353_v46  ;;  %v870_v46 = vld [vmem:[%s4568_s3 + $0x3a0] sm:$0xff] }
  0x71   : > { %1232 = vmatprep.mubr.f32.mxu0 %v570_v45  ;;  %2516 = vmatpush1.bf16.msra.mxu0 %v2515_v52  ;;  %v3680_v40 = vpack.c.bf16 %v871_v27, %v870_v46  ;;  %v3695_v52 = vld [vmem:[#allocation2 + $0xa8] sm:$0xff]  ;;  %v876_v27 = vld [vmem:[%s4568_s3 + $0x3d0] sm:$0xff] }
  0x72   : > { %2517 = vmatprep.subr.bf16.mxu0 %v4583_v3  ;;  %2642 = vmatpush1.bf16.msra.mxu1 %v3631_v28 }
  0x73   : > { %1008 = vmatmul.mubr.f32.gmra.mrb[18].mxu1 %v568_v24  ;;  %2627 = vmatprep.subr.bf16.mxu1 %v4583_v3  ;;  %v2521_v24 = vpack.c.bf16 %v839_v59, %v838_v15  ;;  %v844_v15 = vld [vmem:[%s4568_s3 + $0x2d0] sm:$0xff]  ;;  %v845_v59 = vld [vmem:[%s4568_s3 + $0x2d8] sm:$0xff] }
  0x74   : > { %1233 = vmatmul.mubr.f32.gmra.mrb[18].mxu0 %v3643_v21  ;;  %1012 = vmatprep.mubr.f32.mxu1 %v354_v54  ;;  %v872_v54 = vld [vmem:[%s4568_s3 + $0x3b0] sm:$0xff] }
  0x75   : > { %1237 = vmatprep.mubr.f32.mxu0 %v3645_v53  ;;  %2519 = vmatpush1.bf16.msra.mxu0 %v2518_v42  ;;  %v3705_v47 = vpack.c.bf16 %v873_v35, %v872_v54  ;;  %v3719_v42 = vld [vmem:[#allocation2 + $0xb0] sm:$0xff]  ;;  %v3744_v54 = vld [vmem:[#allocation2 + $0xc0] sm:$0xff] }
  0x76   : > { %2520 = vmatprep.subr.bf16.mxu0 %v4583_v3  ;;  %2643 = vmatpush1.bf16.msra.mxu1 %v3655_v36  ;;  %v846_v35 = vld [vmem:[%s4568_s3 + $0x2e0] sm:$0xff] }
  0x77   : > { %1013 = vmatmul.mubr.f32.gmra.mrb[20].mxu1 %v569_v48  ;;  %2628 = vmatprep.subr.bf16.mxu1 %v4583_v3  ;;  %v2524_v48 = vpack.c.bf16 %v841_v4, %v840_v56  ;;  %v3742_v56 = vld [vmem:[#allocation2 + $0x9a] sm:$0xff]  ;;  %v2530_v4 = vpack.c.bf16 %v845_v59, %v844_v15  ;;  %v3770_v15 = vld [vmem:[#allocation2 + $0xc8] sm:$0xff]  ;;  %v848_v59 = vld [vmem:[%s4568_s3 + $0x2f0] sm:$0xff] }
  0x78   : > { %1238 = vmatmul.mubr.f32.gmra.mrb[20].mxu0 %v3668_v19  ;;  %1017 = vmatprep.mubr.f32.mxu1 %v355_v62  ;;  %v874_v62 = vld [vmem:[%s4568_s3 + $0x3c0] sm:$0xff] }
  0x79   : > { %1242 = vmatprep.mubr.f32.mxu0 %v3670_v51  ;;  %2522 = vmatpush1.bf16.msra.mxu0 %v2521_v24  ;;  %v3729_v46 = vpack.c.bf16 %v875_v39, %v874_v62  ;;  %v877_v24 = vld [vmem:[%s4568_s3 + $0x3d8] sm:$0xff]  ;;  %v879_v62 = vld [vmem:[%s4568_s3 + $0x3e8] sm:$0xff] }
  0x7a   : > { %2523 = vmatprep.subr.bf16.mxu0 %v4583_v3  ;;  %2644 = vmatpush1.bf16.msra.mxu1 %v3680_v40  ;;  %v3768_v39 = vld [vmem:[#allocation2 + $0xaa] sm:$0xff] }
  0x7b   : > { %1018 = vmatmul.mubr.f32.gmra.mrb[22].mxu1 %v570_v45  ;;  %2629 = vmatprep.subr.bf16.mxu1 %v4583_v3  ;;  %v2527_v45 = vpack.c.bf16 %v843_v61, %v842_v50  ;;  %v3754_v50 = vpack.c.bf16 %v877_v24, %v876_v27  ;;  %v878_v61 = vld [vmem:[%s4568_s3 + $0x3e0] sm:$0xff]  ;;  %v880_v27 = vld [vmem:[%s4568_s3 + $0x3f0] sm:$0xff]  ;;  %v881_v24 = vld [vmem:[%s4568_s3 + $0x3f8] sm:$0xff] }
  0x7c   : > { %1243 = vmatmul.mubr.f32.gmra.mrb[22].mxu0 %v3693_v16  ;;  %1022 = vmatprep.mubr.f32.mxu1 %v3218_v63 }
  0x7d   : > { %1247 = vmatprep.mubr.f32.mxu0 %v3695_v52  ;;  %2525 = vmatpush1.bf16.msra.mxu0 %v2524_v48  ;;  %v847_v48 = vld [vmem:[%s4568_s3 + $0x2e8] sm:$0xff] }
  0x7e   : > { %2526 = vmatprep.subr.bf16.mxu0 %v4583_v3  ;;  %2645 = vmatpush1.bf16.msra.mxu1 %v3705_v47 }
  0x7f   : > { %1023 = vmatmul.mubr.f32.gmra.mrb[24].mxu1 %v3645_v53  ;;  %2630 = vmatprep.subr.bf16.mxu1 %v4583_v3 }
  0x80   : > { %1248 = vmatmul.mubr.f32.gmra.mrb[24].mxu0 %v3717_v11  ;;  %1027 = vmatprep.mubr.f32.mxu1 %v3228_v6 }
  0x81   : > { %1252 = vmatprep.mubr.f32.mxu0 %v3719_v42  ;;  %2528 = vmatpush1.bf16.msra.mxu0 %v2527_v45  ;;  %v2533_v45 = vpack.c.bf16 %v847_v48, %v846_v35  ;;  %v882_v35 = vld [vmem:[%s4568_s3 + $0x400] sm:$0xff]  ;;  %v883_v48 = vld [vmem:[%s4568_s3 + $0x408] sm:$0xff] }
  0x82   : > { %2529 = vmatprep.subr.bf16.mxu0 %v4583_v3  ;;  %2646 = vmatpush1.bf16.msra.mxu1 %v3729_v46 }
  0x83   : > { %1028 = vmatmul.mubr.f32.gmra.mrb[26].mxu1 %v3670_v51  ;;  %2631 = vmatprep.subr.bf16.mxu1 %v4583_v3 }
  0x84   : > { %1253 = vmatmul.mubr.f32.gmra.mrb[26].mxu0 %v3742_v56  ;;  %1032 = vmatprep.mubr.f32.mxu1 %v358_v12  ;;  %v3780_v12 = vpack.c.bf16 %v879_v62, %v878_v61  ;;  %v3800_v61 = vld [vmem:[#allocation2 + $0xb2] sm:$0xff]  ;;  %v2536_v62 = vpack.c.bf16 %v849_v0, %v848_v59  ;;  %v3818_v59 = vld [vmem:[#allocation2 + $0xe0] sm:$0xff] }
  0x85   : > { %1257 = vmatprep.mubr.f32.mxu0 %v3744_v54  ;;  %2531 = vmatpush1.bf16.msra.mxu0 %v2530_v4  ;;  %v4617_v4 = vmax.f32 %v3238_v13, 0.0  ;;  %v3806_v13 = vpack.c.bf16 %v881_v24, %v880_v27  ;;  %v3830_v0 = vld [vmem:[#allocation2 + $0xf0] sm:$0xff]  ;;  %v4620_v27 = vmax.f32 %v3262_v31, 0.0  ;;  %v3837_v24 = vld [vmem:[#allocation2 + $0xda] sm:$0xff]  ;;  %v4623_v31 = vmax.f32 %v3281_v43, 0.0 }
  0x86   : > { %2532 = vmatprep.subr.bf16.mxu0 %v4583_v3  ;;  %2647 = vmatpush1.bf16.msra.mxu1 %v3754_v50  ;;  %v4627_v43 = vmax.f32 %v3332_v25, 0.0  ;;  %v4631_v25 = vmax.f32 %v3379_v26, 0.0  ;;  %v3907_v26 = vld [vmem:[#allocation2 + $0x13a] sm:$0xff] }
  0x87   : > { %1033 = vmatmul.mubr.f32.gmra.mrb[28].mxu1 %v3695_v52  ;;  %2632 = vmatprep.subr.bf16.mxu1 %v4583_v3  ;;  %4634 = vst [vmem:[#allocation13_spill] sm:$0xff] %v3907_v26 }
  0x88   : > { %1258 = vmatmul.mubr.f32.gmra.mrb[28].mxu0 %v3768_v39  ;;  %1037 = vmatprep.mubr.f32.mxu1 %v4617_v4  ;;  %v3810_v4 = vpack.c.bf16 %v883_v48, %v882_v35  ;;  %v3839_v35 = vld [vmem:[#allocation2 + $0xf8] sm:$0xff]  ;;  %v3846_v48 = vld [vmem:[#allocation2 + $0xe2] sm:$0xff] }
  0x89   : > { %1262 = vmatprep.mubr.f32.mxu0 %v3770_v15  ;;  %2534 = vmatpush1.bf16.msra.mxu0 %v2533_v45  ;;  %v3816_v45 = vld [vmem:[#allocation2 + $0xc2] sm:$0xff]  ;;  %4622 = vst [vmem:[#allocation6_spill] sm:$0xff] %v3846_v48 }
  0x8a   : > { %2535 = vmatprep.subr.bf16.mxu0 %v4583_v3  ;;  %2648 = vmatpush1.bf16.msra.mxu1 %v3780_v12 }
  0x8b   : > { %1038 = vmatmul.mubr.f32.gmra.mrb[30].mxu1 %v3719_v42  ;;  %2633 = vmatprep.subr.bf16.mxu1 %v4583_v3 }
  0x8c   : > { %1263 = vmatmul.mubr.f32.gmra.mrb[30].mxu0 %v3800_v61  ;;  %1042 = vmatprep.mubr.f32.mxu1 %v4618_v37  ;;  %v3828_v37 = vld [vmem:[#allocation2 + $0xca] sm:$0xff] }
  0x8d   : > { %1267 = vmatprep.mubr.f32.mxu0 %v3802_v49  ;;  %2537 = vmatpush1.bf16.msra.mxu0 %v2536_v62  ;;  %v3848_v62 = vld [vmem:[#allocation2 + $0x108] sm:$0xff] }
  0x8e   : > { %2649 = vmatpush1.bf16.msra.mxu1 %v3806_v13  ;;  %2538 = vmatprep.subr.bf16.mxu0 %v4583_v3  ;;  %v3866_v3 = vld [vmem:[#allocation2 + $0x120] sm:$0xff] }
  0x8f   : > { %1043 = vmatmul.mubr.f32.gmra.mrb[32].mxu1 %v3744_v54  ;;  %2587 = vmatprep.subr.bf16.mxu1 %v3810_v4 }
  0x90   : > { %1268 = vmatmul.mubr.f32.gmra.mrb[32].mxu0 %v3816_v45  ;;  %1047 = vmatprep.mubr.f32.mxu1 %v4619_v23  ;;  %v3855_v23 = vld [vmem:[#allocation2 + $0xf2] sm:$0xff] }
  0x91   : > { %1272 = vmatprep.mubr.f32.mxu0 %v3818_v59  ;;  %4624 = vst [vmem:[#allocation7_spill] sm:$0xff] %v3855_v23 }
  0x93   : > { %1048 = vmatmul.mubr.f32.gmra.mrb[34].mxu1 %v3770_v15 }
  0x94   : > { %1273 = vmatmul.mubr.f32.gmra.mrb[34].mxu0 %v3828_v37  ;;  %1052 = vmatprep.mubr.f32.mxu1 %v4620_v27  ;;  %v3857_v27 = vld [vmem:[#allocation2 + $0x110] sm:$0xff] }
  0x95   : > { %1277 = vmatprep.mubr.f32.mxu0 %v3830_v0 }
  0x97   : > { %1053 = vmatmul.mubr.f32.gmra.mrb[36].mxu1 %v3802_v49 }
  0x98   : > { %1278 = vmatmul.mubr.f32.gmra.mrb[36].mxu0 %v3837_v24  ;;  %1057 = vmatprep.mubr.f32.mxu1 %v4621_v30  ;;  %v3864_v30 = vld [vmem:[#allocation2 + $0xfa] sm:$0xff] }
  0x99   : > { %1282 = vmatprep.mubr.f32.mxu0 %v3839_v35  ;;  %4626 = vst [vmem:[#allocation8_spill] sm:$0xff] %v3864_v30 }
  0x9b   : > { %1058 = vmatmul.mubr.f32.gmra.mrb[38].mxu1 %v3818_v59 }
  0x9c   : > { %1283 = vmatmul.mubr.f32.gmra.mrb[38].mxu0 %v3846_v48  ;;  %1062 = vmatprep.mubr.f32.mxu1 %v4623_v31  ;;  %v3873_v31 = vld [vmem:[#allocation2 + $0x10a] sm:$0xff] }
  0x9d   : > { %1287 = vmatprep.mubr.f32.mxu0 %v3848_v62  ;;  %4628 = vst [vmem:[#allocation9_spill] sm:$0xff] %v3873_v31  ;;  %v3941_v48 = vld [vmem:[#allocation2 + $0x188] sm:$0xff] }
  0x9e   : > { %4643 = vst [vmem:[#allocation22_spill] sm:$0xff] %v3941_v48 }
  0x9f   : > { %1063 = vmatmul.mubr.f32.gmra.mrb[40].mxu1 %v3830_v0 }
  0xa0   : > { %1288 = vmatmul.mubr.f32.gmra.mrb[40].mxu0 %v3855_v23  ;;  %1067 = vmatprep.mubr.f32.mxu1 %v4625_v38  ;;  %v3882_v38 = vld [vmem:[#allocation2 + $0x112] sm:$0xff]  ;;  %v3933_v23 = vld [vmem:[#allocation2 + $0x180] sm:$0xff] }
  0xa1   : > { %1292 = vmatprep.mubr.f32.mxu0 %v3857_v27  ;;  %4630 = vst [vmem:[#allocation10_spill] sm:$0xff] %v3882_v38  ;;  %4641 = vst [vmem:[#allocation20_spill] sm:$0xff] %v3933_v23 }
  0xa3   : > { %1068 = vmatmul.mubr.f32.gmra.mrb[42].mxu1 %v3839_v35 }
  0xa4   : > { %1293 = vmatmul.mubr.f32.gmra.mrb[42].mxu0 %v3864_v30  ;;  %1072 = vmatprep.mubr.f32.mxu1 %v4627_v43  ;;  %v3891_v43 = vld [vmem:[#allocation2 + $0x122] sm:$0xff]  ;;  %v3925_v30 = vld [vmem:[#allocation2 + $0x170] sm:$0xff] }
  0xa5   : > { %1297 = vmatprep.mubr.f32.mxu0 %v3866_v3  ;;  %4632 = vst [vmem:[#allocation11_spill] sm:$0xff] %v3891_v43  ;;  %4639 = vst [vmem:[#allocation18_spill] sm:$0xff] %v3925_v30 }
  0xa7   : > { %1073 = vmatmul.mubr.f32.gmra.mrb[44].mxu1 %v3848_v62 }
  0xa8   : > { %1298 = vmatmul.mubr.f32.gmra.mrb[44].mxu0 %v3873_v31  ;;  %1077 = vmatprep.mubr.f32.mxu1 %v4629_v5  ;;  %v3893_v31 = vld [vmem:[#allocation2 + $0x140] sm:$0xff]  ;;  %v3901_v5 = vld [vmem:[#allocation2 + $0x150] sm:$0xff] }
  0xa9   : > { %1302 = vmatprep.mubr.f32.mxu0 %v3875_v29 }
  0xab   : > { %1078 = vmatmul.mubr.f32.gmra.mrb[46].mxu1 %v3857_v27 }
  0xac   : > { %1303 = vmatmul.mubr.f32.gmra.mrb[46].mxu0 %v3882_v38  ;;  %1082 = vmatprep.mubr.f32.mxu1 %v4631_v25  ;;  %v3909_v25 = vld [vmem:[#allocation2 + $0x158] sm:$0xff]  ;;  %v3917_v38 = vld [vmem:[#allocation2 + $0x168] sm:$0xff] }
  0xad   : > { %1307 = vmatprep.mubr.f32.mxu0 %v3884_v34  ;;  %4635 = vst [vmem:[#allocation14_spill] sm:$0xff] %v3909_v25  ;;  %4637 = vst [vmem:[#allocation16_spill] sm:$0xff] %v3917_v38 }
  0xaf   : > { %1083 = vmatmul.mubr.f32.gmra.mrb[48].mxu1 %v3866_v3 }
  0xb0   : > { %1308 = vmatmul.mubr.f32.gmra.mrb[48].mxu0 %v3891_v43  ;;  %1087 = vmatprep.mubr.f32.mxu1 %v3400_v10  ;;  %v3915_v43 = vld [vmem:[#allocation2 + $0x142] sm:$0xff] }
  0xb1   : > { %1312 = vmatprep.mubr.f32.mxu0 %v3893_v31  ;;  %4636 = vst [vmem:[#allocation15_spill] sm:$0xff] %v3915_v43 }
  0xb3   : > { %1088 = vmatmul.mubr.f32.gmra.mrb[50].mxu1 %v3875_v29 }
  0xb4   : > { %1313 = vmatmul.mubr.f32.gmra.mrb[50].mxu0 %v3899_v57  ;;  %1092 = vmatprep.mubr.f32.mxu1 %v3409_v32  ;;  %v3923_v57 = vld [vmem:[#allocation2 + $0x152] sm:$0xff] }
  0xb5   : > { %1317 = vmatprep.mubr.f32.mxu0 %v3901_v5  ;;  %4638 = vst [vmem:[#allocation17_spill] sm:$0xff] %v3923_v57 }
  0xb7   : > { %1093 = vmatmul.mubr.f32.gmra.mrb[52].mxu1 %v3884_v34 }
  0xb8   : > { %1318 = vmatmul.mubr.f32.gmra.mrb[52].mxu0 %v3907_v26  ;;  %1097 = vmatprep.mubr.f32.mxu1 %v3419_v7  ;;  %v3931_v26 = vld [vmem:[#allocation2 + $0x15a] sm:$0xff] }
  0xb9   : > { %1322 = vmatprep.mubr.f32.mxu0 %v3909_v25  ;;  %4640 = vst [vmem:[#allocation19_spill] sm:$0xff] %v3931_v26 }
  0xbb   : > { %1098 = vmatmul.mubr.f32.gmra.mrb[54].mxu1 %v3893_v31 }
  0xbc   : > { %1323 = vmatmul.mubr.f32.gmra.mrb[54].mxu0 %v3915_v43  ;;  %1102 = vmatprep.mubr.f32.mxu1 %v3433_v14  ;;  %v3939_v43 = vld [vmem:[#allocation2 + $0x16a] sm:$0xff] }
  0xbd   : > { %1327 = vmatprep.mubr.f32.mxu0 %v3917_v38  ;;  %4642 = vst [vmem:[#allocation21_spill] sm:$0xff] %v3939_v43 }
  0xbf   : > { %1103 = vmatmul.mubr.f32.gmra.mrb[56].mxu1 %v3901_v5 }
  0xc0   : > { %1328 = vmatmul.mubr.f32.gmra.mrb[56].mxu0 %v3923_v57  ;;  %1107 = vmatprep.mubr.f32.mxu1 %v3447_v20  ;;  %v3947_v57 = vld [vmem:[#allocation2 + $0x172] sm:$0xff] }
  0xc1   : > { %1332 = vmatprep.mubr.f32.mxu0 %v3925_v30  ;;  %4644 = vst [vmem:[#allocation23_spill] sm:$0xff] %v3947_v57 }
  0xc3   : > { %1108 = vmatmul.mubr.f32.gmra.mrb[58].mxu1 %v3909_v25  ;;  %v625_v25 = vld [vmem:[#allocation2 + $0x1a] sm:$0xff] }
  0xc4   : > { %1333 = vmatmul.mubr.f32.gmra.mrb[58].mxu0 %v3931_v26  ;;  %1112 = vmatprep.mubr.f32.mxu1 %v3455_v41  ;;  %v884_v26 = vld [vmem:[%s4568_s3 + $0x410] sm:$0xff] }
  0xc5   : > { %1337 = vmatprep.mubr.f32.mxu0 %v3933_v23  ;;  %v593_v23 = vld [vmem:[#allocation2 + $0x19] sm:$0xff] }
  0xc7   : > { %1113 = vmatmul.mubr.f32.gmra.mrb[60].mxu1 %v3917_v38  ;;  %v4645_v38 = vmov 0.0|0.0  }
  0xc8   : > { %1338 = vmatmul.mubr.f32.gmra.mrb[60].mxu0 %v3939_v43  ;;  %1117 = vmatprep.mubr.f32.mxu1 %v3485_v8  ;;  %v885_v43 = vld [vmem:[%s4568_s3 + $0x418] sm:$0xff] }
  0xc9   : > { %1342 = vmatprep.mubr.f32.mxu0 %v3941_v48  ;;  %v626_v48 = vld [vmem:[#allocation2 + $0x22] sm:$0xff]  ;;  %v2590_v8 = vpack.c.bf16 %v885_v43, %v884_v26  ;;  %v3990_v43 = vld [vmem:[#allocation2 + $0xb1] sm:$0xff] }
  0xca   : > { %v4006_v26 = vld [vmem:[#allocation2 + $0xc1] sm:$0xff] }
  0xcb   : > { %1118 = vmatmul.mubr.f32.gmra.mrb[62].mxu1 %v3925_v30  ;;  %v3967_v30 = vld [vmem:[#allocation2 + $0x32] sm:$0xff] }
  0xcc   : > { %1343 = vmatmul.mubr.f32.gmra.mrb[62].mxu0 %v3947_v57  ;;  %1677 = vmatprep.mubr.f32.mxu1 %v3218_v63  ;;  %v886_v63 = vld [vmem:[%s4568_s3 + $0x420] sm:$0xff]  ;;  %v887_v57 = vld [vmem:[%s4568_s3 + $0x428] sm:$0xff] }
  0xcd   : > { %1412 = vmatprep.mubr.f32.mxu0 %v625_v25  ;;  %v594_v25 = vld [vmem:[#allocation2 + $0x21] sm:$0xff] }
  0xcf   : > { %1678 = vmatmul.mubr.f32.vlgmr.msra.gmra.mrb[64].mxu1 %v3645_v53  ;;  %v3972_v53 = vld [vmem:[#allocation2 + $0xa9] sm:$0xff] }
  0xd0   : > { %1413 = vmatmul.mubr.f32.vlgmr.msra.gmra.mrb[0].mxu0 %v593_v23  ;;  %1682 = vmatprep.mubr.f32.mxu1 %v3228_v6  ;;  %v2594_v6 = vpack.c.bf16 %v887_v57, %v886_v63  ;;  %v890_v57 = vld [vmem:[%s4568_s3 + $0x440] sm:$0xff]  ;;  %v892_v63 = vld [vmem:[%s4568_s3 + $0x450] sm:$0xff] }
  0xd1   : > { %2540 = vmatpush1.bf16.msra.mxu0 %v3431_v9  ;;  %1417 = vmatprep.mubr.f32.mxu0 %v626_v48  ;;  %v888_v9 = vld [vmem:[%s4568_s3 + $0x430] sm:$0xff]  ;;  %v889_v48 = vld [vmem:[%s4568_s3 + $0x438] sm:$0xff] }
  0xd2   : > { %2541 = vmatprep.subr.bf16.mxu0 %v4645_v38  ;;  %2589 = vmatpush3.bf16.msra.mxu1 %v3810_v4  ;;  %v3982_v4 = vld [vmem:[#allocation2 + $0x31] sm:$0xff]  ;;  %v2598_v23 = vpack.c.bf16 %v889_v48, %v888_v9  ;;  %v4038_v48 = vld [vmem:[#allocation2 + $0xd9] sm:$0xff] }
  0xd3   : > { %1683 = vmatmul.mubr.f32.gmra.mrb[66].mxu1 %v3670_v51  ;;  %2591 = vmatprep.subr.bf16.mxu1 %v2590_v8  ;;  %v3985_v51 = vld [vmem:[#allocation2 + $0x3a] sm:$0xff]  ;;  %v4032_v9 = vld [vmem:[#allocation2 + $0x51] sm:$0xff] }
  0xd4   : > { %1418 = vmatmul.mubr.f32.gmra.mrb[2].mxu0 %v594_v25  ;;  %1687 = vmatprep.mubr.f32.mxu1 %v3972_v53  ;;  %v4016_v25 = vld [vmem:[#allocation2 + $0x49] sm:$0xff] }
  0xd5   : > { %1422 = vmatprep.mubr.f32.mxu0 %v3967_v30  ;;  %2543 = vmatpush1.bf16.msra.mxu0 %v3465_v33  ;;  %v891_v33 = vld [vmem:[%s4568_s3 + $0x448] sm:$0xff] }
  0xd6   : > { %2544 = vmatprep.subr.bf16.mxu0 %v4645_v38  ;;  %2593 = vmatpush3.bf16.msra.mxu1 %v2590_v8  ;;  %v4000_v8 = vld [vmem:[#allocation2 + $0x39] sm:$0xff] }
  0xd7   : > { %1688 = vmatmul.mubr.f32.gmra.mrb[68].mxu1 %v3695_v52  ;;  %2595 = vmatprep.subr.bf16.mxu1 %v2594_v6  ;;  %v2602_v52 = vpack.c.bf16 %v891_v33, %v890_v57  ;;  %v4054_v57 = vld [vmem:[#allocation2 + $0xe1] sm:$0xff]  ;;  %v725_v33 = vld [vmem:[#allocation2 + $0x52] sm:$0xff] }
  0xd8   : > { %1423 = vmatmul.mubr.f32.gmra.mrb[4].mxu0 %v3982_v4  ;;  %1692 = vmatprep.mubr.f32.mxu1 %v3990_v43 }
  0xd9   : > { %1427 = vmatprep.mubr.f32.mxu0 %v3985_v51  ;;  %2546 = vmatpush1.bf16.msra.mxu0 %v3500_v1  ;;  %v893_v1 = vld [vmem:[%s4568_s3 + $0x458] sm:$0xff] }
  0xda   : > { %2547 = vmatprep.subr.bf16.mxu0 %v4645_v38  ;;  %2597 = vmatpush3.bf16.msra.mxu1 %v2594_v6  ;;  %v4022_v6 = vld [vmem:[#allocation2 + $0xc9] sm:$0xff] }
  0xdb   : > { %1693 = vmatmul.mubr.f32.gmra.mrb[70].mxu1 %v3719_v42  ;;  %2599 = vmatprep.subr.bf16.mxu1 %v2598_v23  ;;  %v2606_v42 = vpack.c.bf16 %v893_v1, %v892_v63 }
  0xdc   : > { %1428 = vmatmul.mubr.f32.gmra.mrb[6].mxu0 %v4000_v8  ;;  %1697 = vmatprep.mubr.f32.mxu1 %v4006_v26 }
  0xdd   : > { %1432 = vmatprep.mubr.f32.mxu0 %v3577_v58  ;;  %2549 = vmatpush1.bf16.msra.mxu0 %v3526_v2  ;;  %v894_v58 = vld [vmem:[%s4568_s3 + $0x460] sm:$0xff]  ;;  %v895_v2 = vld [vmem:[%s4568_s3 + $0x468] sm:$0xff] }
  0xde   : > { %2550 = vmatprep.subr.bf16.mxu0 %v4645_v38  ;;  %2601 = vmatpush3.bf16.msra.mxu1 %v2598_v23  ;;  %v4048_v23 = vld [vmem:[#allocation2 + $0x61] sm:$0xff] }
  0xdf   : > { %1698 = vmatmul.mubr.f32.gmra.mrb[72].mxu1 %v3744_v54  ;;  %2603 = vmatprep.subr.bf16.mxu1 %v2602_v52  ;;  %v2610_v54 = vpack.c.bf16 %v895_v2, %v894_v58  ;;  %v728_v58 = vld [vmem:[#allocation2 + $0x7a] sm:$0xff] }
  0xe0   : > { %1433 = vmatmul.mubr.f32.gmra.mrb[8].mxu0 %v4016_v25  ;;  %1702 = vmatprep.mubr.f32.mxu1 %v4022_v6 }
  0xe1   : > { %1437 = vmatprep.mubr.f32.mxu0 %v3599_v18  ;;  %2552 = vmatpush1.bf16.msra.mxu0 %v3546_v44  ;;  %v896_v18 = vld [vmem:[%s4568_s3 + $0x470] sm:$0xff]  ;;  %v897_v44 = vld [vmem:[%s4568_s3 + $0x478] sm:$0xff] }
  0xe2   : > { %2553 = vmatprep.subr.bf16.mxu0 %v4645_v38  ;;  %2605 = vmatpush3.bf16.msra.mxu1 %v2602_v52  ;;  %v4664_v52 = vld [vmem:[#allocation15_spill] sm:$0xff] }
  0xe3   : > { %1703 = vmatmul.mubr.f32.gmra.mrb[74].mxu1 %v3770_v15  ;;  %2607 = vmatprep.subr.bf16.mxu1 %v2606_v42  ;;  %v2614_v15 = vpack.c.bf16 %v897_v44, %v896_v18  ;;  %v4666_v18 = vld [vmem:[#allocation19_spill] sm:$0xff] }
  0xe4   : > { %1438 = vmatmul.mubr.f32.gmra.mrb[10].mxu0 %v4032_v9  ;;  %1707 = vmatprep.mubr.f32.mxu1 %v4038_v48  ;;  %v730_v44 = vld [vmem:[#allocation2 + $0x92] sm:$0xff] }
  0xe5   : > { %1442 = vmatprep.mubr.f32.mxu0 %v3621_v55  ;;  %2555 = vmatpush1.bf16.msra.mxu0 %v3566_v60  ;;  %v4058_v55 = vld [vmem:[#allocation2 + $0x69] sm:$0xff]  ;;  %v4068_v60 = vld [vmem:[#allocation2 + $0x79] sm:$0xff] }
  0xe6   : > { %2556 = vmatprep.subr.bf16.mxu0 %v4645_v38  ;;  %2609 = vmatpush3.bf16.msra.mxu1 %v2606_v42  ;;  %v727_v42 = vld [vmem:[#allocation2 + $0x6a] sm:$0xff] }
  0xe7   : > { %1708 = vmatmul.mubr.f32.gmra.mrb[76].mxu1 %v3802_v49  ;;  %2611 = vmatprep.subr.bf16.mxu1 %v2610_v54  ;;  %v4064_v49 = vld [vmem:[#allocation2 + $0xf1] sm:$0xff] }
  0xe8   : > { %1443 = vmatmul.mubr.f32.gmra.mrb[12].mxu0 %v4048_v23  ;;  %1712 = vmatprep.mubr.f32.mxu1 %v4054_v57 }
  0xe9   : > { %1447 = vmatprep.mubr.f32.mxu0 %v3643_v21  ;;  %2558 = vmatpush1.bf16.msra.mxu0 %v3587_v17  ;;  %v4074_v17 = vld [vmem:[#allocation2 + $0xf9] sm:$0xff]  ;;  %v4078_v21 = vld [vmem:[#allocation2 + $0x81] sm:$0xff] }
  0xea   : > { %2559 = vmatprep.subr.bf16.mxu0 %v4645_v38  ;;  %2613 = vmatpush3.bf16.msra.mxu1 %v2610_v54  ;;  %v2813_v54 = vld [vmem:[#allocation2 + $0x151] sm:$0xff] }
  0xeb   : > { %1713 = vmatmul.mubr.f32.gmra.mrb[78].mxu1 %v3818_v59  ;;  %2615 = vmatprep.subr.bf16.mxu1 %v2614_v15 }
  0xec   : > { %1448 = vmatmul.mubr.f32.gmra.mrb[14].mxu0 %v4058_v55  ;;  %1717 = vmatprep.mubr.f32.mxu1 %v4064_v49 }
  0xed   : > { %1452 = vmatprep.mubr.f32.mxu0 %v3668_v19  ;;  %2561 = vmatpush1.bf16.msra.mxu0 %v3609_v22  ;;  %v2804_v22 = vld [vmem:[#allocation2 + $0x109] sm:$0xff]  ;;  %v2805_v19 = vld [vmem:[#allocation2 + $0x91] sm:$0xff] }
  0xee   : > { %2562 = vmatprep.subr.bf16.mxu0 %v4645_v38  ;;  %2617 = vmatpush3.bf16.msra.mxu1 %v2614_v15 }
  0xef   : > { %1718 = vmatmul.mubr.f32.gmra.mrb[80].mxu1 %v3830_v0 }
  0xf0   : > { %1453 = vmatmul.mubr.f32.gmra.mrb[16].mxu0 %v4068_v60  ;;  %1722 = vmatprep.mubr.f32.mxu1 %v4074_v17 }
  0xf1   : > { %1457 = vmatprep.mubr.f32.mxu0 %v3693_v16  ;;  %2564 = vmatpush1.bf16.msra.mxu0 %v3631_v28  ;;  %v2806_v16 = vld [vmem:[#allocation2 + $0x111] sm:$0xff]  ;;  %v2807_v28 = vld [vmem:[#allocation2 + $0x99] sm:$0xff] }
  0xf2   : > { %2565 = vmatprep.subr.bf16.mxu0 %v4645_v38 }
  0xf3   : > { %1723 = vmatmul.mubr.f32.gmra.mrb[82].mxu1 %v3839_v35 }
  0xf4   : > { %1458 = vmatmul.mubr.f32.gmra.mrb[18].mxu0 %v4078_v21  ;;  %1727 = vmatprep.mubr.f32.mxu1 %v2804_v22 }
  0xf5   : > { %1462 = vmatprep.mubr.f32.mxu0 %v3717_v11  ;;  %2567 = vmatpush1.bf16.msra.mxu0 %v3655_v36  ;;  %v2808_v11 = vld [vmem:[#allocation2 + $0x121] sm:$0xff] }
  0xf6   : > { %2568 = vmatprep.subr.bf16.mxu0 %v4645_v38 }
  0xf7   : > { %1728 = vmatmul.mubr.f32.gmra.mrb[84].mxu1 %v3848_v62 }
  0xf8   : > { %1463 = vmatmul.mubr.f32.gmra.mrb[20].mxu0 %v2805_v19  ;;  %1732 = vmatprep.mubr.f32.mxu1 %v2806_v16  ;;  %v732_v19 = vld [vmem:[#allocation2 + $0xaa] sm:$0xff] }
  0xf9   : > { %1467 = vmatprep.mubr.f32.mxu0 %v3742_v56  ;;  %2570 = vmatpush1.bf16.msra.mxu0 %v3680_v40  ;;  %v4655_v40 = vld [vmem:[#allocation9_spill] sm:$0xff]  ;;  %v4659_v56 = vld [vmem:[#allocation10_spill] sm:$0xff] }
  0xfa   : > { %2571 = vmatprep.subr.bf16.mxu0 %v4645_v38 }
  0xfb   : > { %1733 = vmatmul.mubr.f32.gmra.mrb[86].mxu1 %v3857_v27  ;;  %v2810_v27 = vld [vmem:[#allocation2 + $0x129] sm:$0xff] }
  0xfc   : > { %1468 = vmatmul.mubr.f32.gmra.mrb[22].mxu0 %v2807_v28  ;;  %1737 = vmatprep.mubr.f32.mxu1 %v2808_v11 }
  0xfd   : > { %1472 = vmatprep.mubr.f32.mxu0 %v3768_v39  ;;  %2573 = vmatpush1.bf16.msra.mxu0 %v3705_v47  ;;  %v4657_v47 = vld [vmem:[#allocation5_spill] sm:$0xff] }
  0xfe   : > { %2574 = vmatprep.subr.bf16.mxu0 %v4645_v38 }
  0xff   : > { %1738 = vmatmul.mubr.f32.gmra.mrb[88].mxu1 %v3866_v3  ;;  %v4646_v3 = vld [vmem:[#allocation6_spill] sm:$0xff] }
 0x100   : > { %1473 = vmatmul.mubr.f32.gmra.mrb[24].mxu0 %v3972_v53  ;;  %1742 = vmatprep.mubr.f32.mxu1 %v3400_v10  ;;  %v4648_v10 = vld [vmem:[#allocation7_spill] sm:$0xff] }
 0x101   : > { %1477 = vmatprep.mubr.f32.mxu0 %v3800_v61  ;;  %2576 = vmatpush1.bf16.msra.mxu0 %v3729_v46  ;;  %v4658_v46 = vmax.f32 %v4657_v47, 0.0 }
 0x102   : > { %2577 = vmatprep.subr.bf16.mxu0 %v4645_v38 }
 0x103   : > { %1743 = vmatmul.mubr.f32.gmra.mrb[90].mxu1 %v3875_v29  ;;  %v4647_v29 = vld [vmem:[#allocation14_spill] sm:$0xff] }
 0x104   : > { %1478 = vmatmul.mubr.f32.gmra.mrb[26].mxu0 %v3990_v43  ;;  %1747 = vmatprep.mubr.f32.mxu1 %v3409_v32  ;;  %v4649_v32 = vld [vmem:[#allocation16_spill] sm:$0xff] }
 0x105   : > { %1482 = vmatprep.mubr.f32.mxu0 %v3816_v45  ;;  %2579 = vmatpush1.bf16.msra.mxu0 %v3754_v50  ;;  %v720_v50 = vld [vmem:[#allocation2 + $0x199] sm:$0xff]  ;;  %v721_v45 = vld [vmem:[#allocation2 + $0x1a1] sm:$0xff] }
 0x106   : > { %2580 = vmatprep.subr.bf16.mxu0 %v4645_v38  ;;  %v2811_v43 = vld [vmem:[#allocation2 + $0x139] sm:$0xff] }
 0x107   : > { %1748 = vmatmul.mubr.f32.gmra.mrb[92].mxu1 %v3884_v34  ;;  %v4652_v34 = vld [vmem:[#allocation18_spill] sm:$0xff] }
 0x108   : > { %1483 = vmatmul.mubr.f32.gmra.mrb[28].mxu0 %v4006_v26  ;;  %1752 = vmatprep.mubr.f32.mxu1 %v3419_v7  ;;  %v4650_v7 = vld [vmem:[#allocation4_spill] sm:$0xff]  ;;  %v726_v26 = vld [vmem:[#allocation2 + $0x62] sm:$0xff] }
 0x109   : > { %1487 = vmatprep.mubr.f32.mxu0 %v3828_v37  ;;  %2582 = vmatpush1.bf16.msra.mxu0 %v3780_v12  ;;  %v4660_v12 = vld [vmem:[#allocation22_spill] sm:$0xff]  ;;  %v2809_v37 = vld [vmem:[#allocation2] sm:$0xff] }
 0x10a   : > { %2583 = vmatprep.subr.bf16.mxu0 %v4645_v38  ;;  %v724_v38 = vld [vmem:[#allocation2 + $0x4a] sm:$0xff] }
 0x10b   : > { %1753 = vmatmul.mubr.f32.gmra.mrb[94].mxu1 %v3893_v31  ;;  %v4663_v31 = vld [vmem:[#allocation13_spill] sm:$0xff] }
 0x10c   : > { %1488 = vmatmul.mubr.f32.gmra.mrb[30].mxu0 %v4022_v6  ;;  %1757 = vmatprep.mubr.f32.mxu1 %v3433_v14  ;;  %v4651_v14 = vld [vmem:[#allocation8_spill] sm:$0xff]  ;;  %v4665_v6 = vld [vmem:[#allocation17_spill] sm:$0xff] }
 0x10d   : > { %1492 = vmatprep.mubr.f32.mxu0 %v3837_v24  ;;  %2585 = vmatpush1.bf16.msra.mxu0 %v3806_v13  ;;  %v4661_v13 = vld [vmem:[#allocation11_spill] sm:$0xff]  ;;  %v4662_v24 = vld [vmem:[#allocation12_spill] sm:$0xff] }
 0x10f   : > { %1758 = vmatmul.mubr.f32.gmra.mrb[96].mxu1 %v3901_v5 }
 0x110   : > { %1493 = vmatmul.mubr.f32.gmra.mrb[32].mxu0 %v4038_v48  ;;  %1762 = vmatprep.mubr.f32.mxu1 %v3447_v20  ;;  %v4653_v20 = vld [vmem:[#allocation3_spill] sm:$0xff]  ;;  %v729_v48 = vld [vmem:[#allocation2 + $0x82] sm:$0xff] }
 0x111   : > { %1497 = vmatprep.mubr.f32.mxu0 %v4646_v3  ;;  %v4654_v36 = vmax.f32 %v4653_v20, 0.0  ;;  %v733_v3 = vld [vmem:[#allocation2 + $0xb2] sm:$0xff]  ;;  %v735_v20 = vld [vmem:[#allocation2 + $0xca] sm:$0xff] }
 0x113   : > { %1763 = vmatmul.mubr.f32.gmra.mrb[98].mxu1 %v4647_v29  ;;  %v4668_v29 = vld [vmem:[#allocation23_spill] sm:$0xff] }
 0x114   : > { %1498 = vmatmul.mubr.f32.gmra.mrb[34].mxu0 %v4054_v57  ;;  %1767 = vmatprep.mubr.f32.mxu1 %v3455_v41  ;;  %v4656_v41 = vld [vmem:[#allocation20_spill] sm:$0xff] }
 0x115   : > { %1502 = vmatprep.mubr.f32.mxu0 %v4648_v10  ;;  %v734_v10 = vld [vmem:[#allocation2 + $0xc2] sm:$0xff] }
 0x117   : > { %1768 = vmatmul.mubr.f32.gmra.mrb[100].mxu1 %v4649_v32  ;;  %v4166_v32 = vld [vmem:[#allocation2 + $0x182] sm:$0xff] }
 0x118   : > { %1503 = vmatmul.mubr.f32.gmra.mrb[36].mxu0 %v4064_v49  ;;  %1772 = vmatprep.mubr.f32.mxu1 %v4650_v7  ;;  %v2814_v49 = vld [vmem:[#allocation2 + $0x159] sm:$0xff] }
 0x119   : > { %1507 = vmatprep.mubr.f32.mxu0 %v4651_v14 }
 0x11b   : > { %1773 = vmatmul.mubr.f32.gmra.mrb[102].mxu1 %v4652_v34  ;;  %v2816_v34 = vld [vmem:[#allocation2 + $0x171] sm:$0xff] }
 0x11c   : > { %1508 = vmatmul.mubr.f32.gmra.mrb[38].mxu0 %v4074_v17  ;;  %1777 = vmatprep.mubr.f32.mxu1 %v4654_v36  ;;  %v731_v17 = vld [vmem:[#allocation2 + $0x9a] sm:$0xff] }
 0x11d   : > { %1512 = vmatprep.mubr.f32.mxu0 %v4655_v40  ;;  %v736_v36 = vld [vmem:[#allocation2 + $0xda] sm:$0xff]  ;;  %v4171_v40 = vld [vmem:[#allocation2 + $0x18a] sm:$0xff] }
 0x11f   : > { %1778 = vmatmul.mubr.f32.gmra.mrb[104].mxu1 %v4656_v41 }
 0x120   : > { %1513 = vmatmul.mubr.f32.gmra.mrb[40].mxu0 %v2804_v22  ;;  %1782 = vmatprep.mubr.f32.mxu1 %v4658_v46  ;;  %v4667_v22 = vld [vmem:[#allocation21_spill] sm:$0xff] }
 0x121   : > { %1517 = vmatprep.mubr.f32.mxu0 %v4659_v56  ;;  %v2817_v46 = vld [vmem:[#allocation2 + $0x181] sm:$0xff] }
 0x122   : > { %v4139_v39 = vpop.f32.mrb[0].mxu1  ;;  %v737_v56 = vld [vmem:[#allocation2 + $0xe2] sm:$0xff] }
 0x123   : > { %1783 = vmatmul.mubr.f32.gmra.mrb[106].mxu1 %v4660_v12  ;;  %v966_v61 = vpop.f32.mrb[1].mxu1 }
 0x124   : > { %1518 = vmatmul.mubr.f32.gmra.mrb[42].mxu0 %v2806_v16  ;;  %1787 = vmatprep.mubr.f32.mxu1 %v720_v50  ;;  %v738_v50 = vld [vmem:[#allocation2 + $0xf2] sm:$0xff] }
 0x125   : > { %1522 = vmatprep.mubr.f32.mxu0 %v4661_v13 }
 0x126   : > { %v4143_v59 = vpop.f32.mrb[2].mxu1 }
 0x127   : > { %1788 = vmatmul.mubr.f32.gmra.mrb[108].mxu1 %v2809_v37  ;;  %v971_v0 = vpop.f32.mrb[3].mxu1 }
 0x128   : > { %1523 = vmatmul.mubr.f32.gmra.mrb[44].mxu0 %v2808_v11  ;;  %1792 = vmatprep.mubr.f32.mxu1 %v721_v45  ;;  %v2815_v11 = vld [vmem:[#allocation2 + $0x169] sm:$0xff] }
 0x129   : > { %1527 = vmatprep.mubr.f32.mxu0 %v4662_v24  ;;  %v2818_v45 = vld [vmem:[#allocation2 + $0x189] sm:$0xff] }
 0x12a   : > { %v4146_v35 = vpop.f32.mrb[4].mxu1  ;;  %v658_v0 = vld [vmem:[#allocation2 + $0x30] sm:$0xff] }
 0x12b   : > { %1793 = vmatmul.mubr.f32.gmra.mrb[110].mxu1 %v2809_v37  ;;  %v976_v62 = vpop.f32.mrb[5].mxu1  ;;  %v739_v37 = vld [vmem:[#allocation2 + $0xfa] sm:$0xff] }
 0x12c   : > { %1528 = vmatmul.mubr.f32.gmra.mrb[46].mxu0 %v2810_v27  ;;  %2346 = vmatprep.mubr.f32.mxu1 %v3967_v30  ;;  %v2812_v30 = vld [vmem:[#allocation2 + $0x141] sm:$0xff]  ;;  %v740_v62 = vld [vmem:[#allocation2 + $0x10a] sm:$0xff] }
 0x12d   : > { %1532 = vmatprep.mubr.f32.mxu0 %v4663_v31 }
 0x12e   : > { %v4150_v5 = vpop.f32.mrb[6].mxu1 }
 0x12f   : > { %2347 = vmatmul.mubr.f32.vlgmr.msra.gmra.mrb[112].mxu1 %v3985_v51  ;;  %v981_v53 = vpop.f32.mrb[7].mxu1 }
 0x130   : > { %1533 = vmatmul.mubr.f32.gmra.mrb[48].mxu0 %v2811_v43  ;;  %2349 = vmatprep.mubr.f32.mxu1 %v724_v38  ;;  %v741_v53 = vld [vmem:[#allocation2 + $0x112] sm:$0xff] }
 0x131   : > { %1537 = vmatprep.mubr.f32.mxu0 %v4664_v52  ;;  %v659_v43 = vld [vmem:[#allocation2 + $0x38] sm:$0xff] }
 0x132   : > { %v4154_v63 = vpop.f32.mrb[8].mxu1 }
 0x133   : > { %2350 = vmatmul.mubr.f32.gmra.mrb[114].mxu1 %v725_v33  ;;  %v986_v1 = vpop.f32.mrb[9].mxu1 }
 0x134   : > { %1538 = vmatmul.mubr.f32.gmra.mrb[50].mxu0 %v2812_v30  ;;  %2352 = vmatprep.mubr.f32.mxu1 %v726_v26 }
 0x135   : > { %1542 = vmatprep.mubr.f32.mxu0 %v4665_v6 }
 0x136   : > { %v4157_v51 = vpop.f32.mrb[10].mxu1 }
 0x137   : > { %2353 = vmatmul.mubr.f32.gmra.mrb[116].mxu1 %v727_v42  ;;  %v991_v2 = vpop.f32.mrb[11].mxu1 }
 0x138   : > { %1543 = vmatmul.mubr.f32.gmra.mrb[52].mxu0 %v2813_v54  ;;  %2355 = vmatprep.mubr.f32.mxu1 %v728_v58 }
 0x139   : > { %1547 = vmatprep.mubr.f32.mxu0 %v4666_v18 }
 0x13a   : > { %v4160_v15 = vpop.f32.mrb[12].mxu1 }
 0x13b   : > { %2356 = vmatmul.mubr.f32.gmra.mrb[118].mxu1 %v729_v48  ;;  %v996_v57 = vpop.f32.mrb[13].mxu1  ;;  %v665_v48 = vld [vmem:[#allocation2 + $0x80] sm:$0xff] }
 0x13c   : > { %1548 = vmatmul.mubr.f32.gmra.mrb[54].mxu0 %v2814_v49  ;;  %2358 = vmatprep.mubr.f32.mxu1 %v730_v44 }
 0x13d   : > { %1552 = vmatprep.mubr.f32.mxu0 %v4667_v22 }
 0x13e   : > { %v4163_v16 = vpop.f32.mrb[14].mxu1 }
 0x13f   : > { %2359 = vmatmul.mubr.f32.gmra.mrb[120].mxu1 %v731_v17  ;;  %v1001_v28 = vpop.f32.mrb[15].mxu1 }
 0x140   : > { %1553 = vmatmul.mubr.f32.gmra.mrb[56].mxu0 %v2815_v11  ;;  %2361 = vmatprep.mubr.f32.mxu1 %v732_v19 }
 0x141   : > { %1557 = vmatprep.mubr.f32.mxu0 %v4668_v29 }
 0x142   : > { %v4168_v7 = vpop.f32.mrb[16].mxu1 }
 0x143   : > { %2362 = vmatmul.mubr.f32.gmra.mrb[122].mxu1 %v733_v3  ;;  %v1006_v14 = vpop.f32.mrb[17].mxu1 }
 0x144   : > { %1558 = vmatmul.mubr.f32.gmra.mrb[58].mxu0 %v2816_v34  ;;  %2364 = vmatprep.mubr.f32.mxu1 %v734_v10 }
 0x145   : > { %1562 = vmatprep.mubr.f32.mxu0 %v4166_v32 }
 0x146   : > { %v4173_v41 = vpop.f32.mrb[18].mxu1 }
 0x147   : > { %2365 = vmatmul.mubr.f32.gmra.mrb[124].mxu1 %v735_v20  ;;  %v1011_v47 = vpop.f32.mrb[19].mxu1 }
 0x148   : > { %1563 = vmatmul.mubr.f32.gmra.mrb[60].mxu0 %v2817_v46  ;;  %2367 = vmatprep.mubr.f32.mxu1 %v736_v36 }
 0x149   : > { %1567 = vmatprep.mubr.f32.mxu0 %v4171_v40 }
 0x14a   : > { %v4176_v12 = vpop.f32.mrb[20].mxu1 }
 0x14b   : > { %2368 = vmatmul.mubr.f32.gmra.mrb[126].mxu1 %v737_v56  ;;  %v1016_v61 = vpop.f32.mrb[21].mxu1 }
 0x14c   : > { %1568 = vmatmul.mubr.f32.gmra.mrb[62].mxu0 %v2818_v45  ;;  %2370 = vmatprep.mubr.f32.mxu1 %v738_v50 }
 0x14d   : > { %1637 = vmatprep.mubr.f32.mxu0 %v3982_v4  ;;  %v660_v4 = vld [vmem:[#allocation2 + $0x48] sm:$0xff] }
 0x14e   : > { %v4179_v27 = vpop.f32.mrb[22].mxu1 }
 0x14f   : > { %2371 = vmatmul.mubr.f32.gmra.mrb[128].mxu1 %v739_v37  ;;  %v1021_v38 = vpop.f32.mrb[23].mxu1 }
 0x150   : > { %1638 = vmatmul.mubr.f32.vlgmr.msra.gmra.mrb[0].mxu0 %v658_v0  ;;  %2373 = vmatprep.mubr.f32.mxu1 %v740_v62 }
 0x151   : > { %1642 = vmatprep.mubr.f32.mxu0 %v4000_v8  ;;  %v661_v8 = vld [vmem:[#allocation2 + $0x50] sm:$0xff] }
 0x152   : > { %v4182_v33 = vpop.f32.mrb[24].mxu1 }
 0x153   : > { %2374 = vmatmul.mubr.f32.gmra.mrb[130].mxu1 %v741_v53  ;;  %v1026_v26 = vpop.f32.mrb[25].mxu1 }
 0x154   : > { %1643 = vmatmul.mubr.f32.gmra.mrb[2].mxu0 %v659_v43  ;;  %2376 = vmatprep.mubr.f32.mxu1 %v4661_v13 }
 0x155   : > { %1647 = vmatprep.mubr.f32.mxu0 %v4016_v25  ;;  %v662_v25 = vld [vmem:[#allocation2 + $0x60] sm:$0xff] }
 0x156   : > { %v4186_v1 = vpop.f32.mrb[26].mxu1 }
 0x157   : > { %2377 = vmatmul.mubr.f32.gmra.mrb[132].mxu1 %v4662_v24  ;;  %v1031_v30 = vpop.f32.mrb[27].mxu1 }
 0x158   : > { %1648 = vmatmul.mubr.f32.gmra.mrb[4].mxu0 %v660_v4  ;;  %2379 = vmatprep.mubr.f32.mxu1 %v4663_v31 }
 0x159   : > { %1652 = vmatprep.mubr.f32.mxu0 %v4032_v9  ;;  %v663_v9 = vld [vmem:[#allocation2 + $0x68] sm:$0xff] }
 0x15a   : > { %v4191_v42 = vpop.f32.mrb[28].mxu1 }
 0x15b   : > { %2380 = vmatmul.mubr.f32.gmra.mrb[134].mxu1 %v4664_v52  ;;  %v1036_v58 = vpop.f32.mrb[29].mxu1 }
 0x15c   : > { %1653 = vmatmul.mubr.f32.gmra.mrb[6].mxu0 %v661_v8  ;;  %2382 = vmatprep.mubr.f32.mxu1 %v4665_v6  ;;  %v752_v6 = vld [vmem:[#allocation2 + $0x19a] sm:$0xff] }
 0x15d   : > { %1657 = vmatprep.mubr.f32.mxu0 %v4048_v23  ;;  %v664_v23 = vld [vmem:[#allocation2 + $0x78] sm:$0xff] }
 0x15e   : > { %v4196_v13 = vpop.f32.mrb[30].mxu1 }
 0x15f   : > { %2383 = vmatmul.mubr.f32.gmra.mrb[136].mxu1 %v4666_v18  ;;  %v1041_v24 = vpop.f32.mrb[31].mxu1 }
 0x160   : > { %1658 = vmatmul.mubr.f32.gmra.mrb[8].mxu0 %v662_v25  ;;  %2385 = vmatprep.mubr.f32.mxu1 %v4667_v22 }
 0x161   : > { %1662 = vmatprep.mubr.f32.mxu0 %v4058_v55  ;;  %v753_v55 = vld [vmem:[#allocation2 + $0x1a2] sm:$0xff] }
 0x162   : > { %v4201_v31 = vpop.f32.mrb[32].mxu1 }
 0x163   : > { %2386 = vmatmul.mubr.f32.gmra.mrb[138].mxu1 %v4668_v29  ;;  %v1046_v52 = vpop.f32.mrb[33].mxu1 }
 0x164   : > { %1663 = vmatmul.mubr.f32.gmra.mrb[10].mxu0 %v663_v9  ;;  %2388 = vmatprep.mubr.f32.mxu1 %v4166_v32 }
 0x165   : > { %1667 = vmatprep.mubr.f32.mxu0 %v4068_v60 }
 0x166   : > { %v4206_v2 = vpop.f32.mrb[34].mxu1 }
 0x167   : > { %2389 = vmatmul.mubr.f32.gmra.mrb[140].mxu1 %v4171_v40  ;;  %v1051_v54 = vpop.f32.mrb[35].mxu1 }
 0x168   : > { %1668 = vmatmul.mubr.f32.gmra.mrb[12].mxu0 %v664_v23  ;;  %2391 = vmatprep.mubr.f32.mxu1 %v752_v6 }
 0x169   : > { %1672 = vmatprep.mubr.f32.mxu0 %v4078_v21 }
 0x16a   : > { %v4210_v18 = vpop.f32.mrb[36].mxu1 }
 0x16b   : > { %2392 = vmatmul.mubr.f32.gmra.mrb[142].mxu1 %v753_v55  ;;  %v1056_v44 = vpop.f32.mrb[37].mxu1 }
 0x16c   : > { %1673 = vmatmul.mubr.f32.gmra.mrb[14].mxu0 %v665_v48 }
 0x16e   : > { %v4212_v57 = vpop.f32.mrb[38].mxu1 }
 0x16f   : > { %v1061_v60 = vpop.f32.mrb[39].mxu1 }
 0x172   : > { %v4214_v49 = vpop.f32.mrb[40].mxu1 }
 0x173   : > { %v1066_v17 = vpop.f32.mrb[41].mxu1 }
 0x176   : > { %v4216_v22 = vpop.f32.mrb[42].mxu1 }
 0x177   : > { %v1071_v19 = vpop.f32.mrb[43].mxu1 }
 0x17a   : > { %v4218_v28 = vpop.f32.mrb[44].mxu1 }
 0x17b   : > { %v1076_v11 = vpop.f32.mrb[45].mxu1 }
 0x17e   : > { %v4220_v3 = vpop.f32.mrb[46].mxu1 }
 0x17f   : > { %v1081_v21 = vpop.f32.mrb[47].mxu1 }
 0x182   : > { %v4222_v29 = vpop.f32.mrb[48].mxu1 }
 0x183   : > { %v1086_v10 = vpop.f32.mrb[49].mxu1 }
 0x186   : > { %v4224_v32 = vpop.f32.mrb[50].mxu1 }
 0x187   : > { %v1091_v14 = vpop.f32.mrb[51].mxu1 }
 0x18a   : > { %v4226_v34 = vpop.f32.mrb[52].mxu1 }
 0x18b   : > { %v1096_v20 = vpop.f32.mrb[53].mxu1 }
 0x18e   : > { %v4228_v36 = vpop.f32.mrb[54].mxu1 }
 0x18f   : > { %v1101_v40 = vpop.f32.mrb[55].mxu1 }
 0x192   : > { %v4230_v47 = vpop.f32.mrb[56].mxu1 }
 0x193   : > { %v1106_v46 = vpop.f32.mrb[57].mxu1 }
 0x196   : > { %v4232_v56 = vpop.f32.mrb[58].mxu1 }
 0x197   : > { %v1111_v50 = vpop.f32.mrb[59].mxu1 }
 0x19a   : > { %v4234_v61 = vpop.f32.mrb[60].mxu1 }
 0x19b   : > { %v1116_v45 = vpop.f32.mrb[61].mxu1 }
 0x19e   : > { %v4236_v37 = vpop.f32.mrb[62].mxu1 }
 0x19f   : > { %v1121_v0 = vpop.f32.mrb[63].mxu1 }
 0x1a2   : > { %v1679_v62 = vpop.f32.mrb[64].mxu1 }
 0x1a3   : > { %v1681_v38 = vpop.f32.mrb[65].mxu1 }
 0x1a6   : > { %v1684_v53 = vpop.f32.mrb[66].mxu1 }
 0x1a7   : > { %v1686_v43 = vpop.f32.mrb[67].mxu1 }
 0x1aa   : > { %v1689_v26 = vpop.f32.mrb[68].mxu1 }
 0x1ab   : > { %v1691_v4 = vpop.f32.mrb[69].mxu1 }
 0x1ae   : > { %v1694_v30 = vpop.f32.mrb[70].mxu1 }
 0x1af   : > { %v1696_v8 = vpop.f32.mrb[71].mxu1 }
 0x1b2   : > { %v1699_v58 = vpop.f32.mrb[72].mxu1 }
 0x1b3   : > { %v1701_v25 = vpop.f32.mrb[73].mxu1 }
 0x1b6   : > { %v1704_v24 = vpop.f32.mrb[74].mxu1 }
 0x1b7   : > { %v1706_v9 = vpop.f32.mrb[75].mxu1 }
 0x1ba   : > { %v1709_v52 = vpop.f32.mrb[76].mxu1 }
 0x1bb   : > { %v1711_v23 = vpop.f32.mrb[77].mxu1 }
 0x1be   : > { %v1714_v6 = vpop.f32.mrb[78].mxu1 }
 0x1bf   : > { %v1716_v54 = vpop.f32.mrb[79].mxu1 }
 0x1c2   : > { %v1719_v55 = vpop.f32.mrb[80].mxu1 }
 0x1c3   : > { %v1454_v48 = vpop.f32.mrb[16].mxu0  ;;  %v1721_v44 = vpop.f32.mrb[81].mxu1 }
 0x1c4   : > { %v2658_v60 = vadd.f32 %v1454_v48, %v4168_v7  ;;  %v1456_v17 = vpop.f32.mrb[17].mxu0 }
 0x1c6   : > { %v4239_v19 = vadd.f32 %v2658_v60, %v1679_v62  ;;  %v1724_v11 = vpop.f32.mrb[82].mxu1 }
 0x1c7   : > { %v1459_v21 = vpop.f32.mrb[18].mxu0  ;;  %v1726_v10 = vpop.f32.mrb[83].mxu1 }
 0x1c8   : > { %v2660_v14 = vadd.f32 %v1459_v21, %v4173_v41  ;;  %v1461_v20 = vpop.f32.mrb[19].mxu0 }
 0x1ca   : > { %v4242_v40 = vadd.f32 %v2660_v14, %v1684_v53  ;;  %v1729_v46 = vpop.f32.mrb[84].mxu1 }
 0x1cb   : > { %v1464_v50 = vpop.f32.mrb[20].mxu0  ;;  %v1731_v45 = vpop.f32.mrb[85].mxu1 }
 0x1cc   : > { %v2662_v0 = vadd.f32 %v1464_v50, %v4176_v12  ;;  %v1466_v38 = vpop.f32.mrb[21].mxu0 }
 0x1ce   : > { %v4245_v43 = vadd.f32 %v2662_v0, %v1689_v26  ;;  %v1734_v7 = vpop.f32.mrb[86].mxu1 }
 0x1cf   : > { %v1469_v4 = vpop.f32.mrb[22].mxu0  ;;  %v1736_v62 = vpop.f32.mrb[87].mxu1 }
 0x1d0   : > { %v2664_v8 = vadd.f32 %v1469_v4, %v4179_v27  ;;  %v1471_v25 = vpop.f32.mrb[23].mxu0 }
 0x1d2   : > { %v4248_v9 = vadd.f32 %v2664_v8, %v1694_v30  ;;  %v1739_v41 = vpop.f32.mrb[88].mxu1 }
 0x1d3   : > { %v1474_v23 = vpop.f32.mrb[24].mxu0  ;;  %v1741_v53 = vpop.f32.mrb[89].mxu1 }
 0x1d4   : > { %v2666_v54 = vadd.f32 %v1474_v23, %v4182_v33  ;;  %v1476_v48 = vpop.f32.mrb[25].mxu0 }
 0x1d6   : > { %v4251_v44 = vadd.f32 %v2666_v54, %v1699_v58  ;;  %v1744_v12 = vpop.f32.mrb[90].mxu1 }
 0x1d7   : > { %v1479_v60 = vpop.f32.mrb[26].mxu0  ;;  %v1746_v26 = vpop.f32.mrb[91].mxu1 }
 0x1d8   : > { %v2668_v17 = vadd.f32 %v1479_v60, %v4186_v1  ;;  %v1481_v21 = vpop.f32.mrb[27].mxu0 }
 0x1da   : > { %v4254_v10 = vadd.f32 %v2668_v17, %v1704_v24  ;;  %v1749_v27 = vpop.f32.mrb[92].mxu1 }
 0x1db   : > { %v1484_v14 = vpop.f32.mrb[28].mxu0  ;;  %v1751_v30 = vpop.f32.mrb[93].mxu1 }
 0x1dc   : > { %v2670_v20 = vadd.f32 %v1484_v14, %v4191_v42  ;;  %v1486_v50 = vpop.f32.mrb[29].mxu0 }
 0x1de   : > { %v4257_v45 = vadd.f32 %v2670_v20, %v1709_v52  ;;  %v1754_v33 = vpop.f32.mrb[94].mxu1 }
 0x1df   : > { %v1489_v0 = vpop.f32.mrb[30].mxu0  ;;  %v1756_v58 = vpop.f32.mrb[95].mxu1 }
 0x1e0   : > { %v2672_v38 = vadd.f32 %v1489_v0, %v4196_v13  ;;  %v1491_v4 = vpop.f32.mrb[31].mxu0 }
 0x1e2   : > { %v4260_v62 = vadd.f32 %v2672_v38, %v1714_v6  ;;  %v1759_v1 = vpop.f32.mrb[96].mxu1 }
 0x1e3   : > { %v1494_v8 = vpop.f32.mrb[32].mxu0  ;;  %v1761_v24 = vpop.f32.mrb[97].mxu1 }
 0x1e4   : > { %v2674_v25 = vadd.f32 %v1494_v8, %v4201_v31  ;;  %v1496_v23 = vpop.f32.mrb[33].mxu0 }
 0x1e6   : > { %v4263_v53 = vadd.f32 %v2674_v25, %v1719_v55  ;;  %v1764_v42 = vpop.f32.mrb[98].mxu1 }
 0x1e7   : > { %v1499_v54 = vpop.f32.mrb[34].mxu0  ;;  %v1766_v52 = vpop.f32.mrb[99].mxu1 }
 0x1e8   : > { %v2676_v48 = vadd.f32 %v1499_v54, %v4206_v2  ;;  %v1501_v60 = vpop.f32.mrb[35].mxu0 }
 0x1ea   : > { %v4266_v26 = vadd.f32 %v2676_v48, %v1724_v11  ;;  %v1769_v13 = vpop.f32.mrb[100].mxu1 }
 0x1eb   : > { %v1504_v17 = vpop.f32.mrb[36].mxu0  ;;  %v1771_v6 = vpop.f32.mrb[101].mxu1 }
 0x1ec   : > { %v2678_v21 = vadd.f32 %v1504_v17, %v4210_v18  ;;  %v1506_v14 = vpop.f32.mrb[37].mxu0 }
 0x1ee   : > { %v4269_v30 = vadd.f32 %v2678_v21, %v1729_v46  ;;  %v1774_v31 = vpop.f32.mrb[102].mxu1 }
 0x1ef   : > { %v1509_v20 = vpop.f32.mrb[38].mxu0  ;;  %v1776_v55 = vpop.f32.mrb[103].mxu1 }
 0x1f0   : > { %v2680_v50 = vadd.f32 %v1509_v20, %v4212_v57  ;;  %v1511_v0 = vpop.f32.mrb[39].mxu0 }
 0x1f2   : > { %v4272_v58 = vadd.f32 %v2680_v50, %v1734_v7  ;;  %v1779_v2 = vpop.f32.mrb[104].mxu1 }
 0x1f3   : > { %v1514_v38 = vpop.f32.mrb[40].mxu0  ;;  %v1781_v11 = vpop.f32.mrb[105].mxu1 }
 0x1f4   : > { %v2682_v4 = vadd.f32 %v1514_v38, %v4214_v49  ;;  %v1516_v8 = vpop.f32.mrb[41].mxu0 }
 0x1f6   : > { %v4275_v24 = vadd.f32 %v2682_v4, %v1739_v41  ;;  %v4277_v18 = vpop.f32.mrb[106].mxu1 }
 0x1f7   : > { %v1519_v46 = vpop.f32.mrb[42].mxu0  ;;  %v1786_v25 = vpop.f32.mrb[107].mxu1 }
 0x1f8   : > { %v2684_v23 = vadd.f32 %v1519_v46, %v4216_v22  ;;  %v1521_v54 = vpop.f32.mrb[43].mxu0 }
 0x1fa   : > { %v4280_v52 = vpop.f32.mrb[108].mxu1  ;;  %v4282_v57 = vadd.f32 %v2684_v23, %v1744_v12 }
 0x1fb   : > { %v1524_v7 = vpop.f32.mrb[44].mxu0  ;;  %v1791_v48 = vpop.f32.mrb[109].mxu1 }
 0x1fc   : > { %v2686_v60 = vadd.f32 %v1524_v7, %v4218_v28  ;;  %v1526_v17 = vpop.f32.mrb[45].mxu0 }
 0x1fe   : > { %v4285_v49 = vpop.f32.mrb[110].mxu1  ;;  %v4287_v41 = vadd.f32 %v2686_v60, %v1749_v27 }
 0x1ff   : > { %v1529_v6 = vpop.f32.mrb[46].mxu0  ;;  %v1796_v21 = vpop.f32.mrb[111].mxu1 }
 0x200   : > { %v2688_v14 = vadd.f32 %v1529_v6, %v4220_v3  ;;  %v1531_v20 = vpop.f32.mrb[47].mxu0 }
 0x202   : > { %v4290_v22 = vpop.f32.mrb[112].mxu1  ;;  %v4292_v55 = vadd.f32 %v2688_v14, %v1754_v33 }
 0x203   : > { %v1534_v12 = vpop.f32.mrb[48].mxu0  ;;  %v4294_v50 = vpop.f32.mrb[113].mxu1 }
 0x204   : > { %v2690_v0 = vadd.f32 %v1534_v12, %v4222_v29  ;;  %v1536_v28 = vpop.f32.mrb[49].mxu0 }
 0x206   : > { %v4297_v38 = vpop.f32.mrb[114].mxu1  ;;  %v4299_v11 = vadd.f32 %v2690_v0, %v1759_v1 }
 0x207   : > { %v1539_v27 = vpop.f32.mrb[50].mxu0  ;;  %v4301_v4 = vpop.f32.mrb[115].mxu1 }
 0x208   : > { %v2692_v3 = vadd.f32 %v1539_v27, %v4224_v32  ;;  %v1541_v8 = vpop.f32.mrb[51].mxu0 }
 0x20a   : > { %v4304_v46 = vpop.f32.mrb[116].mxu1  ;;  %v4306_v33 = vadd.f32 %v2692_v3, %v1764_v42 }
 0x20b   : > { %v1544_v25 = vpop.f32.mrb[52].mxu0  ;;  %v4308_v23 = vpop.f32.mrb[117].mxu1 }
 0x20c   : > { %v2694_v29 = vadd.f32 %v1544_v25, %v4226_v34  ;;  %v1546_v54 = vpop.f32.mrb[53].mxu0 }
 0x20e   : > { %v4311_v7 = vpop.f32.mrb[118].mxu1  ;;  %v4313_v1 = vadd.f32 %v2694_v29, %v1769_v13 }
 0x20f   : > { %v1549_v48 = vpop.f32.mrb[54].mxu0  ;;  %v4315_v60 = vpop.f32.mrb[119].mxu1 }
 0x210   : > { %v2696_v32 = vadd.f32 %v1549_v48, %v4228_v36  ;;  %v1551_v17 = vpop.f32.mrb[55].mxu0 }
 0x212   : > { %v2360_v34 = vpop.f32.mrb[120].mxu1  ;;  %v4325_v42 = vadd.f32 %v2696_v32, %v1774_v31 }
 0x213   : > { %v1554_v6 = vpop.f32.mrb[56].mxu0  ;;  %v4328_v13 = vadd.f32 %v4242_v40, %v2360_v34  ;;  %v1904_v21 = vpop.f32.mrb[121].mxu1 }
 0x214   : > { %v2698_v36 = vadd.f32 %v1554_v6, %v4230_v47  ;;  %v1556_v14 = vpop.f32.mrb[57].mxu0  ;;  %v4332_v20 = vadd.f32 %v4239_v19, %v1904_v21 }
 0x215   : > { %2032 = vst [vmem:[%s4323_s9 + $0x48] sm:$0xff] %v4328_v13 }
 0x216   : > { %2031 = vst [vmem:[%s4323_s9 + $0x40] sm:$0xff] %v4332_v20  ;;  %v2363_v12 = vpop.f32.mrb[122].mxu1  ;;  %v4338_v31 = vadd.f32 %v2698_v36, %v1779_v2 }
 0x217   : > { %v1559_v0 = vpop.f32.mrb[58].mxu0  ;;  %v4341_v40 = vadd.f32 %v4248_v9, %v2363_v12  ;;  %v1914_v28 = vpop.f32.mrb[123].mxu1 }
 0x218   : > { %v2700_v47 = vadd.f32 %v1559_v0, %v4232_v56  ;;  %v1561_v27 = vpop.f32.mrb[59].mxu0  ;;  %v4345_v19 = vadd.f32 %v4245_v43, %v1914_v28 }
 0x219   : > { %2034 = vst [vmem:[%s4323_s9 + $0x58] sm:$0xff] %v4341_v40 }
 0x21a   : > { %2033 = vst [vmem:[%s4323_s9 + $0x50] sm:$0xff] %v4345_v19  ;;  %v2366_v3 = vpop.f32.mrb[124].mxu1  ;;  %v4352_v2 = vadd.f32 %v2700_v47, %v4277_v18 }
 0x21b   : > { %v1564_v8 = vpop.f32.mrb[60].mxu0  ;;  %v4355_v9 = vadd.f32 %v4254_v10, %v2366_v3  ;;  %v1924_v25 = vpop.f32.mrb[125].mxu1 }
 0x21c   : > { %v2702_v56 = vadd.f32 %v1564_v8, %v4234_v61  ;;  %v1566_v29 = vpop.f32.mrb[61].mxu0  ;;  %v4359_v43 = vadd.f32 %v4251_v44, %v1924_v25 }
 0x21d   : > { %2036 = vst [vmem:[%s4323_s9 + $0x68] sm:$0xff] %v4355_v9 }
 0x21e   : > { %2035 = vst [vmem:[%s4323_s9 + $0x60] sm:$0xff] %v4359_v43  ;;  %v2369_v54 = vpop.f32.mrb[126].mxu1  ;;  %v4366_v18 = vadd.f32 %v2702_v56, %v4280_v52 }
 0x21f   : > { %v1569_v48 = vpop.f32.mrb[62].mxu0  ;;  %v4369_v10 = vadd.f32 %v4260_v62, %v2369_v54  ;;  %v1934_v32 = vpop.f32.mrb[127].mxu1 }
 0x220   : > { %v2704_v61 = vadd.f32 %v1569_v48, %v4236_v37  ;;  %v1571_v17 = vpop.f32.mrb[63].mxu0  ;;  %v4373_v44 = vadd.f32 %v4257_v45, %v1934_v32 }
 0x221   : > { %2038 = vst [vmem:[%s4323_s9 + $0x78] sm:$0xff] %v4369_v10 }
 0x222   : > { %2037 = vst [vmem:[%s4323_s9 + $0x70] sm:$0xff] %v4373_v44  ;;  %v2372_v52 = vpop.f32.mrb[128].mxu1  ;;  %v4380_v34 = vadd.f32 %v2704_v61, %v4285_v49 }
 0x223   : > { %v1639_v6 = vpop.f32.mrb[0].mxu0  ;;  %v4383_v62 = vadd.f32 %v4266_v26, %v2372_v52  ;;  %v1944_v21 = vpop.f32.mrb[129].mxu1 }
 0x224   : > { %v2650_v37 = vadd.f32 %v1639_v6, %v4139_v39  ;;  %v1641_v45 = vpop.f32.mrb[1].mxu0  ;;  %v4387_v36 = vadd.f32 %v4263_v53, %v1944_v21 }
 0x225   : > { %2040 = vst [vmem:[%s4323_s9 + $0x88] sm:$0xff] %v4383_v62 }
 0x226   : > { %v1865_v14 = vadd.f32 %v2650_v37, %v4294_v50  ;;  %2039 = vst [vmem:[%s4323_s9 + $0x80] sm:$0xff] %v4387_v36  ;;  %v2375_v49 = vpop.f32.mrb[130].mxu1 }
 0x227   : > { %v1644_v12 = vpop.f32.mrb[2].mxu0  ;;  %v4395_v26 = vadd.f32 %v4272_v58, %v2375_v49  ;;  %v1954_v0 = vpop.f32.mrb[131].mxu1 }
 0x228   : > { %2023 = vst [vmem:[%s4323_s9] sm:$0xff] %v1865_v14  ;;  %v2651_v39 = vadd.f32 %v1644_v12, %v4143_v59  ;;  %v1646_v28 = vpop.f32.mrb[3].mxu0  ;;  %v4400_v53 = vadd.f32 %v4269_v30, %v1954_v0  ;;  %v2092_v27 = vmul.f32 %v1865_v14, %v1865_v14 }
 0x229   : > { %2042 = vst [vmem:[%s4323_s9 + $0x98] sm:$0xff] %v4395_v26 }
 0x22a   : > { %v1870_v50 = vadd.f32 %v2651_v39, %v4290_v22  ;;  %2041 = vst [vmem:[%s4323_s9 + $0x90] sm:$0xff] %v4400_v53  ;;  %v2378_v47 = vpop.f32.mrb[132].mxu1 }
 0x22b   : > { %v1649_v58 = vpop.f32.mrb[4].mxu0  ;;  %v4408_v3 = vadd.f32 %v4282_v57, %v2378_v47  ;;  %v1964_v59 = vpop.f32.mrb[133].mxu1 }
 0x22c   : > { %2024 = vst [vmem:[%s4323_s9 + $0x8] sm:$0xff] %v1870_v50  ;;  %v2055_v8 = vadd.f32 %v1870_v50, %v1865_v14  ;;  %v2093_v25 = vmul.f32 %v1870_v50, %v1870_v50  ;;  %v2652_v30 = vadd.f32 %v1649_v58, %v4146_v35  ;;  %v1651_v56 = vpop.f32.mrb[5].mxu0  ;;  %v4413_v22 = vadd.f32 %v4275_v24, %v1964_v59 }
 0x22d   : > { %2044 = vst [vmem:[%s4323_s9 + $0xa8] sm:$0xff] %v4408_v3 }
 0x22e   : > { %v2124_v29 = vadd.f32 %v2093_v25, %v2092_v27  ;;  %v1875_v54 = vadd.f32 %v2652_v30, %v4301_v4  ;;  %2043 = vst [vmem:[%s4323_s9 + $0xa0] sm:$0xff] %v4413_v22  ;;  %v2381_v57 = vpop.f32.mrb[134].mxu1 }
 0x22f   : > { %v1654_v48 = vpop.f32.mrb[6].mxu0  ;;  %v4421_v32 = vadd.f32 %v4292_v55, %v2381_v57  ;;  %v1974_v35 = vpop.f32.mrb[135].mxu1 }
 0x230   : > { %2025 = vst [vmem:[%s4323_s9 + $0x10] sm:$0xff] %v1875_v54  ;;  %v2056_v61 = vadd.f32 %v2055_v8, %v1875_v54  ;;  %v2094_v17 = vmul.f32 %v1875_v54, %v1875_v54  ;;  %v2653_v24 = vadd.f32 %v1654_v48, %v4150_v5  ;;  %v1656_v52 = vpop.f32.mrb[7].mxu0  ;;  %v4426_v6 = vadd.f32 %v4287_v41, %v1974_v35 }
 0x231   : > { %2046 = vst [vmem:[%s4323_s9 + $0xb8] sm:$0xff] %v4421_v32 }
 0x232   : > { %v2125_v4 = vadd.f32 %v2124_v29, %v2094_v17  ;;  %v1880_v21 = vadd.f32 %v2653_v24, %v4297_v38  ;;  %2045 = vst [vmem:[%s4323_s9 + $0xb0] sm:$0xff] %v4426_v6  ;;  %v2384_v55 = vpop.f32.mrb[136].mxu1 }
 0x233   : > { %v1659_v37 = vpop.f32.mrb[8].mxu0  ;;  %v4434_v45 = vadd.f32 %v4306_v33, %v2384_v55  ;;  %v1984_v5 = vpop.f32.mrb[137].mxu1 }
 0x234   : > { %2026 = vst [vmem:[%s4323_s9 + $0x18] sm:$0xff] %v1880_v21  ;;  %v2057_v14 = vadd.f32 %v2056_v61, %v1880_v21  ;;  %v2095_v49 = vmul.f32 %v1880_v21, %v1880_v21  ;;  %v2654_v41 = vadd.f32 %v1659_v37, %v4154_v63  ;;  %v1661_v12 = vpop.f32.mrb[9].mxu0  ;;  %v4439_v0 = vadd.f32 %v4299_v11, %v1984_v5 }
 0x235   : > { %2048 = vst [vmem:[%s4323_s9 + $0xc8] sm:$0xff] %v4434_v45  ;;  %v2100_v37 = vmul.f32 %v4332_v20, %v4332_v20 }
 0x236   : > { %v2126_v38 = vadd.f32 %v2125_v4, %v2095_v49  ;;  %v1885_v39 = vadd.f32 %v2654_v41, %v4308_v23  ;;  %2047 = vst [vmem:[%s4323_s9 + $0xc0] sm:$0xff] %v4439_v0  ;;  %v2387_v33 = vpop.f32.mrb[138].mxu1 }
 0x237   : > { %v1664_v28 = vpop.f32.mrb[10].mxu0  ;;  %v4447_v50 = vadd.f32 %v4325_v42, %v2387_v33  ;;  %v1994_v63 = vpop.f32.mrb[139].mxu1 }
 0x238   : > { %2027 = vst [vmem:[%s4323_s9 + $0x20] sm:$0xff] %v1885_v39  ;;  %v2058_v47 = vadd.f32 %v2057_v14, %v1885_v39  ;;  %v2096_v27 = vmul.f32 %v1885_v39, %v1885_v39  ;;  %v2655_v11 = vadd.f32 %v1664_v28, %v4157_v51  ;;  %v1666_v58 = vpop.f32.mrb[11].mxu0  ;;  %v4452_v59 = vadd.f32 %v4313_v1, %v1994_v63 }
 0x239   : > { %2050 = vst [vmem:[%s4323_s9 + $0xd8] sm:$0xff] %v4447_v50 }
 0x23a   : > { %v2127_v23 = vadd.f32 %v2126_v38, %v2096_v27  ;;  %v1890_v8 = vadd.f32 %v2655_v11, %v4304_v46  ;;  %2049 = vst [vmem:[%s4323_s9 + $0xd0] sm:$0xff] %v4452_v59  ;;  %v2390_v42 = vpop.f32.mrb[140].mxu1  ;;  %v2103_v38 = vmul.f32 %v4341_v40, %v4341_v40 }
 0x23b   : > { %v1669_v25 = vpop.f32.mrb[12].mxu0  ;;  %v4460_v30 = vadd.f32 %v4352_v2, %v2390_v42  ;;  %v2004_v51 = vpop.f32.mrb[141].mxu1 }
 0x23c   : > { %2028 = vst [vmem:[%s4323_s9 + $0x28] sm:$0xff] %v1890_v8  ;;  %v2059_v56 = vadd.f32 %v2058_v47, %v1890_v8  ;;  %v2097_v29 = vmul.f32 %v1890_v8, %v1890_v8  ;;  %v2656_v1 = vadd.f32 %v1669_v25, %v4160_v15  ;;  %v1671_v54 = vpop.f32.mrb[13].mxu0  ;;  %v4465_v57 = vadd.f32 %v4338_v31, %v2004_v51 }
 0x23d   : > { %2052 = vst [vmem:[%s4323_s9 + $0xe8] sm:$0xff] %v4460_v30 }
 0x23e   : > { %v2128_v46 = vadd.f32 %v2127_v23, %v2097_v29  ;;  %v1895_v48 = vadd.f32 %v2656_v1, %v4315_v60  ;;  %2051 = vst [vmem:[%s4323_s9 + $0xe0] sm:$0xff] %v4465_v57  ;;  %v2393_v2 = vpop.f32.mrb[142].mxu1 }
 0x23f   : > { %v1674_v35 = vpop.f32.mrb[14].mxu0  ;;  %v4473_v61 = vadd.f32 %v4380_v34, %v2393_v2  ;;  %v2014_v15 = vpop.f32.mrb[143].mxu1 }
 0x240   : > { %2029 = vst [vmem:[%s4323_s9 + $0x30] sm:$0xff] %v1895_v48  ;;  %v2060_v17 = vadd.f32 %v2059_v56, %v1895_v48  ;;  %v2098_v24 = vmul.f32 %v1895_v48, %v1895_v48  ;;  %v2657_v31 = vadd.f32 %v1674_v35, %v4163_v16  ;;  %v1676_v52 = vpop.f32.mrb[15].mxu0  ;;  %v4478_v4 = vadd.f32 %v4366_v18, %v2014_v15 }
 0x241   : > { %2054 = vst [vmem:[%s4323_s9 + $0xf8] sm:$0xff] %v4473_v61  ;;  %v2101_v18 = vmul.f32 %v4328_v13, %v4328_v13 }
 0x242   : > { %v2129_v60 = vadd.f32 %v2128_v46, %v2098_v24  ;;  %v1900_v21 = vadd.f32 %v2657_v31, %v4311_v7  ;;  %2053 = vst [vmem:[%s4323_s9 + $0xf0] sm:$0xff] %v4478_v4  ;;  %v2102_v7 = vmul.f32 %v4345_v19, %v4345_v19 }
 0x244   : > { %2030 = vst [vmem:[%s4323_s9 + $0x38] sm:$0xff] %v1900_v21  ;;  %v2061_v34 = vadd.f32 %v2060_v17, %v1900_v21  ;;  %v2099_v55 = vmul.f32 %v1900_v21, %v1900_v21 }
 0x246   : > { %v2062_v5 = vadd.f32 %v2061_v34, %v4332_v20  ;;  %v2130_v16 = vadd.f32 %v2129_v60, %v2099_v55  ;;  %v2104_v20 = vmul.f32 %v4359_v43, %v4359_v43 }
 0x248   : > { %v2063_v14 = vadd.f32 %v2062_v5, %v4328_v13  ;;  %v2131_v49 = vadd.f32 %v2130_v16, %v2100_v37  ;;  %v2105_v13 = vmul.f32 %v4355_v9, %v4355_v9 }
 0x24a   : > { %v2064_v41 = vadd.f32 %v2063_v14, %v4345_v19  ;;  %v2132_v12 = vadd.f32 %v2131_v49, %v2101_v18  ;;  %v2106_v19 = vmul.f32 %v4373_v44, %v4373_v44 }
 0x24c   : > { %v2065_v39 = vadd.f32 %v2064_v41, %v4341_v40  ;;  %v2133_v33 = vadd.f32 %v2132_v12, %v2102_v7  ;;  %v2107_v40 = vmul.f32 %v4369_v10, %v4369_v10  ;;  %v2122_v12 = vmul.f32 %v4478_v4, %v4478_v4 }
 0x24e   : > { %v2066_v28 = vadd.f32 %v2065_v39, %v4359_v43  ;;  %v2134_v63 = vadd.f32 %v2133_v33, %v2103_v38  ;;  %v2108_v43 = vmul.f32 %v4387_v36, %v4387_v36  ;;  %v2123_v38 = vmul.f32 %v4473_v61, %v4473_v61 }
 0x250   : > { %v2067_v47 = vadd.f32 %v2066_v28, %v4355_v9  ;;  %v2135_v27 = vadd.f32 %v2134_v63, %v2104_v20  ;;  %v2109_v9 = vmul.f32 %v4383_v62, %v4383_v62 }
 0x252   : > { %v2068_v11 = vadd.f32 %v2067_v47, %v4373_v44  ;;  %v2136_v58 = vadd.f32 %v2135_v27, %v2105_v13  ;;  %v2110_v44 = vmul.f32 %v4400_v53, %v4400_v53 }
 0x254   : > { %v2069_v23 = vadd.f32 %v2068_v11, %v4369_v10  ;;  %v2137_v8 = vadd.f32 %v2136_v58, %v2106_v19  ;;  %v2111_v10 = vmul.f32 %v4395_v26, %v4395_v26 }
 0x256   : > { %v2070_v42 = vadd.f32 %v2069_v23, %v4387_v36  ;;  %v2138_v25 = vadd.f32 %v2137_v8, %v2107_v40  ;;  %v2112_v36 = vmul.f32 %v4413_v22, %v4413_v22 }
 0x258   : > { %v2071_v51 = vadd.f32 %v2070_v42, %v4383_v62  ;;  %v2139_v56 = vadd.f32 %v2138_v25, %v2108_v43  ;;  %v2113_v62 = vmul.f32 %v4408_v3, %v4408_v3 }
 0x25a   : > { %v2140_v29 = vadd.f32 %v2139_v56, %v2109_v9  ;;  %v2072_v1 = vadd.f32 %v2071_v51, %v4400_v53  ;;  %v2114_v53 = vmul.f32 %v4426_v6, %v4426_v6 }
 0x25c   : > { %v2073_v54 = vadd.f32 %v2072_v1, %v4395_v26  ;;  %v2141_v46 = vadd.f32 %v2140_v29, %v2110_v44  ;;  %v2115_v26 = vmul.f32 %v4421_v32, %v4421_v32 }
 0x25e   : > { %v2074_v48 = vadd.f32 %v2073_v54, %v4413_v22  ;;  %v2142_v2 = vadd.f32 %v2141_v46, %v2111_v10  ;;  %v2116_v22 = vmul.f32 %v4439_v0, %v4439_v0 }
 0x260   : > { %v2075_v35 = vadd.f32 %v2074_v48, %v4408_v3  ;;  %v2143_v15 = vadd.f32 %v2142_v2, %v2112_v36  ;;  %v2117_v3 = vmul.f32 %v4434_v45, %v4434_v45 }
 0x262   : > { %v2076_v17 = vadd.f32 %v2075_v35, %v4426_v6  ;;  %v2144_v24 = vadd.f32 %v2143_v15, %v2113_v62  ;;  %v2118_v6 = vmul.f32 %v4452_v59, %v4452_v59 }
 0x264   : > { %v2077_v31 = vadd.f32 %v2076_v17, %v4421_v32  ;;  %v2145_v52 = vadd.f32 %v2144_v24, %v2114_v53  ;;  %v2119_v32 = vmul.f32 %v4447_v50, %v4447_v50 }
 0x266   : > { %v2078_v60 = vadd.f32 %v2077_v31, %v4439_v0  ;;  %v2146_v21 = vadd.f32 %v2145_v52, %v2115_v26  ;;  %v2120_v0 = vmul.f32 %v4465_v57, %v4465_v57 }
 0x268   : > { %v2079_v34 = vadd.f32 %v2078_v60, %v4434_v45  ;;  %v2147_v55 = vadd.f32 %v2146_v21, %v2116_v22  ;;  %v2121_v45 = vmul.f32 %v4460_v30, %v4460_v30 }
 0x26a   : > { %v2080_v37 = vadd.f32 %v2079_v34, %v4452_v59  ;;  %v2148_v5 = vadd.f32 %v2147_v55, %v2117_v3 }
 0x26c   : > { %v2081_v16 = vadd.f32 %v2080_v37, %v4447_v50  ;;  %v2149_v18 = vadd.f32 %v2148_v5, %v2118_v6 }
 0x26e   : > { %v2082_v14 = vadd.f32 %v2081_v16, %v4465_v57  ;;  %v2150_v49 = vadd.f32 %v2149_v18, %v2119_v32 }
 0x270   : > { %v2083_v7 = vadd.f32 %v2082_v14, %v4460_v30  ;;  %v2151_v41 = vadd.f32 %v2150_v49, %v2120_v0 }
 0x272   : > { %v2084_v59 = vadd.f32 %v2083_v7, %v4478_v4  ;;  %v2152_v50 = vadd.f32 %v2151_v41, %v2121_v45 }
 0x274   : > { %v2085_v39 = vadd.f32 %v2084_v59, %v4473_v61  ;;  %v2153_v57 = vadd.f32 %v2152_v50, %v2122_v12 }
 0x276   : > { %v2086_v33 = vrot.slane %v2085_v39, 4  ;;  %v2154_v20 = vadd.f32 %v2153_v57, %v2123_v38 }
 0x278   : > { %v2087_v28 = vadd.f32 %v2086_v33, %v2085_v39  ;;  %v2155_v63 = vrot.slane %v2154_v20, 4 }
 0x27a   : > { %v2088_v13 = vrot.slane %v2087_v28, 2  ;;  %v2156_v30 = vadd.f32 %v2155_v63, %v2154_v20 }
 0x27c   : > { %v2089_v47 = vadd.f32 %v2088_v13, %v2087_v28  ;;  %v2157_v27 = vrot.slane %v2156_v30, 2 }
 0x27e   : > { %v2090_v19 = vrot.slane %v2089_v47, 1  ;;  %v2158_v11 = vadd.f32 %v2157_v27, %v2156_v30 }
 0x280   : > { %v2159_v58 = vrot.slane %v2158_v11, 1  ;;  %v2091_v4 = vadd.f32 %v2090_v19, %v2089_v47 }
 0x282   : > { %v2160_v61 = vadd.f32 %v2159_v58, %v2158_v11 }
 0x284   : > { %v2162_v40 = vsel %vm2161_vm0, %v2091_v4, %v2160_v61 }
 0x285   : > { %2163 = vst [vmem:[%s235_s13] sm:$0x3] %v2162_v40 }
 0x286 PF: > { %s16_s18 = sadd.s32 1, %s2825_s18  }
 0x287   : > { %p13_p4 = scmp.ge.s32.totalorder %s16_s18, 4  }
 0x289   :  { %15 = sbr.rel (!%p13_p4) target bundleno = 1 (0x1), region = 80 }

</bundles_post_ra>
